<compile_context>
chip_gen: v6e
topology: v6e:2x2x1
jax: 0.10.0
libtpu: 0.0.40
codegen_flags: <defaults>
</compile_context>

<pallas_src>
import functools
import math

import jax
import jax.numpy as jnp
from jax.experimental import pallas as pl
from jax.experimental.pallas import tpu as pltpu


TILE_TDEC = 128                                  # decoder-frame tile (M axis of upsample matmul)
_INV_SQRT_2PI = 1.0 / math.sqrt(2.0 * math.pi)


def _sigmoid(x):
    return 1.0 / (1.0 + jnp.exp(-x))


def _softplus(x):
    # torch.nn.Softplus(beta=1, threshold=20)
    return jnp.where(x > 20.0, x, jnp.log(1.0 + jnp.exp(jnp.minimum(x, 20.0))))


# ---------------- fused BiLSTM (packed-seq) + Linear(2H -> 1) kernel ----------------

def _bilstm_proj_kernel(len_ref,                         # (B, 1) int32
                        x_ref,                           # (T*B, D), row t*B + b
                        extra_ref,                       # (T*B, 1) extra input column
                        wih_f_ref, wx_f_ref, whh_f_ref, b_f_ref,
                        wih_b_ref, wx_b_ref, whh_b_ref, b_b_ref,
                        pw_ref,                          # (1, 2H)  [w_fwd | w_bwd]
                        pb_ref,                          # (1, 1)
                        out_ref,                         # (T*B, 1)
                        xpre_f_ref, xpre_b_ref,          # (T*B, 4H) scratch
                        h_f_ref, c_f_ref, h_b_ref, c_b_ref,   # (B, H) scratch
                        yacc_ref,                        # (T*B, 2) scratch
                        *, hidden, seq_len, batch, softplus):
    H, T, B = hidden, seq_len, batch

    # Hoisted input projections: one big MXU GEMM per direction (review items 1-2).
    x = x_ref[...]
    extra = extra_ref[...]
    xpre_f_ref[...] = (jnp.dot(x, wih_f_ref[...], preferred_element_type=jnp.float32)
                       + extra * wx_f_ref[...] + b_f_ref[...])
    xpre_b_ref[...] = (jnp.dot(x, wih_b_ref[...], preferred_element_type=jnp.float32)
                       + extra * wx_b_ref[...] + b_b_ref[...])

    h_f_ref[...] = jnp.zeros_like(h_f_ref)
    c_f_ref[...] = jnp.zeros_like(c_f_ref)
    h_b_ref[...] = jnp.zeros_like(h_b_ref)
    c_b_ref[...] = jnp.zeros_like(c_b_ref)

    whh_f = whh_f_ref[...]
    whh_b = whh_b_ref[...]
    lengths = len_ref[...]                               # (B, 1) int32
    pw = pw_ref[...]
    pw_fwd = pw[:, 0:H]                                  # (1, H)
    pw_bwd = pw[:, H:2 * H]                              # (1, H)

    def cell(pre, h, c, whh):
        # pre already contains x @ W_ih + extra * W_x + (b_ih + b_hh)
        gates = pre + jnp.dot(h, whh, preferred_element_type=jnp.float32)   # (B, 4H)
        i = _sigmoid(gates[:, 0:H])
        f = _sigmoid(gates[:, H:2 * H])
        g = jnp.tanh(gates[:, 2 * H:3 * H])
        o = _sigmoid(gates[:, 3 * H:4 * H])
        c_new = f * c + i * g
        h_new = o * jnp.tanh(c_new)
        return h_new, c_new

    def step(t, carry):
        # ---- forward direction, timestep t ----
        row_f = t * B
        mask_f = t < lengths                                            # (B, 1) bool
        h_new, c_new = cell(xpre_f_ref[pl.ds(row_f, B), :],
                            h_f_ref[...], c_f_ref[...], whh_f)
        h_out = jnp.where(mask_f, h_new, 0.0)                           # pad_packed -> zeros
        h_f_ref[...] = jnp.where(mask_f, h_new, h_f_ref[...])
        c_f_ref[...] = jnp.where(mask_f, c_new, c_f_ref[...])
        yacc_ref[pl.ds(row_f, B), pl.ds(0, 1)] = jnp.sum(
            h_out * pw_fwd, axis=1, keepdims=True)

        # ---- backward direction, timestep T-1-t (fresh state at last valid step) ----
        tb = T - 1 - t
        row_b = tb * B
        mask_b = tb < lengths
        hb_new, cb_new = cell(xpre_b_ref[pl.ds(row_b, B), :],
                              h_b_ref[...], c_b_ref[...], whh_b)
        hb_out = jnp.where(mask_b, hb_new, 0.0)
        h_b_ref[...] = jnp.where(mask_b, hb_new, h_b_ref[...])
        c_b_ref[...] = jnp.where(mask_b, cb_new, c_b_ref[...])
        yacc_ref[pl.ds(row_b, B), pl.ds(1, 1)] = jnp.sum(
            hb_out * pw_bwd, axis=1, keepdims=True)
        return carry

    # Short fixed trip counts unrolled for LLO scheduling visibility.
    jax.lax.fori_loop(0, T, step, 0, unroll=(T <= 32))

    ya = yacc_ref[...]                                   # (T*B, 2)
    y = ya[:, 0:1] + ya[:, 1:2] + pb_ref[...]
    if softplus:
        y = _softplus(y)
    out_ref[...] = y


def _bilstm_project(x, extra_col, lengths, lstm_p, proj_w, proj_b, softplus):
    """Packed-sequence bidirectional LSTM + Linear(2H->1) (+Softplus). Returns (B, T)."""
    B, T, D = x.shape
    H = lstm_p["whh_f"].shape[0]
    # time-major flatten: row index = t*B + b
    x_flat = jnp.transpose(x, (1, 0, 2)).reshape(T * B, D)
    extra_flat = jnp.transpose(extra_col, (1, 0, 2)).reshape(T * B, 1)
    len2d = lengths.astype(jnp.int32).reshape(B, 1)

    kernel = functools.partial(_bilstm_proj_kernel, hidden=H, seq_len=T,
                               batch=B, softplus=softplus)

    def full(shape):
        return pl.BlockSpec(shape, lambda i, _n=len(shape): (0,) * _n)

    out = pl.pallas_call(
        kernel,
        out_shape=jax.ShapeDtypeStruct((T * B, 1), jnp.float32),
        grid=(1,),
        in_specs=[
            full((B, 1)),                 # lengths
            full((T * B, D)),             # x (time-major)
            full((T * B, 1)),             # extra column (durations / zeros)
            full((D, 4 * H)), full((1, 4 * H)), full((H, 4 * H)), full((1, 4 * H)),
            full((D, 4 * H)), full((1, 4 * H)), full((H, 4 * H)), full((1, 4 * H)),
            full((1, 2 * H)),             # projection weight row
            full((1, 1)),                 # projection bias
        ],
        out_specs=full((T * B, 1)),
        scratch_shapes=[
            pltpu.VMEM((T * B, 4 * H), jnp.float32),   # xpre_f
            pltpu.VMEM((T * B, 4 * H), jnp.float32),   # xpre_b
            pltpu.VMEM((B, H), jnp.float32),           # h_f
            pltpu.VMEM((B, H), jnp.float32),           # c_f
            pltpu.VMEM((B, H), jnp.float32),           # h_b
            pltpu.VMEM((B, H), jnp.float32),           # c_b
            pltpu.VMEM((T * B, 2), jnp.float32),       # per-step projection accumulators
        ],
        compiler_params=pltpu.CompilerParams(dimension_semantics=("arbitrary",)),
    )(len2d, x_flat, extra_flat,
      lstm_p["wih_f"], lstm_p["wx_f"], lstm_p["whh_f"], lstm_p["b_f"],
      lstm_p["wih_b"], lstm_p["wx_b"], lstm_p["whh_b"], lstm_p["b_b"],
      proj_w, proj_b)
    return out.reshape(T, B).T                            # (B, T)


# ---------------- Gaussian upsampling kernel (scores^T @ emb + PE, tiled over T_dec) ---

def _upsample_kernel(mu_ref,        # (1, T_enc)
                     isig_ref,      # (1, T_enc)
                     emb_ref,       # (T_enc, E)
                     pe_ref,        # (TILE, E)
                     out_ref,       # (TILE, E)
                     *, eps, tile_t):
    t0 = (pl.program_id(1) * tile_t).astype(jnp.float32)
    t_col = jax.lax.broadcasted_iota(jnp.float32, (tile_t, 1), 0) + t0      # (TILE, 1)

    mu = mu_ref[...]                                   # (1, T_enc)
    inv_sigma = isig_ref[...]                          # (1, T_enc)
    z = (t_col - mu) * inv_sigma                       # (TILE, T_enc), transposed layout
    # exp(Normal(mu, sigma).log_prob(t)) = exp(-z^2/2) / (sigma * sqrt(2*pi))
    w = jnp.exp(-0.5 * z * z) * (inv_sigma * _INV_SQRT_2PI)                 # (TILE, T_enc)
    norm = jnp.sum(w, axis=1, keepdims=True) + eps                          # (TILE, 1)
    up = jnp.dot(w, emb_ref[...], preferred_element_type=jnp.float32)       # (TILE, E)
    # normalization folded into the (TILE, E) output via EUP reciprocal
    out_ref[...] = up * pl.reciprocal(norm, approx=True) + pe_ref[...]


def gaussian_upsample(mu, inv_sigma, embeddings, pe, eps):
    B, T_enc, E = embeddings.shape
    T_pad = pe.shape[0]
    n_tiles = T_pad // TILE_TDEC
    kernel = functools.partial(_upsample_kernel, eps=eps, tile_t=TILE_TDEC)
    return pl.pallas_call(
        kernel,
        out_shape=jax.ShapeDtypeStruct((B, T_pad, E), jnp.float32),
        grid=(B, n_tiles),
        in_specs=[
            pl.BlockSpec((None, 1, T_enc), lambda b, j: (b, 0, 0)),
            pl.BlockSpec((None, 1, T_enc), lambda b, j: (b, 0, 0)),
            pl.BlockSpec((None, T_enc, E), lambda b, j: (b, 0, 0)),
            pl.BlockSpec((TILE_TDEC, E), lambda b, j: (j, 0)),
        ],
        out_specs=pl.BlockSpec((None, TILE_TDEC, E), lambda b, j: (b, j, 0)),
        compiler_params=pltpu.CompilerParams(
            dimension_semantics=("parallel", "parallel")),
    )(mu.reshape(B, 1, T_enc), inv_sigma.reshape(B, 1, T_enc), embeddings, pe)


# ----------------------------- plain-JAX glue --------------------------------

def sinusoidal_pe(T, d):
    # TODO(synk): exact PositionalEncoding definition not provided; standard additive
    # sinusoidal encoding with positional_dim == embedding_dim, dropout in eval mode.
    pos = jnp.arange(T, dtype=jnp.float32)[:, None]
    i = jnp.arange(0, d, 2, dtype=jnp.float32)
    div = jnp.exp(-math.log(10000.0) * i / d)
    pe = jnp.zeros((T, d), jnp.float32)
    pe = pe.at[:, 0::2].set(jnp.sin(pos * div))
    pe = pe.at[:, 1::2].set(jnp.cos(pos * div))
    return pe


def attention_forward(params, embeddings, input_lengths, y_durations,
                      use_teacher_forcing=True, eps=1e-8):
    """Attention.forward.  Returns (durations (B, T_enc), upsampled (B, T_dec, E))."""
    B, T_enc, E = embeddings.shape
    zeros_col = jnp.zeros((B, T_enc, 1), jnp.float32)

    # DurationPredictor: BiLSTM -> dropout(eval) -> Linear(2H->1, bias=False)
    durations = _bilstm_project(embeddings, zeros_col, input_lengths,
                                params["dur_lstm"], params["dur_proj_w"],
                                params["dur_proj_b"], softplus=False)        # (B, T_enc)

    # RangePredictor: [emb ; dur] -> BiLSTM -> Linear(2H->1) -> Softplus
    # (duration column fed as a separate narrow input; no (B,T,E+1) HBM concat)
    ranges = _bilstm_project(embeddings, durations[..., None], input_lengths,
                             params["rng_lstm"], params["rng_proj_w"],
                             params["rng_proj_b"], softplus=True)            # (B, T_enc)

    # teacher-forcing branch (deterministic flag instead of random.uniform)
    dur_sel = y_durations.astype(jnp.float32) if use_teacher_forcing else durations

    # mu / sigma prep in plain XLA (O(B*T_enc); replaces the in-kernel tril-matmul cumsum)
    dur_cumsum = jnp.cumsum(dur_sel, axis=1)               # (B, T_enc)
    mu = dur_cumsum - 0.5 * dur_sel
    inv_sigma = 1.0 / jnp.maximum(ranges, 1e-8)            # torch: Normal(mu, max(ranges, EPS))

    # max_duration: host read (same as torch's .item()); eager-only, like the reference.
    # torch .long() truncates; bucket the kernel's T_dec to a multiple of 128 so each
    # bucket compiles once and the decoder axis is MXU/store aligned, then slice exact.
    t_true = max(int(jnp.max(dur_cumsum[:, -1])), 1)
    t_pad = ((t_true + TILE_TDEC - 1) // TILE_TDEC) * TILE_TDEC

    pe = sinusoidal_pe(t_pad, E)
    upsampled = gaussian_upsample(mu, inv_sigma, embeddings, pe, eps)
    return durations, upsampled[:, :t_true, :]


# ----------------------------- parameter init --------------------------------

def _uniform(key, shape, scale):
    return jax.random.uniform(key, shape, jnp.float32, -scale, scale)


def init_bilstm(key, in_dim, hidden, with_extra):
    """PyTorch-layout single-layer BiLSTM params, weights pre-transposed to (in, 4H).
    The optional +1 input column (durations) is a separate (1, 4H) weight row."""
    ks = jax.random.split(key, 10)
    s = 1.0 / math.sqrt(hidden)

    def bias(k1, k2):   # b_ih + b_hh (sum of two uniforms, matching PyTorch init)
        return _uniform(k1, (1, 4 * hidden), s) + _uniform(k2, (1, 4 * hidden), s)

    zero_row = jnp.zeros((1, 4 * hidden), jnp.float32)
    return {
        "wih_f": _uniform(ks[0], (in_dim, 4 * hidden), s),
        "whh_f": _uniform(ks[1], (hidden, 4 * hidden), s),
        "b_f": bias(ks[2], ks[3]),
        "wih_b": _uniform(ks[4], (in_dim, 4 * hidden), s),
        "whh_b": _uniform(ks[5], (hidden, 4 * hidden), s),
        "b_b": bias(ks[6], ks[7]),
        "wx_f": _uniform(ks[8], (1, 4 * hidden), s) if with_extra else zero_row,
        "wx_b": _uniform(ks[9], (1, 4 * hidden), s) if with_extra else zero_row,
    }


def init_params(key, embedding_dim, dur_hidden, rng_hidden):
    k0, k1, k2, k3, k4 = jax.random.split(key, 5)
    s_d = 1.0 / math.sqrt(2 * dur_hidden)
    s_r = 1.0 / math.sqrt(2 * rng_hidden)
    return {
        "dur_lstm": init_bilstm(k0, embedding_dim, dur_hidden, with_extra=False),
        "dur_proj_w": _uniform(k1, (1, 2 * dur_hidden), s_d),
        "dur_proj_b": jnp.zeros((1, 1), jnp.float32),          # bias=False
        "rng_lstm": init_bilstm(k2, embedding_dim, rng_hidden, with_extra=True),
        "rng_proj_w": _uniform(k3, (1, 2 * rng_hidden), s_r),
        "rng_proj_b": _uniform(k4, (1, 1), s_r),
    }


# ----------------------------- demo -------------------------------------------

if __name__ == "__main__":
    key = jax.random.PRNGKey(0)
    B, T_ENC, E = 2, 8, 32
    DUR_H, RNG_H = 32, 32

    kp, ke, kd = jax.random.split(key, 3)
    params = init_params(kp, E, DUR_H, RNG_H)
    embeddings = jax.random.normal(ke, (B, T_ENC, E), jnp.float32)
    input_lengths = jnp.array([8, 6], jnp.int32)

    # ground-truth integer per-token durations (0 at padding)
    t_idx = jnp.arange(T_ENC)[None, :]
    raw = 1.0 + jnp.floor(jax.random.uniform(kd, (B, T_ENC)) * 3.0)
    y_durations = jnp.where(t_idx < input_lengths[:, None], raw, 0.0).astype(jnp.float32)

    durations, emb_per_dur = attention_forward(
        params, embeddings, input_lengths, y_durations, use_teacher_forcing=True)

    jax.block_until_ready(durations)
    jax.block_until_ready(emb_per_dur)
    print("KERNEL_OK")
</pallas_src>

<mosaic_0001>
module attributes {stable_mosaic.version = 11 : i64} {
  func.func @_bilstm_proj_kernel(%arg0: i32, %arg1: memref<2x1xi32, #tpu.memory_space<vmem>>, %arg2: memref<16x32xf32, #tpu.memory_space<vmem>>, %arg3: memref<16x1xf32, #tpu.memory_space<vmem>>, %arg4: memref<32x128xf32, #tpu.memory_space<vmem>>, %arg5: memref<1x128xf32, #tpu.memory_space<vmem>>, %arg6: memref<32x128xf32, #tpu.memory_space<vmem>>, %arg7: memref<1x128xf32, #tpu.memory_space<vmem>>, %arg8: memref<32x128xf32, #tpu.memory_space<vmem>>, %arg9: memref<1x128xf32, #tpu.memory_space<vmem>>, %arg10: memref<32x128xf32, #tpu.memory_space<vmem>>, %arg11: memref<1x128xf32, #tpu.memory_space<vmem>>, %arg12: memref<1x64xf32, #tpu.memory_space<vmem>>, %arg13: memref<1x1xf32, #tpu.memory_space<vmem>>, %arg14: memref<16x1xf32, #tpu.memory_space<vmem>>, %arg15: memref<16x128xf32, #tpu.memory_space<vmem>>, %arg16: memref<16x128xf32, #tpu.memory_space<vmem>>, %arg17: memref<2x32xf32, #tpu.memory_space<vmem>>, %arg18: memref<2x32xf32, #tpu.memory_space<vmem>>, %arg19: memref<2x32xf32, #tpu.memory_space<vmem>>, %arg20: memref<2x32xf32, #tpu.memory_space<vmem>>, %arg21: memref<16x2xf32, #tpu.memory_space<vmem>>) attributes {dimension_semantics = [#tpu.dimension_semantics<arbitrary>], iteration_bounds = array<i64: 1>, scalar_prefetch = 0 : i64, scratch_operands = 7 : i64, tpu.core_type = #tpu.core_type<tc>, window_params = [{pipeline_mode = #tpu.pipeline_mode<synchronous>, transform_indices = @transform_0, window_bounds = array<i64: 2, 1>}, {pipeline_mode = #tpu.pipeline_mode<synchronous>, transform_indices = @transform_1, window_bounds = array<i64: 16, 32>}, {pipeline_mode = #tpu.pipeline_mode<synchronous>, transform_indices = @transform_2, window_bounds = array<i64: 16, 1>}, {pipeline_mode = #tpu.pipeline_mode<synchronous>, transform_indices = @transform_3, window_bounds = array<i64: 32, 128>}, {pipeline_mode = #tpu.pipeline_mode<synchronous>, transform_indices = @transform_4, window_bounds = array<i64: 1, 128>}, {pipeline_mode = #tpu.pipeline_mode<synchronous>, transform_indices = @transform_5, window_bounds = array<i64: 32, 128>}, {pipeline_mode = #tpu.pipeline_mode<synchronous>, transform_indices = @transform_6, window_bounds = array<i64: 1, 128>}, {pipeline_mode = #tpu.pipeline_mode<synchronous>, transform_indices = @transform_7, window_bounds = array<i64: 32, 128>}, {pipeline_mode = #tpu.pipeline_mode<synchronous>, transform_indices = @transform_8, window_bounds = array<i64: 1, 128>}, {pipeline_mode = #tpu.pipeline_mode<synchronous>, transform_indices = @transform_9, window_bounds = array<i64: 32, 128>}, {pipeline_mode = #tpu.pipeline_mode<synchronous>, transform_indices = @transform_10, window_bounds = array<i64: 1, 128>}, {pipeline_mode = #tpu.pipeline_mode<synchronous>, transform_indices = @transform_11, window_bounds = array<i64: 1, 64>}, {pipeline_mode = #tpu.pipeline_mode<synchronous>, transform_indices = @transform_12, window_bounds = array<i64: 1, 1>}, {pipeline_mode = #tpu.pipeline_mode<synchronous>, transform_indices = @transform_13, window_bounds = array<i64: 16, 1>}]} {
    %c0 = arith.constant 0 : index
    %c0_0 = arith.constant 0 : index
    %0 = vector.load %arg2[%c0, %c0_0] : memref<16x32xf32, #tpu.memory_space<vmem>>, vector<16x32xf32>
    %c0_1 = arith.constant 0 : index
    %c0_2 = arith.constant 0 : index
    %1 = vector.load %arg3[%c0_1, %c0_2] : memref<16x1xf32, #tpu.memory_space<vmem>>, vector<16x1xf32>
    %c0_3 = arith.constant 0 : index
    %c0_4 = arith.constant 0 : index
    %2 = vector.load %arg4[%c0_3, %c0_4] : memref<32x128xf32, #tpu.memory_space<vmem>>, vector<32x128xf32>
    %cst = arith.constant dense<0.000000e+00> : vector<16x128xf32>
    %3 = tpu.matmul %0, %2, %cst {dimension_numbers = #tpu.dot_dimension_numbers<[1], [0], [0], [1], [0, 0, 1, 1], [], []>} : vector<16x32xf32>, vector<32x128xf32>, vector<16x128xf32> -> vector<16x128xf32>
    %c0_5 = arith.constant 0 : index
    %c0_6 = arith.constant 0 : index
    %4 = vector.load %arg5[%c0_5, %c0_6] : memref<1x128xf32, #tpu.memory_space<vmem>>, vector<1x128xf32>
    %5 = vector.broadcast %1 : vector<16x1xf32> to vector<16x128xf32>
    %6 = vector.broadcast %4 : vector<1x128xf32> to vector<16x128xf32>
    %7 = arith.mulf %5, %6 : vector<16x128xf32>
    %8 = arith.addf %3, %7 : vector<16x128xf32>
    %c0_7 = arith.constant 0 : index
    %c0_8 = arith.constant 0 : index
    %9 = vector.load %arg7[%c0_7, %c0_8] : memref<1x128xf32, #tpu.memory_space<vmem>>, vector<1x128xf32>
    %10 = vector.broadcast %9 : vector<1x128xf32> to vector<16x128xf32>
    %11 = arith.addf %8, %10 : vector<16x128xf32>
    %c0_9 = arith.constant 0 : index
    %c0_10 = arith.constant 0 : index
    %12 = vector.load %arg15[%c0_9, %c0_10] : memref<16x128xf32, #tpu.memory_space<vmem>>, vector<16x128xf32>
    tpu.vector_store %arg15[%c0_9, %c0_10], %11 {strides = array<i32>} : memref<16x128xf32, #tpu.memory_space<vmem>>, vector<16x128xf32>,
    %c0_11 = arith.constant 0 : index
    %c0_12 = arith.constant 0 : index
    %13 = vector.load %arg8[%c0_11, %c0_12] : memref<32x128xf32, #tpu.memory_space<vmem>>, vector<32x128xf32>
    %cst_13 = arith.constant dense<0.000000e+00> : vector<16x128xf32>
    %14 = tpu.matmul %0, %13, %cst_13 {dimension_numbers = #tpu.dot_dimension_numbers<[1], [0], [0], [1], [0, 0, 1, 1], [], []>} : vector<16x32xf32>, vector<32x128xf32>, vector<16x128xf32> -> vector<16x128xf32>
    %c0_14 = arith.constant 0 : index
    %c0_15 = arith.constant 0 : index
    %15 = vector.load %arg9[%c0_14, %c0_15] : memref<1x128xf32, #tpu.memory_space<vmem>>, vector<1x128xf32>
    %16 = vector.broadcast %1 : vector<16x1xf32> to vector<16x128xf32>
    %17 = vector.broadcast %15 : vector<1x128xf32> to vector<16x128xf32>
    %18 = arith.mulf %16, %17 : vector<16x128xf32>
    %19 = arith.addf %14, %18 : vector<16x128xf32>
    %c0_16 = arith.constant 0 : index
    %c0_17 = arith.constant 0 : index
    %20 = vector.load %arg11[%c0_16, %c0_17] : memref<1x128xf32, #tpu.memory_space<vmem>>, vector<1x128xf32>
    %21 = vector.broadcast %20 : vector<1x128xf32> to vector<16x128xf32>
    %22 = arith.addf %19, %21 : vector<16x128xf32>
    %c0_18 = arith.constant 0 : index
    %c0_19 = arith.constant 0 : index
    %23 = vector.load %arg16[%c0_18, %c0_19] : memref<16x128xf32, #tpu.memory_space<vmem>>, vector<16x128xf32>
    tpu.vector_store %arg16[%c0_18, %c0_19], %22 {strides = array<i32>} : memref<16x128xf32, #tpu.memory_space<vmem>>, vector<16x128xf32>,
    %cst_20 = arith.constant 0.000000e+00 : f32
    %24 = vector.broadcast %cst_20 : f32 to vector<2x32xf32>
    %c0_21 = arith.constant 0 : index
    %c0_22 = arith.constant 0 : index
    %25 = vector.load %arg17[%c0_21, %c0_22] : memref<2x32xf32, #tpu.memory_space<vmem>>, vector<2x32xf32>
    tpu.vector_store %arg17[%c0_21, %c0_22], %24 {strides = array<i32>} : memref<2x32xf32, #tpu.memory_space<vmem>>, vector<2x32xf32>,
    %cst_23 = arith.constant 0.000000e+00 : f32
    %26 = vector.broadcast %cst_23 : f32 to vector<2x32xf32>
    %c0_24 = arith.constant 0 : index
    %c0_25 = arith.constant 0 : index
    %27 = vector.load %arg18[%c0_24, %c0_25] : memref<2x32xf32, #tpu.memory_space<vmem>>, vector<2x32xf32>
    tpu.vector_store %arg18[%c0_24, %c0_25], %26 {strides = array<i32>} : memref<2x32xf32, #tpu.memory_space<vmem>>, vector<2x32xf32>,
    %cst_26 = arith.constant 0.000000e+00 : f32
    %28 = vector.broadcast %cst_26 : f32 to vector<2x32xf32>
    %c0_27 = arith.constant 0 : index
    %c0_28 = arith.constant 0 : index
    %29 = vector.load %arg19[%c0_27, %c0_28] : memref<2x32xf32, #tpu.memory_space<vmem>>, vector<2x32xf32>
    tpu.vector_store %arg19[%c0_27, %c0_28], %28 {strides = array<i32>} : memref<2x32xf32, #tpu.memory_space<vmem>>, vector<2x32xf32>,
    %cst_29 = arith.constant 0.000000e+00 : f32
    %30 = vector.broadcast %cst_29 : f32 to vector<2x32xf32>
    %c0_30 = arith.constant 0 : index
    %c0_31 = arith.constant 0 : index
    %31 = vector.load %arg20[%c0_30, %c0_31] : memref<2x32xf32, #tpu.memory_space<vmem>>, vector<2x32xf32>
    tpu.vector_store %arg20[%c0_30, %c0_31], %30 {strides = array<i32>} : memref<2x32xf32, #tpu.memory_space<vmem>>, vector<2x32xf32>,
    %c0_32 = arith.constant 0 : index
    %c0_33 = arith.constant 0 : index
    %32 = vector.load %arg6[%c0_32, %c0_33] : memref<32x128xf32, #tpu.memory_space<vmem>>, vector<32x128xf32>
    %c0_34 = arith.constant 0 : index
    %c0_35 = arith.constant 0 : index
    %33 = vector.load %arg10[%c0_34, %c0_35] : memref<32x128xf32, #tpu.memory_space<vmem>>, vector<32x128xf32>
    %c0_36 = arith.constant 0 : index
    %c0_37 = arith.constant 0 : index
    %34 = vector.load %arg1[%c0_36, %c0_37] : memref<2x1xi32, #tpu.memory_space<vmem>>, vector<2x1xi32>
    %c0_38 = arith.constant 0 : index
    %c0_39 = arith.constant 0 : index
    %35 = vector.load %arg12[%c0_38, %c0_39] : memref<1x64xf32, #tpu.memory_space<vmem>>, vector<1x64xf32>
    %36 = vector.extract_strided_slice %35 {offsets = [0, 0], sizes = [1, 32], strides = [1, 1]} : vector<1x64xf32> to vector<1x32xf32>
    %37 = vector.extract_strided_slice %35 {offsets = [0, 32], sizes = [1, 32], strides = [1, 1]} : vector<1x64xf32> to vector<1x32xf32>
    %c0_i32 = arith.constant 0 : i32
    %c2_i32 = arith.constant 2 : i32
    %38 = arith.muli %c0_i32, %c2_i32 : i32
    %39 = vector.broadcast %c0_i32 : i32 to vector<2x1xi32>
    %40 = arith.cmpi slt, %39, %34 : vector<2x1xi32>
    %41 = arith.index_cast %38 : i32 to index
    %c0_40 = arith.constant 0 : index
    %42 = vector.load %arg15[%41, %c0_40] : memref<16x128xf32, #tpu.memory_space<vmem>>, vector<2x128xf32>
    %c0_41 = arith.constant 0 : index
    %c0_42 = arith.constant 0 : index
    %43 = vector.load %arg17[%c0_41, %c0_42] : memref<2x32xf32, #tpu.memory_space<vmem>>, vector<2x32xf32>
    %c0_43 = arith.constant 0 : index
    %c0_44 = arith.constant 0 : index
    %44 = vector.load %arg18[%c0_43, %c0_44] : memref<2x32xf32, #tpu.memory_space<vmem>>, vector<2x32xf32>
    %cst_45 = arith.constant dense<0.000000e+00> : vector<2x128xf32>
    %45 = tpu.matmul %43, %32, %cst_45 {dimension_numbers = #tpu.dot_dimension_numbers<[1], [0], [0], [1], [0, 0, 1, 1], [], []>} : vector<2x32xf32>, vector<32x128xf32>, vector<2x128xf32> -> vector<2x128xf32>
    %46 = arith.addf %42, %45 : vector<2x128xf32>
    %47 = vector.extract_strided_slice %46 {offsets = [0, 0], sizes = [2, 32], strides = [1, 1]} : vector<2x128xf32> to vector<2x32xf32>
    %cst_46 = arith.constant 0.000000e+00 : f32
    %48 = vector.broadcast %cst_46 : f32 to vector<2x32xf32>
    %49 = arith.subf %48, %47 : vector<2x32xf32>
    %50 = math.exp %49 : vector<2x32xf32>
    %cst_47 = arith.constant 1.000000e+00 : f32
    %51 = vector.broadcast %cst_47 : f32 to vector<2x32xf32>
    %52 = arith.addf %51, %50 : vector<2x32xf32>
    %cst_48 = arith.constant 1.000000e+00 : f32
    %53 = vector.broadcast %cst_48 : f32 to vector<2x32xf32>
    %54 = arith.divf %53, %52 : vector<2x32xf32>
    %55 = vector.extract_strided_slice %46 {offsets = [0, 32], sizes = [2, 32], strides = [1, 1]} : vector<2x128xf32> to vector<2x32xf32>
    %cst_49 = arith.constant 0.000000e+00 : f32
    %56 = vector.broadcast %cst_49 : f32 to vector<2x32xf32>
    %57 = arith.subf %56, %55 : vector<2x32xf32>
    %58 = math.exp %57 : vector<2x32xf32>
    %cst_50 = arith.constant 1.000000e+00 : f32
    %59 = vector.broadcast %cst_50 : f32 to vector<2x32xf32>
    %60 = arith.addf %59, %58 : vector<2x32xf32>
    %cst_51 = arith.constant 1.000000e+00 : f32
    %61 = vector.broadcast %cst_51 : f32 to vector<2x32xf32>
    %62 = arith.divf %61, %60 : vector<2x32xf32>
    %63 = vector.extract_strided_slice %46 {offsets = [0, 64], sizes = [2, 32], strides = [1, 1]} : vector<2x128xf32> to vector<2x32xf32>
    %64 = math.tanh %63 : vector<2x32xf32>
    %65 = vector.extract_strided_slice %46 {offsets = [0, 96], sizes = [2, 32], strides = [1, 1]} : vector<2x128xf32> to vector<2x32xf32>
    %cst_52 = arith.constant 0.000000e+00 : f32
    %66 = vector.broadcast %cst_52 : f32 to vector<2x32xf32>
    %67 = arith.subf %66, %65 : vector<2x32xf32>
    %68 = math.exp %67 : vector<2x32xf32>
    %cst_53 = arith.constant 1.000000e+00 : f32
    %69 = vector.broadcast %cst_53 : f32 to vector<2x32xf32>
    %70 = arith.addf %69, %68 : vector<2x32xf32>
    %cst_54 = arith.constant 1.000000e+00 : f32
    %71 = vector.broadcast %cst_54 : f32 to vector<2x32xf32>
    %72 = arith.divf %71, %70 : vector<2x32xf32>
    %73 = arith.mulf %62, %44 : vector<2x32xf32>
    %74 = arith.mulf %54, %64 : vector<2x32xf32>
    %75 = arith.addf %73, %74 : vector<2x32xf32>
    %76 = math.tanh %75 : vector<2x32xf32>
    %77 = arith.mulf %72, %76 : vector<2x32xf32>
    %cst_55 = arith.constant 0.000000e+00 : f32
    %78 = vector.shape_cast %40 : vector<2x1xi1> to vector<2x1xi1>
    %79 = vector.broadcast %78 : vector<2x1xi1> to vector<2x32xi1>
    %80 = vector.broadcast %cst_55 : f32 to vector<2x32xf32>
    %81 = arith.select %79, %77, %80 : vector<2x32xi1>, vector<2x32xf32>
    %c0_56 = arith.constant 0 : index
    %c0_57 = arith.constant 0 : index
    %82 = vector.load %arg17[%c0_56, %c0_57] : memref<2x32xf32, #tpu.memory_space<vmem>>, vector<2x32xf32>
    %83 = vector.shape_cast %40 : vector<2x1xi1> to vector<2x1xi1>
    %84 = vector.broadcast %83 : vector<2x1xi1> to vector<2x32xi1>
    %85 = arith.select %84, %77, %82 : vector<2x32xi1>, vector<2x32xf32>
    %c0_58 = arith.constant 0 : index
    %c0_59 = arith.constant 0 : index
    %86 = vector.load %arg17[%c0_58, %c0_59] : memref<2x32xf32, #tpu.memory_space<vmem>>, vector<2x32xf32>
    tpu.vector_store %arg17[%c0_58, %c0_59], %85 {strides = array<i32>} : memref<2x32xf32, #tpu.memory_space<vmem>>, vector<2x32xf32>,
    %c0_60 = arith.constant 0 : index
    %c0_61 = arith.constant 0 : index
    %87 = vector.load %arg18[%c0_60, %c0_61] : memref<2x32xf32, #tpu.memory_space<vmem>>, vector<2x32xf32>
    %88 = vector.shape_cast %40 : vector<2x1xi1> to vector<2x1xi1>
    %89 = vector.broadcast %88 : vector<2x1xi1> to vector<2x32xi1>
    %90 = arith.select %89, %75, %87 : vector<2x32xi1>, vector<2x32xf32>
    %c0_62 = arith.constant 0 : index
    %c0_63 = arith.constant 0 : index
    %91 = vector.load %arg18[%c0_62, %c0_63] : memref<2x32xf32, #tpu.memory_space<vmem>>, vector<2x32xf32>
    tpu.vector_store %arg18[%c0_62, %c0_63], %90 {strides = array<i32>} : memref<2x32xf32, #tpu.memory_space<vmem>>, vector<2x32xf32>,
    %92 = vector.broadcast %36 : vector<1x32xf32> to vector<2x32xf32>
    %93 = arith.mulf %81, %92 : vector<2x32xf32>
    %cst_64 = arith.constant dense<0.000000e+00> : vector<2xf32>
    %94 = vector.multi_reduction <add>, %93, %cst_64 [1] : vector<2x32xf32> to vector<2xf32>
    %95 = vector.shape_cast %94 : vector<2xf32> to vector<2x1xf32>
    %96 = arith.index_cast %38 : i32 to index
    %c0_65 = arith.constant 0 : index
    %97 = vector.load %arg21[%96, %c0_65] : memref<16x2xf32, #tpu.memory_space<vmem>>, vector<2x1xf32>
    tpu.vector_store %arg21[%96, %c0_65], %95 {strides = array<i32>} : memref<16x2xf32, #tpu.memory_space<vmem>>, vector<2x1xf32>,
    %c7_i32 = arith.constant 7 : i32
    %98 = arith.subi %c7_i32, %c0_i32 : i32
    %c2_i32_66 = arith.constant 2 : i32
    %99 = arith.muli %98, %c2_i32_66 : i32
    %100 = vector.broadcast %98 : i32 to vector<2x1xi32>
    %101 = arith.cmpi slt, %100, %34 : vector<2x1xi32>
    %102 = arith.index_cast %99 : i32 to index
    %c0_67 = arith.constant 0 : index
    %103 = vector.load %arg16[%102, %c0_67] : memref<16x128xf32, #tpu.memory_space<vmem>>, vector<2x128xf32>
    %c0_68 = arith.constant 0 : index
    %c0_69 = arith.constant 0 : index
    %104 = vector.load %arg19[%c0_68, %c0_69] : memref<2x32xf32, #tpu.memory_space<vmem>>, vector<2x32xf32>
    %c0_70 = arith.constant 0 : index
    %c0_71 = arith.constant 0 : index
    %105 = vector.load %arg20[%c0_70, %c0_71] : memref<2x32xf32, #tpu.memory_space<vmem>>, vector<2x32xf32>
    %cst_72 = arith.constant dense<0.000000e+00> : vector<2x128xf32>
    %106 = tpu.matmul %104, %33, %cst_72 {dimension_numbers = #tpu.dot_dimension_numbers<[1], [0], [0], [1], [0, 0, 1, 1], [], []>} : vector<2x32xf32>, vector<32x128xf32>, vector<2x128xf32> -> vector<2x128xf32>
    %107 = arith.addf %103, %106 : vector<2x128xf32>
    %108 = vector.extract_strided_slice %107 {offsets = [0, 0], sizes = [2, 32], strides = [1, 1]} : vector<2x128xf32> to vector<2x32xf32>
    %cst_73 = arith.constant 0.000000e+00 : f32
    %109 = vector.broadcast %cst_73 : f32 to vector<2x32xf32>
    %110 = arith.subf %109, %108 : vector<2x32xf32>
    %111 = math.exp %110 : vector<2x32xf32>
    %cst_74 = arith.constant 1.000000e+00 : f32
    %112 = vector.broadcast %cst_74 : f32 to vector<2x32xf32>
    %113 = arith.addf %112, %111 : vector<2x32xf32>
    %cst_75 = arith.constant 1.000000e+00 : f32
    %114 = vector.broadcast %cst_75 : f32 to vector<2x32xf32>
    %115 = arith.divf %114, %113 : vector<2x32xf32>
    %116 = vector.extract_strided_slice %107 {offsets = [0, 32], sizes = [2, 32], strides = [1, 1]} : vector<2x128xf32> to vector<2x32xf32>
    %cst_76 = arith.constant 0.000000e+00 : f32
    %117 = vector.broadcast %cst_76 : f32 to vector<2x32xf32>
    %118 = arith.subf %117, %116 : vector<2x32xf32>
    %119 = math.exp %118 : vector<2x32xf32>
    %cst_77 = arith.constant 1.000000e+00 : f32
    %120 = vector.broadcast %cst_77 : f32 to vector<2x32xf32>
    %121 = arith.addf %120, %119 : vector<2x32xf32>
    %cst_78 = arith.constant 1.000000e+00 : f32
    %122 = vector.broadcast %cst_78 : f32 to vector<2x32xf32>
    %123 = arith.divf %122, %121 : vector<2x32xf32>
    %124 = vector.extract_strided_slice %107 {offsets = [0, 64], sizes = [2, 32], strides = [1, 1]} : vector<2x128xf32> to vector<2x32xf32>
    %125 = math.tanh %124 : vector<2x32xf32>
    %126 = vector.extract_strided_slice %107 {offsets = [0, 96], sizes = [2, 32], strides = [1, 1]} : vector<2x128xf32> to vector<2x32xf32>
    %cst_79 = arith.constant 0.000000e+00 : f32
    %127 = vector.broadcast %cst_79 : f32 to vector<2x32xf32>
    %128 = arith.subf %127, %126 : vector<2x32xf32>
    %129 = math.exp %128 : vector<2x32xf32>
    %cst_80 = arith.constant 1.000000e+00 : f32
    %130 = vector.broadcast %cst_80 : f32 to vector<2x32xf32>
    %131 = arith.addf %130, %129 : vector<2x32xf32>
    %cst_81 = arith.constant 1.000000e+00 : f32
    %132 = vector.broadcast %cst_81 : f32 to vector<2x32xf32>
    %133 = arith.divf %132, %131 : vector<2x32xf32>
    %134 = arith.mulf %123, %105 : vector<2x32xf32>
    %135 = arith.mulf %115, %125 : vector<2x32xf32>
    %136 = arith.addf %134, %135 : vector<2x32xf32>
    %137 = math.tanh %136 : vector<2x32xf32>
    %138 = arith.mulf %133, %137 : vector<2x32xf32>
    %cst_82 = arith.constant 0.000000e+00 : f32
    %139 = vector.shape_cast %101 : vector<2x1xi1> to vector<2x1xi1>
    %140 = vector.broadcast %139 : vector<2x1xi1> to vector<2x32xi1>
    %141 = vector.broadcast %cst_82 : f32 to vector<2x32xf32>
    %142 = arith.select %140, %138, %141 : vector<2x32xi1>, vector<2x32xf32>
    %c0_83 = arith.constant 0 : index
    %c0_84 = arith.constant 0 : index
    %143 = vector.load %arg19[%c0_83, %c0_84] : memref<2x32xf32, #tpu.memory_space<vmem>>, vector<2x32xf32>
    %144 = vector.shape_cast %101 : vector<2x1xi1> to vector<2x1xi1>
    %145 = vector.broadcast %144 : vector<2x1xi1> to vector<2x32xi1>
    %146 = arith.select %145, %138, %143 : vector<2x32xi1>, vector<2x32xf32>
    %c0_85 = arith.constant 0 : index
    %c0_86 = arith.constant 0 : index
    %147 = vector.load %arg19[%c0_85, %c0_86] : memref<2x32xf32, #tpu.memory_space<vmem>>, vector<2x32xf32>
    tpu.vector_store %arg19[%c0_85, %c0_86], %146 {strides = array<i32>} : memref<2x32xf32, #tpu.memory_space<vmem>>, vector<2x32xf32>,
    %c0_87 = arith.constant 0 : index
    %c0_88 = arith.constant 0 : index
    %148 = vector.load %arg20[%c0_87, %c0_88] : memref<2x32xf32, #tpu.memory_space<vmem>>, vector<2x32xf32>
    %149 = vector.shape_cast %101 : vector<2x1xi1> to vector<2x1xi1>
    %150 = vector.broadcast %149 : vector<2x1xi1> to vector<2x32xi1>
    %151 = arith.select %150, %136, %148 : vector<2x32xi1>, vector<2x32xf32>
    %c0_89 = arith.constant 0 : index
    %c0_90 = arith.constant 0 : index
    %152 = vector.load %arg20[%c0_89, %c0_90] : memref<2x32xf32, #tpu.memory_space<vmem>>, vector<2x32xf32>
    tpu.vector_store %arg20[%c0_89, %c0_90], %151 {strides = array<i32>} : memref<2x32xf32, #tpu.memory_space<vmem>>, vector<2x32xf32>,
    %153 = vector.broadcast %37 : vector<1x32xf32> to vector<2x32xf32>
    %154 = arith.mulf %142, %153 : vector<2x32xf32>
    %cst_91 = arith.constant dense<0.000000e+00> : vector<2xf32>
    %155 = vector.multi_reduction <add>, %154, %cst_91 [1] : vector<2x32xf32> to vector<2xf32>
    %156 = vector.shape_cast %155 : vector<2xf32> to vector<2x1xf32>
    %157 = arith.index_cast %99 : i32 to index
    %c1 = arith.constant 1 : index
    %158 = vector.load %arg21[%157, %c1] : memref<16x2xf32, #tpu.memory_space<vmem>>, vector<2x1xf32>
    tpu.vector_store %arg21[%157, %c1], %156 {strides = array<i32>} : memref<16x2xf32, #tpu.memory_space<vmem>>, vector<2x1xf32>,
    %c1_i32 = arith.constant 1 : i32
    %c2_i32_92 = arith.constant 2 : i32
    %159 = arith.muli %c1_i32, %c2_i32_92 : i32
    %160 = vector.broadcast %c1_i32 : i32 to vector<2x1xi32>
    %161 = arith.cmpi slt, %160, %34 : vector<2x1xi32>
    %162 = arith.index_cast %159 : i32 to index
    %c0_93 = arith.constant 0 : index
    %163 = vector.load %arg15[%162, %c0_93] : memref<16x128xf32, #tpu.memory_space<vmem>>, vector<2x128xf32>
    %c0_94 = arith.constant 0 : index
    %c0_95 = arith.constant 0 : index
    %164 = vector.load %arg17[%c0_94, %c0_95] : memref<2x32xf32, #tpu.memory_space<vmem>>, vector<2x32xf32>
    %c0_96 = arith.constant 0 : index
    %c0_97 = arith.constant 0 : index
    %165 = vector.load %arg18[%c0_96, %c0_97] : memref<2x32xf32, #tpu.memory_space<vmem>>, vector<2x32xf32>
    %cst_98 = arith.constant dense<0.000000e+00> : vector<2x128xf32>
    %166 = tpu.matmul %164, %32, %cst_98 {dimension_numbers = #tpu.dot_dimension_numbers<[1], [0], [0], [1], [0, 0, 1, 1], [], []>} : vector<2x32xf32>, vector<32x128xf32>, vector<2x128xf32> -> vector<2x128xf32>
    %167 = arith.addf %163, %166 : vector<2x128xf32>
    %168 = vector.extract_strided_slice %167 {offsets = [0, 0], sizes = [2, 32], strides = [1, 1]} : vector<2x128xf32> to vector<2x32xf32>
    %cst_99 = arith.constant 0.000000e+00 : f32
    %169 = vector.broadcast %cst_99 : f32 to vector<2x32xf32>
    %170 = arith.subf %169, %168 : vector<2x32xf32>
    %171 = math.exp %170 : vector<2x32xf32>
    %cst_100 = arith.constant 1.000000e+00 : f32
    %172 = vector.broadcast %cst_100 : f32 to vector<2x32xf32>
    %173 = arith.addf %172, %171 : vector<2x32xf32>
    %cst_101 = arith.constant 1.000000e+00 : f32
    %174 = vector.broadcast %cst_101 : f32 to vector<2x32xf32>
    %175 = arith.divf %174, %173 : vector<2x32xf32>
    %176 = vector.extract_strided_slice %167 {offsets = [0, 32], sizes = [2, 32], strides = [1, 1]} : vector<2x128xf32> to vector<2x32xf32>
    %cst_102 = arith.constant 0.000000e+00 : f32
    %177 = vector.broadcast %cst_102 : f32 to vector<2x32xf32>
    %178 = arith.subf %177, %176 : vector<2x32xf32>
    %179 = math.exp %178 : vector<2x32xf32>
    %cst_103 = arith.constant 1.000000e+00 : f32
    %180 = vector.broadcast %cst_103 : f32 to vector<2x32xf32>
    %181 = arith.addf %180, %179 : vector<2x32xf32>
    %cst_104 = arith.constant 1.000000e+00 : f32
    %182 = vector.broadcast %cst_104 : f32 to vector<2x32xf32>
    %183 = arith.divf %182, %181 : vector<2x32xf32>
    %184 = vector.extract_strided_slice %167 {offsets = [0, 64], sizes = [2, 32], strides = [1, 1]} : vector<2x128xf32> to vector<2x32xf32>
    %185 = math.tanh %184 : vector<2x32xf32>
    %186 = vector.extract_strided_slice %167 {offsets = [0, 96], sizes = [2, 32], strides = [1, 1]} : vector<2x128xf32> to vector<2x32xf32>
    %cst_105 = arith.constant 0.000000e+00 : f32
    %187 = vector.broadcast %cst_105 : f32 to vector<2x32xf32>
    %188 = arith.subf %187, %186 : vector<2x32xf32>
    %189 = math.exp %188 : vector<2x32xf32>
    %cst_106 = arith.constant 1.000000e+00 : f32
    %190 = vector.broadcast %cst_106 : f32 to vector<2x32xf32>
    %191 = arith.addf %190, %189 : vector<2x32xf32>
    %cst_107 = arith.constant 1.000000e+00 : f32
    %192 = vector.broadcast %cst_107 : f32 to vector<2x32xf32>
    %193 = arith.divf %192, %191 : vector<2x32xf32>
    %194 = arith.mulf %183, %165 : vector<2x32xf32>
    %195 = arith.mulf %175, %185 : vector<2x32xf32>
    %196 = arith.addf %194, %195 : vector<2x32xf32>
    %197 = math.tanh %196 : vector<2x32xf32>
    %198 = arith.mulf %193, %197 : vector<2x32xf32>
    %cst_108 = arith.constant 0.000000e+00 : f32
    %199 = vector.shape_cast %161 : vector<2x1xi1> to vector<2x1xi1>
    %200 = vector.broadcast %199 : vector<2x1xi1> to vector<2x32xi1>
    %201 = vector.broadcast %cst_108 : f32 to vector<2x32xf32>
    %202 = arith.select %200, %198, %201 : vector<2x32xi1>, vector<2x32xf32>
    %c0_109 = arith.constant 0 : index
    %c0_110 = arith.constant 0 : index
    %203 = vector.load %arg17[%c0_109, %c0_110] : memref<2x32xf32, #tpu.memory_space<vmem>>, vector<2x32xf32>
    %204 = vector.shape_cast %161 : vector<2x1xi1> to vector<2x1xi1>
    %205 = vector.broadcast %204 : vector<2x1xi1> to vector<2x32xi1>
    %206 = arith.select %205, %198, %203 : vector<2x32xi1>, vector<2x32xf32>
    %c0_111 = arith.constant 0 : index
    %c0_112 = arith.constant 0 : index
    %207 = vector.load %arg17[%c0_111, %c0_112] : memref<2x32xf32, #tpu.memory_space<vmem>>, vector<2x32xf32>
    tpu.vector_store %arg17[%c0_111, %c0_112], %206 {strides = array<i32>} : memref<2x32xf32, #tpu.memory_space<vmem>>, vector<2x32xf32>,
    %c0_113 = arith.constant 0 : index
    %c0_114 = arith.constant 0 : index
    %208 = vector.load %arg18[%c0_113, %c0_114] : memref<2x32xf32, #tpu.memory_space<vmem>>, vector<2x32xf32>
    %209 = vector.shape_cast %161 : vector<2x1xi1> to vector<2x1xi1>
    %210 = vector.broadcast %209 : vector<2x1xi1> to vector<2x32xi1>
    %211 = arith.select %210, %196, %208 : vector<2x32xi1>, vector<2x32xf32>
    %c0_115 = arith.constant 0 : index
    %c0_116 = arith.constant 0 : index
    %212 = vector.load %arg18[%c0_115, %c0_116] : memref<2x32xf32, #tpu.memory_space<vmem>>, vector<2x32xf32>
    tpu.vector_store %arg18[%c0_115, %c0_116], %211 {strides = array<i32>} : memref<2x32xf32, #tpu.memory_space<vmem>>, vector<2x32xf32>,
    %213 = vector.broadcast %36 : vector<1x32xf32> to vector<2x32xf32>
    %214 = arith.mulf %202, %213 : vector<2x32xf32>
    %cst_117 = arith.constant dense<0.000000e+00> : vector<2xf32>
    %215 = vector.multi_reduction <add>, %214, %cst_117 [1] : vector<2x32xf32> to vector<2xf32>
    %216 = vector.shape_cast %215 : vector<2xf32> to vector<2x1xf32>
    %217 = arith.index_cast %159 : i32 to index
    %c0_118 = arith.constant 0 : index
    %218 = vector.load %arg21[%217, %c0_118] : memref<16x2xf32, #tpu.memory_space<vmem>>, vector<2x1xf32>
    tpu.vector_store %arg21[%217, %c0_118], %216 {strides = array<i32>} : memref<16x2xf32, #tpu.memory_space<vmem>>, vector<2x1xf32>,
    %c7_i32_119 = arith.constant 7 : i32
    %219 = arith.subi %c7_i32_119, %c1_i32 : i32
    %c2_i32_120 = arith.constant 2 : i32
    %220 = arith.muli %219, %c2_i32_120 : i32
    %221 = vector.broadcast %219 : i32 to vector<2x1xi32>
    %222 = arith.cmpi slt, %221, %34 : vector<2x1xi32>
    %223 = arith.index_cast %220 : i32 to index
    %c0_121 = arith.constant 0 : index
    %224 = vector.load %arg16[%223, %c0_121] : memref<16x128xf32, #tpu.memory_space<vmem>>, vector<2x128xf32>
    %c0_122 = arith.constant 0 : index
    %c0_123 = arith.constant 0 : index
    %225 = vector.load %arg19[%c0_122, %c0_123] : memref<2x32xf32, #tpu.memory_space<vmem>>, vector<2x32xf32>
    %c0_124 = arith.constant 0 : index
    %c0_125 = arith.constant 0 : index
    %226 = vector.load %arg20[%c0_124, %c0_125] : memref<2x32xf32, #tpu.memory_space<vmem>>, vector<2x32xf32>
    %cst_126 = arith.constant dense<0.000000e+00> : vector<2x128xf32>
    %227 = tpu.matmul %225, %33, %cst_126 {dimension_numbers = #tpu.dot_dimension_numbers<[1], [0], [0], [1], [0, 0, 1, 1], [], []>} : vector<2x32xf32>, vector<32x128xf32>, vector<2x128xf32> -> vector<2x128xf32>
    %228 = arith.addf %224, %227 : vector<2x128xf32>
    %229 = vector.extract_strided_slice %228 {offsets = [0, 0], sizes = [2, 32], strides = [1, 1]} : vector<2x128xf32> to vector<2x32xf32>
    %cst_127 = arith.constant 0.000000e+00 : f32
    %230 = vector.broadcast %cst_127 : f32 to vector<2x32xf32>
    %231 = arith.subf %230, %229 : vector<2x32xf32>
    %232 = math.exp %231 : vector<2x32xf32>
    %cst_128 = arith.constant 1.000000e+00 : f32
    %233 = vector.broadcast %cst_128 : f32 to vector<2x32xf32>
    %234 = arith.addf %233, %232 : vector<2x32xf32>
    %cst_129 = arith.constant 1.000000e+00 : f32
    %235 = vector.broadcast %cst_129 : f32 to vector<2x32xf32>
    %236 = arith.divf %235, %234 : vector<2x32xf32>
    %237 = vector.extract_strided_slice %228 {offsets = [0, 32], sizes = [2, 32], strides = [1, 1]} : vector<2x128xf32> to vector<2x32xf32>
    %cst_130 = arith.constant 0.000000e+00 : f32
    %238 = vector.broadcast %cst_130 : f32 to vector<2x32xf32>
    %239 = arith.subf %238, %237 : vector<2x32xf32>
    %240 = math.exp %239 : vector<2x32xf32>
    %cst_131 = arith.constant 1.000000e+00 : f32
    %241 = vector.broadcast %cst_131 : f32 to vector<2x32xf32>
    %242 = arith.addf %241, %240 : vector<2x32xf32>
    %cst_132 = arith.constant 1.000000e+00 : f32
    %243 = vector.broadcast %cst_132 : f32 to vector<2x32xf32>
    %244 = arith.divf %243, %242 : vector<2x32xf32>
    %245 = vector.extract_strided_slice %228 {offsets = [0, 64], sizes = [2, 32], strides = [1, 1]} : vector<2x128xf32> to vector<2x32xf32>
    %246 = math.tanh %245 : vector<2x32xf32>
    %247 = vector.extract_strided_slice %228 {offsets = [0, 96], sizes = [2, 32], strides = [1, 1]} : vector<2x128xf32> to vector<2x32xf32>
    %cst_133 = arith.constant 0.000000e+00 : f32
    %248 = vector.broadcast %cst_133 : f32 to vector<2x32xf32>
    %249 = arith.subf %248, %247 : vector<2x32xf32>
    %250 = math.exp %249 : vector<2x32xf32>
    %cst_134 = arith.constant 1.000000e+00 : f32
    %251 = vector.broadcast %cst_134 : f32 to vector<2x32xf32>
    %252 = arith.addf %251, %250 : vector<2x32xf32>
    %cst_135 = arith.constant 1.000000e+00 : f32
    %253 = vector.broadcast %cst_135 : f32 to vector<2x32xf32>
    %254 = arith.divf %253, %252 : vector<2x32xf32>
    %255 = arith.mulf %244, %226 : vector<2x32xf32>
    %256 = arith.mulf %236, %246 : vector<2x32xf32>
    %257 = arith.addf %255, %256 : vector<2x32xf32>
    %258 = math.tanh %257 : vector<2x32xf32>
    %259 = arith.mulf %254, %258 : vector<2x32xf32>
    %cst_136 = arith.constant 0.000000e+00 : f32
    %260 = vector.shape_cast %222 : vector<2x1xi1> to vector<2x1xi1>
    %261 = vector.broadcast %260 : vector<2x1xi1> to vector<2x32xi1>
    %262 = vector.broadcast %cst_136 : f32 to vector<2x32xf32>
    %263 = arith.select %261, %259, %262 : vector<2x32xi1>, vector<2x32xf32>
    %c0_137 = arith.constant 0 : index
    %c0_138 = arith.constant 0 : index
    %264 = vector.load %arg19[%c0_137, %c0_138] : memref<2x32xf32, #tpu.memory_space<vmem>>, vector<2x32xf32>
    %265 = vector.shape_cast %222 : vector<2x1xi1> to vector<2x1xi1>
    %266 = vector.broadcast %265 : vector<2x1xi1> to vector<2x32xi1>
    %267 = arith.select %266, %259, %264 : vector<2x32xi1>, vector<2x32xf32>
    %c0_139 = arith.constant 0 : index
    %c0_140 = arith.constant 0 : index
    %268 = vector.load %arg19[%c0_139, %c0_140] : memref<2x32xf32, #tpu.memory_space<vmem>>, vector<2x32xf32>
    tpu.vector_store %arg19[%c0_139, %c0_140], %267 {strides = array<i32>} : memref<2x32xf32, #tpu.memory_space<vmem>>, vector<2x32xf32>,
    %c0_141 = arith.constant 0 : index
    %c0_142 = arith.constant 0 : index
    %269 = vector.load %arg20[%c0_141, %c0_142] : memref<2x32xf32, #tpu.memory_space<vmem>>, vector<2x32xf32>
    %270 = vector.shape_cast %222 : vector<2x1xi1> to vector<2x1xi1>
    %271 = vector.broadcast %270 : vector<2x1xi1> to vector<2x32xi1>
    %272 = arith.select %271, %257, %269 : vector<2x32xi1>, vector<2x32xf32>
    %c0_143 = arith.constant 0 : index
    %c0_144 = arith.constant 0 : index
    %273 = vector.load %arg20[%c0_143, %c0_144] : memref<2x32xf32, #tpu.memory_space<vmem>>, vector<2x32xf32>
    tpu.vector_store %arg20[%c0_143, %c0_144], %272 {strides = array<i32>} : memref<2x32xf32, #tpu.memory_space<vmem>>, vector<2x32xf32>,
    %274 = vector.broadcast %37 : vector<1x32xf32> to vector<2x32xf32>
    %275 = arith.mulf %263, %274 : vector<2x32xf32>
    %cst_145 = arith.constant dense<0.000000e+00> : vector<2xf32>
    %276 = vector.multi_reduction <add>, %275, %cst_145 [1] : vector<2x32xf32> to vector<2xf32>
    %277 = vector.shape_cast %276 : vector<2xf32> to vector<2x1xf32>
    %278 = arith.index_cast %220 : i32 to index
    %c1_146 = arith.constant 1 : index
    %279 = vector.load %arg21[%278, %c1_146] : memref<16x2xf32, #tpu.memory_space<vmem>>, vector<2x1xf32>
    tpu.vector_store %arg21[%278, %c1_146], %277 {strides = array<i32>} : memref<16x2xf32, #tpu.memory_space<vmem>>, vector<2x1xf32>,
    %c2_i32_147 = arith.constant 2 : i32
    %c2_i32_148 = arith.constant 2 : i32
    %280 = arith.muli %c2_i32_147, %c2_i32_148 : i32
    %281 = vector.broadcast %c2_i32_147 : i32 to vector<2x1xi32>
    %282 = arith.cmpi slt, %281, %34 : vector<2x1xi32>
    %283 = arith.index_cast %280 : i32 to index
    %c0_149 = arith.constant 0 : index
    %284 = vector.load %arg15[%283, %c0_149] : memref<16x128xf32, #tpu.memory_space<vmem>>, vector<2x128xf32>
    %c0_150 = arith.constant 0 : index
    %c0_151 = arith.constant 0 : index
    %285 = vector.load %arg17[%c0_150, %c0_151] : memref<2x32xf32, #tpu.memory_space<vmem>>, vector<2x32xf32>
    %c0_152 = arith.constant 0 : index
    %c0_153 = arith.constant 0 : index
    %286 = vector.load %arg18[%c0_152, %c0_153] : memref<2x32xf32, #tpu.memory_space<vmem>>, vector<2x32xf32>
    %cst_154 = arith.constant dense<0.000000e+00> : vector<2x128xf32>
    %287 = tpu.matmul %285, %32, %cst_154 {dimension_numbers = #tpu.dot_dimension_numbers<[1], [0], [0], [1], [0, 0, 1, 1], [], []>} : vector<2x32xf32>, vector<32x128xf32>, vector<2x128xf32> -> vector<2x128xf32>
    %288 = arith.addf %284, %287 : vector<2x128xf32>
    %289 = vector.extract_strided_slice %288 {offsets = [0, 0], sizes = [2, 32], strides = [1, 1]} : vector<2x128xf32> to vector<2x32xf32>
    %cst_155 = arith.constant 0.000000e+00 : f32
    %290 = vector.broadcast %cst_155 : f32 to vector<2x32xf32>
    %291 = arith.subf %290, %289 : vector<2x32xf32>
    %292 = math.exp %291 : vector<2x32xf32>
    %cst_156 = arith.constant 1.000000e+00 : f32
    %293 = vector.broadcast %cst_156 : f32 to vector<2x32xf32>
    %294 = arith.addf %293, %292 : vector<2x32xf32>
    %cst_157 = arith.constant 1.000000e+00 : f32
    %295 = vector.broadcast %cst_157 : f32 to vector<2x32xf32>
    %296 = arith.divf %295, %294 : vector<2x32xf32>
    %297 = vector.extract_strided_slice %288 {offsets = [0, 32], sizes = [2, 32], strides = [1, 1]} : vector<2x128xf32> to vector<2x32xf32>
    %cst_158 = arith.constant 0.000000e+00 : f32
    %298 = vector.broadcast %cst_158 : f32 to vector<2x32xf32>
    %299 = arith.subf %298, %297 : vector<2x32xf32>
    %300 = math.exp %299 : vector<2x32xf32>
    %cst_159 = arith.constant 1.000000e+00 : f32
    %301 = vector.broadcast %cst_159 : f32 to vector<2x32xf32>
    %302 = arith.addf %301, %300 : vector<2x32xf32>
    %cst_160 = arith.constant 1.000000e+00 : f32
    %303 = vector.broadcast %cst_160 : f32 to vector<2x32xf32>
    %304 = arith.divf %303, %302 : vector<2x32xf32>
    %305 = vector.extract_strided_slice %288 {offsets = [0, 64], sizes = [2, 32], strides = [1, 1]} : vector<2x128xf32> to vector<2x32xf32>
    %306 = math.tanh %305 : vector<2x32xf32>
    %307 = vector.extract_strided_slice %288 {offsets = [0, 96], sizes = [2, 32], strides = [1, 1]} : vector<2x128xf32> to vector<2x32xf32>
    %cst_161 = arith.constant 0.000000e+00 : f32
    %308 = vector.broadcast %cst_161 : f32 to vector<2x32xf32>
    %309 = arith.subf %308, %307 : vector<2x32xf32>
    %310 = math.exp %309 : vector<2x32xf32>
    %cst_162 = arith.constant 1.000000e+00 : f32
    %311 = vector.broadcast %cst_162 : f32 to vector<2x32xf32>
    %312 = arith.addf %311, %310 : vector<2x32xf32>
    %cst_163 = arith.constant 1.000000e+00 : f32
    %313 = vector.broadcast %cst_163 : f32 to vector<2x32xf32>
    %314 = arith.divf %313, %312 : vector<2x32xf32>
    %315 = arith.mulf %304, %286 : vector<2x32xf32>
    %316 = arith.mulf %296, %306 : vector<2x32xf32>
    %317 = arith.addf %315, %316 : vector<2x32xf32>
    %318 = math.tanh %317 : vector<2x32xf32>
    %319 = arith.mulf %314, %318 : vector<2x32xf32>
    %cst_164 = arith.constant 0.000000e+00 : f32
    %320 = vector.shape_cast %282 : vector<2x1xi1> to vector<2x1xi1>
    %321 = vector.broadcast %320 : vector<2x1xi1> to vector<2x32xi1>
    %322 = vector.broadcast %cst_164 : f32 to vector<2x32xf32>
    %323 = arith.select %321, %319, %322 : vector<2x32xi1>, vector<2x32xf32>
    %c0_165 = arith.constant 0 : index
    %c0_166 = arith.constant 0 : index
    %324 = vector.load %arg17[%c0_165, %c0_166] : memref<2x32xf32, #tpu.memory_space<vmem>>, vector<2x32xf32>
    %325 = vector.shape_cast %282 : vector<2x1xi1> to vector<2x1xi1>
    %326 = vector.broadcast %325 : vector<2x1xi1> to vector<2x32xi1>
    %327 = arith.select %326, %319, %324 : vector<2x32xi1>, vector<2x32xf32>
    %c0_167 = arith.constant 0 : index
    %c0_168 = arith.constant 0 : index
    %328 = vector.load %arg17[%c0_167, %c0_168] : memref<2x32xf32, #tpu.memory_space<vmem>>, vector<2x32xf32>
    tpu.vector_store %arg17[%c0_167, %c0_168], %327 {strides = array<i32>} : memref<2x32xf32, #tpu.memory_space<vmem>>, vector<2x32xf32>,
    %c0_169 = arith.constant 0 : index
    %c0_170 = arith.constant 0 : index
    %329 = vector.load %arg18[%c0_169, %c0_170] : memref<2x32xf32, #tpu.memory_space<vmem>>, vector<2x32xf32>
    %330 = vector.shape_cast %282 : vector<2x1xi1> to vector<2x1xi1>
    %331 = vector.broadcast %330 : vector<2x1xi1> to vector<2x32xi1>
    %332 = arith.select %331, %317, %329 : vector<2x32xi1>, vector<2x32xf32>
    %c0_171 = arith.constant 0 : index
    %c0_172 = arith.constant 0 : index
    %333 = vector.load %arg18[%c0_171, %c0_172] : memref<2x32xf32, #tpu.memory_space<vmem>>, vector<2x32xf32>
    tpu.vector_store %arg18[%c0_171, %c0_172], %332 {strides = array<i32>} : memref<2x32xf32, #tpu.memory_space<vmem>>, vector<2x32xf32>,
    %334 = vector.broadcast %36 : vector<1x32xf32> to vector<2x32xf32>
    %335 = arith.mulf %323, %334 : vector<2x32xf32>
    %cst_173 = arith.constant dense<0.000000e+00> : vector<2xf32>
    %336 = vector.multi_reduction <add>, %335, %cst_173 [1] : vector<2x32xf32> to vector<2xf32>
    %337 = vector.shape_cast %336 : vector<2xf32> to vector<2x1xf32>
    %338 = arith.index_cast %280 : i32 to index
    %c0_174 = arith.constant 0 : index
    %339 = vector.load %arg21[%338, %c0_174] : memref<16x2xf32, #tpu.memory_space<vmem>>, vector<2x1xf32>
    tpu.vector_store %arg21[%338, %c0_174], %337 {strides = array<i32>} : memref<16x2xf32, #tpu.memory_space<vmem>>, vector<2x1xf32>,
    %c7_i32_175 = arith.constant 7 : i32
    %340 = arith.subi %c7_i32_175, %c2_i32_147 : i32
    %c2_i32_176 = arith.constant 2 : i32
    %341 = arith.muli %340, %c2_i32_176 : i32
    %342 = vector.broadcast %340 : i32 to vector<2x1xi32>
    %343 = arith.cmpi slt, %342, %34 : vector<2x1xi32>
    %344 = arith.index_cast %341 : i32 to index
    %c0_177 = arith.constant 0 : index
    %345 = vector.load %arg16[%344, %c0_177] : memref<16x128xf32, #tpu.memory_space<vmem>>, vector<2x128xf32>
    %c0_178 = arith.constant 0 : index
    %c0_179 = arith.constant 0 : index
    %346 = vector.load %arg19[%c0_178, %c0_179] : memref<2x32xf32, #tpu.memory_space<vmem>>, vector<2x32xf32>
    %c0_180 = arith.constant 0 : index
    %c0_181 = arith.constant 0 : index
    %347 = vector.load %arg20[%c0_180, %c0_181] : memref<2x32xf32, #tpu.memory_space<vmem>>, vector<2x32xf32>
    %cst_182 = arith.constant dense<0.000000e+00> : vector<2x128xf32>
    %348 = tpu.matmul %346, %33, %cst_182 {dimension_numbers = #tpu.dot_dimension_numbers<[1], [0], [0], [1], [0, 0, 1, 1], [], []>} : vector<2x32xf32>, vector<32x128xf32>, vector<2x128xf32> -> vector<2x128xf32>
    %349 = arith.addf %345, %348 : vector<2x128xf32>
    %350 = vector.extract_strided_slice %349 {offsets = [0, 0], sizes = [2, 32], strides = [1, 1]} : vector<2x128xf32> to vector<2x32xf32>
    %cst_183 = arith.constant 0.000000e+00 : f32
    %351 = vector.broadcast %cst_183 : f32 to vector<2x32xf32>
    %352 = arith.subf %351, %350 : vector<2x32xf32>
    %353 = math.exp %352 : vector<2x32xf32>
    %cst_184 = arith.constant 1.000000e+00 : f32
    %354 = vector.broadcast %cst_184 : f32 to vector<2x32xf32>
    %355 = arith.addf %354, %353 : vector<2x32xf32>
    %cst_185 = arith.constant 1.000000e+00 : f32
    %356 = vector.broadcast %cst_185 : f32 to vector<2x32xf32>
    %357 = arith.divf %356, %355 : vector<2x32xf32>
    %358 = vector.extract_strided_slice %349 {offsets = [0, 32], sizes = [2, 32], strides = [1, 1]} : vector<2x128xf32> to vector<2x32xf32>
    %cst_186 = arith.constant 0.000000e+00 : f32
    %359 = vector.broadcast %cst_186 : f32 to vector<2x32xf32>
    %360 = arith.subf %359, %358 : vector<2x32xf32>
    %361 = math.exp %360 : vector<2x32xf32>
    %cst_187 = arith.constant 1.000000e+00 : f32
    %362 = vector.broadcast %cst_187 : f32 to vector<2x32xf32>
    %363 = arith.addf %362, %361 : vector<2x32xf32>
    %cst_188 = arith.constant 1.000000e+00 : f32
    %364 = vector.broadcast %cst_188 : f32 to vector<2x32xf32>
    %365 = arith.divf %364, %363 : vector<2x32xf32>
    %366 = vector.extract_strided_slice %349 {offsets = [0, 64], sizes = [2, 32], strides = [1, 1]} : vector<2x128xf32> to vector<2x32xf32>
    %367 = math.tanh %366 : vector<2x32xf32>
    %368 = vector.extract_strided_slice %349 {offsets = [0, 96], sizes = [2, 32], strides = [1, 1]} : vector<2x128xf32> to vector<2x32xf32>
    %cst_189 = arith.constant 0.000000e+00 : f32
    %369 = vector.broadcast %cst_189 : f32 to vector<2x32xf32>
    %370 = arith.subf %369, %368 : vector<2x32xf32>
    %371 = math.exp %370 : vector<2x32xf32>
    %cst_190 = arith.constant 1.000000e+00 : f32
    %372 = vector.broadcast %cst_190 : f32 to vector<2x32xf32>
    %373 = arith.addf %372, %371 : vector<2x32xf32>
    %cst_191 = arith.constant 1.000000e+00 : f32
    %374 = vector.broadcast %cst_191 : f32 to vector<2x32xf32>
    %375 = arith.divf %374, %373 : vector<2x32xf32>
    %376 = arith.mulf %365, %347 : vector<2x32xf32>
    %377 = arith.mulf %357, %367 : vector<2x32xf32>
    %378 = arith.addf %376, %377 : vector<2x32xf32>
    %379 = math.tanh %378 : vector<2x32xf32>
    %380 = arith.mulf %375, %379 : vector<2x32xf32>
    %cst_192 = arith.constant 0.000000e+00 : f32
    %381 = vector.shape_cast %343 : vector<2x1xi1> to vector<2x1xi1>
    %382 = vector.broadcast %381 : vector<2x1xi1> to vector<2x32xi1>
    %383 = vector.broadcast %cst_192 : f32 to vector<2x32xf32>
    %384 = arith.select %382, %380, %383 : vector<2x32xi1>, vector<2x32xf32>
    %c0_193 = arith.constant 0 : index
    %c0_194 = arith.constant 0 : index
    %385 = vector.load %arg19[%c0_193, %c0_194] : memref<2x32xf32, #tpu.memory_space<vmem>>, vector<2x32xf32>
    %386 = vector.shape_cast %343 : vector<2x1xi1> to vector<2x1xi1>
    %387 = vector.broadcast %386 : vector<2x1xi1> to vector<2x32xi1>
    %388 = arith.select %387, %380, %385 : vector<2x32xi1>, vector<2x32xf32>
    %c0_195 = arith.constant 0 : index
    %c0_196 = arith.constant 0 : index
    %389 = vector.load %arg19[%c0_195, %c0_196] : memref<2x32xf32, #tpu.memory_space<vmem>>, vector<2x32xf32>
    tpu.vector_store %arg19[%c0_195, %c0_196], %388 {strides = array<i32>} : memref<2x32xf32, #tpu.memory_space<vmem>>, vector<2x32xf32>,
    %c0_197 = arith.constant 0 : index
    %c0_198 = arith.constant 0 : index
    %390 = vector.load %arg20[%c0_197, %c0_198] : memref<2x32xf32, #tpu.memory_space<vmem>>, vector<2x32xf32>
    %391 = vector.shape_cast %343 : vector<2x1xi1> to vector<2x1xi1>
    %392 = vector.broadcast %391 : vector<2x1xi1> to vector<2x32xi1>
    %393 = arith.select %392, %378, %390 : vector<2x32xi1>, vector<2x32xf32>
    %c0_199 = arith.constant 0 : index
    %c0_200 = arith.constant 0 : index
    %394 = vector.load %arg20[%c0_199, %c0_200] : memref<2x32xf32, #tpu.memory_space<vmem>>, vector<2x32xf32>
    tpu.vector_store %arg20[%c0_199, %c0_200], %393 {strides = array<i32>} : memref<2x32xf32, #tpu.memory_space<vmem>>, vector<2x32xf32>,
    %395 = vector.broadcast %37 : vector<1x32xf32> to vector<2x32xf32>
    %396 = arith.mulf %384, %395 : vector<2x32xf32>
    %cst_201 = arith.constant dense<0.000000e+00> : vector<2xf32>
    %397 = vector.multi_reduction <add>, %396, %cst_201 [1] : vector<2x32xf32> to vector<2xf32>
    %398 = vector.shape_cast %397 : vector<2xf32> to vector<2x1xf32>
    %399 = arith.index_cast %341 : i32 to index
    %c1_202 = arith.constant 1 : index
    %400 = vector.load %arg21[%399, %c1_202] : memref<16x2xf32, #tpu.memory_space<vmem>>, vector<2x1xf32>
    tpu.vector_store %arg21[%399, %c1_202], %398 {strides = array<i32>} : memref<16x2xf32, #tpu.memory_space<vmem>>, vector<2x1xf32>,
    %c3_i32 = arith.constant 3 : i32
    %c2_i32_203 = arith.constant 2 : i32
    %401 = arith.muli %c3_i32, %c2_i32_203 : i32
    %402 = vector.broadcast %c3_i32 : i32 to vector<2x1xi32>
    %403 = arith.cmpi slt, %402, %34 : vector<2x1xi32>
    %404 = arith.index_cast %401 : i32 to index
    %c0_204 = arith.constant 0 : index
    %405 = vector.load %arg15[%404, %c0_204] : memref<16x128xf32, #tpu.memory_space<vmem>>, vector<2x128xf32>
    %c0_205 = arith.constant 0 : index
    %c0_206 = arith.constant 0 : index
    %406 = vector.load %arg17[%c0_205, %c0_206] : memref<2x32xf32, #tpu.memory_space<vmem>>, vector<2x32xf32>
    %c0_207 = arith.constant 0 : index
    %c0_208 = arith.constant 0 : index
    %407 = vector.load %arg18[%c0_207, %c0_208] : memref<2x32xf32, #tpu.memory_space<vmem>>, vector<2x32xf32>
    %cst_209 = arith.constant dense<0.000000e+00> : vector<2x128xf32>
    %408 = tpu.matmul %406, %32, %cst_209 {dimension_numbers = #tpu.dot_dimension_numbers<[1], [0], [0], [1], [0, 0, 1, 1], [], []>} : vector<2x32xf32>, vector<32x128xf32>, vector<2x128xf32> -> vector<2x128xf32>
    %409 = arith.addf %405, %408 : vector<2x128xf32>
    %410 = vector.extract_strided_slice %409 {offsets = [0, 0], sizes = [2, 32], strides = [1, 1]} : vector<2x128xf32> to vector<2x32xf32>
    %cst_210 = arith.constant 0.000000e+00 : f32
    %411 = vector.broadcast %cst_210 : f32 to vector<2x32xf32>
    %412 = arith.subf %411, %410 : vector<2x32xf32>
    %413 = math.exp %412 : vector<2x32xf32>
    %cst_211 = arith.constant 1.000000e+00 : f32
    %414 = vector.broadcast %cst_211 : f32 to vector<2x32xf32>
    %415 = arith.addf %414, %413 : vector<2x32xf32>
    %cst_212 = arith.constant 1.000000e+00 : f32
    %416 = vector.broadcast %cst_212 : f32 to vector<2x32xf32>
    %417 = arith.divf %416, %415 : vector<2x32xf32>
    %418 = vector.extract_strided_slice %409 {offsets = [0, 32], sizes = [2, 32], strides = [1, 1]} : vector<2x128xf32> to vector<2x32xf32>
    %cst_213 = arith.constant 0.000000e+00 : f32
    %419 = vector.broadcast %cst_213 : f32 to vector<2x32xf32>
    %420 = arith.subf %419, %418 : vector<2x32xf32>
    %421 = math.exp %420 : vector<2x32xf32>
    %cst_214 = arith.constant 1.000000e+00 : f32
    %422 = vector.broadcast %cst_214 : f32 to vector<2x32xf32>
    %423 = arith.addf %422, %421 : vector<2x32xf32>
    %cst_215 = arith.constant 1.000000e+00 : f32
    %424 = vector.broadcast %cst_215 : f32 to vector<2x32xf32>
    %425 = arith.divf %424, %423 : vector<2x32xf32>
    %426 = vector.extract_strided_slice %409 {offsets = [0, 64], sizes = [2, 32], strides = [1, 1]} : vector<2x128xf32> to vector<2x32xf32>
    %427 = math.tanh %426 : vector<2x32xf32>
    %428 = vector.extract_strided_slice %409 {offsets = [0, 96], sizes = [2, 32], strides = [1, 1]} : vector<2x128xf32> to vector<2x32xf32>
    %cst_216 = arith.constant 0.000000e+00 : f32
    %429 = vector.broadcast %cst_216 : f32 to vector<2x32xf32>
    %430 = arith.subf %429, %428 : vector<2x32xf32>
    %431 = math.exp %430 : vector<2x32xf32>
    %cst_217 = arith.constant 1.000000e+00 : f32
    %432 = vector.broadcast %cst_217 : f32 to vector<2x32xf32>
    %433 = arith.addf %432, %431 : vector<2x32xf32>
    %cst_218 = arith.constant 1.000000e+00 : f32
    %434 = vector.broadcast %cst_218 : f32 to vector<2x32xf32>
    %435 = arith.divf %434, %433 : vector<2x32xf32>
    %436 = arith.mulf %425, %407 : vector<2x32xf32>
    %437 = arith.mulf %417, %427 : vector<2x32xf32>
    %438 = arith.addf %436, %437 : vector<2x32xf32>
    %439 = math.tanh %438 : vector<2x32xf32>
    %440 = arith.mulf %435, %439 : vector<2x32xf32>
    %cst_219 = arith.constant 0.000000e+00 : f32
    %441 = vector.shape_cast %403 : vector<2x1xi1> to vector<2x1xi1>
    %442 = vector.broadcast %441 : vector<2x1xi1> to vector<2x32xi1>
    %443 = vector.broadcast %cst_219 : f32 to vector<2x32xf32>
    %444 = arith.select %442, %440, %443 : vector<2x32xi1>, vector<2x32xf32>
    %c0_220 = arith.constant 0 : index
    %c0_221 = arith.constant 0 : index
    %445 = vector.load %arg17[%c0_220, %c0_221] : memref<2x32xf32, #tpu.memory_space<vmem>>, vector<2x32xf32>
    %446 = vector.shape_cast %403 : vector<2x1xi1> to vector<2x1xi1>
    %447 = vector.broadcast %446 : vector<2x1xi1> to vector<2x32xi1>
    %448 = arith.select %447, %440, %445 : vector<2x32xi1>, vector<2x32xf32>
    %c0_222 = arith.constant 0 : index
    %c0_223 = arith.constant 0 : index
    %449 = vector.load %arg17[%c0_222, %c0_223] : memref<2x32xf32, #tpu.memory_space<vmem>>, vector<2x32xf32>
    tpu.vector_store %arg17[%c0_222, %c0_223], %448 {strides = array<i32>} : memref<2x32xf32, #tpu.memory_space<vmem>>, vector<2x32xf32>,
    %c0_224 = arith.constant 0 : index
    %c0_225 = arith.constant 0 : index
    %450 = vector.load %arg18[%c0_224, %c0_225] : memref<2x32xf32, #tpu.memory_space<vmem>>, vector<2x32xf32>
    %451 = vector.shape_cast %403 : vector<2x1xi1> to vector<2x1xi1>
    %452 = vector.broadcast %451 : vector<2x1xi1> to vector<2x32xi1>
    %453 = arith.select %452, %438, %450 : vector<2x32xi1>, vector<2x32xf32>
    %c0_226 = arith.constant 0 : index
    %c0_227 = arith.constant 0 : index
    %454 = vector.load %arg18[%c0_226, %c0_227] : memref<2x32xf32, #tpu.memory_space<vmem>>, vector<2x32xf32>
    tpu.vector_store %arg18[%c0_226, %c0_227], %453 {strides = array<i32>} : memref<2x32xf32, #tpu.memory_space<vmem>>, vector<2x32xf32>,
    %455 = vector.broadcast %36 : vector<1x32xf32> to vector<2x32xf32>
    %456 = arith.mulf %444, %455 : vector<2x32xf32>
    %cst_228 = arith.constant dense<0.000000e+00> : vector<2xf32>
    %457 = vector.multi_reduction <add>, %456, %cst_228 [1] : vector<2x32xf32> to vector<2xf32>
    %458 = vector.shape_cast %457 : vector<2xf32> to vector<2x1xf32>
    %459 = arith.index_cast %401 : i32 to index
    %c0_229 = arith.constant 0 : index
    %460 = vector.load %arg21[%459, %c0_229] : memref<16x2xf32, #tpu.memory_space<vmem>>, vector<2x1xf32>
    tpu.vector_store %arg21[%459, %c0_229], %458 {strides = array<i32>} : memref<16x2xf32, #tpu.memory_space<vmem>>, vector<2x1xf32>,
    %c7_i32_230 = arith.constant 7 : i32
    %461 = arith.subi %c7_i32_230, %c3_i32 : i32
    %c2_i32_231 = arith.constant 2 : i32
    %462 = arith.muli %461, %c2_i32_231 : i32
    %463 = vector.broadcast %461 : i32 to vector<2x1xi32>
    %464 = arith.cmpi slt, %463, %34 : vector<2x1xi32>
    %465 = arith.index_cast %462 : i32 to index
    %c0_232 = arith.constant 0 : index
    %466 = vector.load %arg16[%465, %c0_232] : memref<16x128xf32, #tpu.memory_space<vmem>>, vector<2x128xf32>
    %c0_233 = arith.constant 0 : index
    %c0_234 = arith.constant 0 : index
    %467 = vector.load %arg19[%c0_233, %c0_234] : memref<2x32xf32, #tpu.memory_space<vmem>>, vector<2x32xf32>
    %c0_235 = arith.constant 0 : index
    %c0_236 = arith.constant 0 : index
    %468 = vector.load %arg20[%c0_235, %c0_236] : memref<2x32xf32, #tpu.memory_space<vmem>>, vector<2x32xf32>
    %cst_237 = arith.constant dense<0.000000e+00> : vector<2x128xf32>
    %469 = tpu.matmul %467, %33, %cst_237 {dimension_numbers = #tpu.dot_dimension_numbers<[1], [0], [0], [1], [0, 0, 1, 1], [], []>} : vector<2x32xf32>, vector<32x128xf32>, vector<2x128xf32> -> vector<2x128xf32>
    %470 = arith.addf %466, %469 : vector<2x128xf32>
    %471 = vector.extract_strided_slice %470 {offsets = [0, 0], sizes = [2, 32], strides = [1, 1]} : vector<2x128xf32> to vector<2x32xf32>
    %cst_238 = arith.constant 0.000000e+00 : f32
    %472 = vector.broadcast %cst_238 : f32 to vector<2x32xf32>
    %473 = arith.subf %472, %471 : vector<2x32xf32>
    %474 = math.exp %473 : vector<2x32xf32>
    %cst_239 = arith.constant 1.000000e+00 : f32
    %475 = vector.broadcast %cst_239 : f32 to vector<2x32xf32>
    %476 = arith.addf %475, %474 : vector<2x32xf32>
    %cst_240 = arith.constant 1.000000e+00 : f32
    %477 = vector.broadcast %cst_240 : f32 to vector<2x32xf32>
    %478 = arith.divf %477, %476 : vector<2x32xf32>
    %479 = vector.extract_strided_slice %470 {offsets = [0, 32], sizes = [2, 32], strides = [1, 1]} : vector<2x128xf32> to vector<2x32xf32>
    %cst_241 = arith.constant 0.000000e+00 : f32
    %480 = vector.broadcast %cst_241 : f32 to vector<2x32xf32>
    %481 = arith.subf %480, %479 : vector<2x32xf32>
    %482 = math.exp %481 : vector<2x32xf32>
    %cst_242 = arith.constant 1.000000e+00 : f32
    %483 = vector.broadcast %cst_242 : f32 to vector<2x32xf32>
    %484 = arith.addf %483, %482 : vector<2x32xf32>
    %cst_243 = arith.constant 1.000000e+00 : f32
    %485 = vector.broadcast %cst_243 : f32 to vector<2x32xf32>
    %486 = arith.divf %485, %484 : vector<2x32xf32>
    %487 = vector.extract_strided_slice %470 {offsets = [0, 64], sizes = [2, 32], strides = [1, 1]} : vector<2x128xf32> to vector<2x32xf32>
    %488 = math.tanh %487 : vector<2x32xf32>
    %489 = vector.extract_strided_slice %470 {offsets = [0, 96], sizes = [2, 32], strides = [1, 1]} : vector<2x128xf32> to vector<2x32xf32>
    %cst_244 = arith.constant 0.000000e+00 : f32
    %490 = vector.broadcast %cst_244 : f32 to vector<2x32xf32>
    %491 = arith.subf %490, %489 : vector<2x32xf32>
    %492 = math.exp %491 : vector<2x32xf32>
    %cst_245 = arith.constant 1.000000e+00 : f32
    %493 = vector.broadcast %cst_245 : f32 to vector<2x32xf32>
    %494 = arith.addf %493, %492 : vector<2x32xf32>
    %cst_246 = arith.constant 1.000000e+00 : f32
    %495 = vector.broadcast %cst_246 : f32 to vector<2x32xf32>
    %496 = arith.divf %495, %494 : vector<2x32xf32>
    %497 = arith.mulf %486, %468 : vector<2x32xf32>
    %498 = arith.mulf %478, %488 : vector<2x32xf32>
    %499 = arith.addf %497, %498 : vector<2x32xf32>
    %500 = math.tanh %499 : vector<2x32xf32>
    %501 = arith.mulf %496, %500 : vector<2x32xf32>
    %cst_247 = arith.constant 0.000000e+00 : f32
    %502 = vector.shape_cast %464 : vector<2x1xi1> to vector<2x1xi1>
    %503 = vector.broadcast %502 : vector<2x1xi1> to vector<2x32xi1>
    %504 = vector.broadcast %cst_247 : f32 to vector<2x32xf32>
    %505 = arith.select %503, %501, %504 : vector<2x32xi1>, vector<2x32xf32>
    %c0_248 = arith.constant 0 : index
    %c0_249 = arith.constant 0 : index
    %506 = vector.load %arg19[%c0_248, %c0_249] : memref<2x32xf32, #tpu.memory_space<vmem>>, vector<2x32xf32>
    %507 = vector.shape_cast %464 : vector<2x1xi1> to vector<2x1xi1>
    %508 = vector.broadcast %507 : vector<2x1xi1> to vector<2x32xi1>
    %509 = arith.select %508, %501, %506 : vector<2x32xi1>, vector<2x32xf32>
    %c0_250 = arith.constant 0 : index
    %c0_251 = arith.constant 0 : index
    %510 = vector.load %arg19[%c0_250, %c0_251] : memref<2x32xf32, #tpu.memory_space<vmem>>, vector<2x32xf32>
    tpu.vector_store %arg19[%c0_250, %c0_251], %509 {strides = array<i32>} : memref<2x32xf32, #tpu.memory_space<vmem>>, vector<2x32xf32>,
    %c0_252 = arith.constant 0 : index
    %c0_253 = arith.constant 0 : index
    %511 = vector.load %arg20[%c0_252, %c0_253] : memref<2x32xf32, #tpu.memory_space<vmem>>, vector<2x32xf32>
    %512 = vector.shape_cast %464 : vector<2x1xi1> to vector<2x1xi1>
    %513 = vector.broadcast %512 : vector<2x1xi1> to vector<2x32xi1>
    %514 = arith.select %513, %499, %511 : vector<2x32xi1>, vector<2x32xf32>
    %c0_254 = arith.constant 0 : index
    %c0_255 = arith.constant 0 : index
    %515 = vector.load %arg20[%c0_254, %c0_255] : memref<2x32xf32, #tpu.memory_space<vmem>>, vector<2x32xf32>
    tpu.vector_store %arg20[%c0_254, %c0_255], %514 {strides = array<i32>} : memref<2x32xf32, #tpu.memory_space<vmem>>, vector<2x32xf32>,
    %516 = vector.broadcast %37 : vector<1x32xf32> to vector<2x32xf32>
    %517 = arith.mulf %505, %516 : vector<2x32xf32>
    %cst_256 = arith.constant dense<0.000000e+00> : vector<2xf32>
    %518 = vector.multi_reduction <add>, %517, %cst_256 [1] : vector<2x32xf32> to vector<2xf32>
    %519 = vector.shape_cast %518 : vector<2xf32> to vector<2x1xf32>
    %520 = arith.index_cast %462 : i32 to index
    %c1_257 = arith.constant 1 : index
    %521 = vector.load %arg21[%520, %c1_257] : memref<16x2xf32, #tpu.memory_space<vmem>>, vector<2x1xf32>
    tpu.vector_store %arg21[%520, %c1_257], %519 {strides = array<i32>} : memref<16x2xf32, #tpu.memory_space<vmem>>, vector<2x1xf32>,
    %c4_i32 = arith.constant 4 : i32
    %c2_i32_258 = arith.constant 2 : i32
    %522 = arith.muli %c4_i32, %c2_i32_258 : i32
    %523 = vector.broadcast %c4_i32 : i32 to vector<2x1xi32>
    %524 = arith.cmpi slt, %523, %34 : vector<2x1xi32>
    %525 = arith.index_cast %522 : i32 to index
    %c0_259 = arith.constant 0 : index
    %526 = vector.load %arg15[%525, %c0_259] : memref<16x128xf32, #tpu.memory_space<vmem>>, vector<2x128xf32>
    %c0_260 = arith.constant 0 : index
    %c0_261 = arith.constant 0 : index
    %527 = vector.load %arg17[%c0_260, %c0_261] : memref<2x32xf32, #tpu.memory_space<vmem>>, vector<2x32xf32>
    %c0_262 = arith.constant 0 : index
    %c0_263 = arith.constant 0 : index
    %528 = vector.load %arg18[%c0_262, %c0_263] : memref<2x32xf32, #tpu.memory_space<vmem>>, vector<2x32xf32>
    %cst_264 = arith.constant dense<0.000000e+00> : vector<2x128xf32>
    %529 = tpu.matmul %527, %32, %cst_264 {dimension_numbers = #tpu.dot_dimension_numbers<[1], [0], [0], [1], [0, 0, 1, 1], [], []>} : vector<2x32xf32>, vector<32x128xf32>, vector<2x128xf32> -> vector<2x128xf32>
    %530 = arith.addf %526, %529 : vector<2x128xf32>
    %531 = vector.extract_strided_slice %530 {offsets = [0, 0], sizes = [2, 32], strides = [1, 1]} : vector<2x128xf32> to vector<2x32xf32>
    %cst_265 = arith.constant 0.000000e+00 : f32
    %532 = vector.broadcast %cst_265 : f32 to vector<2x32xf32>
    %533 = arith.subf %532, %531 : vector<2x32xf32>
    %534 = math.exp %533 : vector<2x32xf32>
    %cst_266 = arith.constant 1.000000e+00 : f32
    %535 = vector.broadcast %cst_266 : f32 to vector<2x32xf32>
    %536 = arith.addf %535, %534 : vector<2x32xf32>
    %cst_267 = arith.constant 1.000000e+00 : f32
    %537 = vector.broadcast %cst_267 : f32 to vector<2x32xf32>
    %538 = arith.divf %537, %536 : vector<2x32xf32>
    %539 = vector.extract_strided_slice %530 {offsets = [0, 32], sizes = [2, 32], strides = [1, 1]} : vector<2x128xf32> to vector<2x32xf32>
    %cst_268 = arith.constant 0.000000e+00 : f32
    %540 = vector.broadcast %cst_268 : f32 to vector<2x32xf32>
    %541 = arith.subf %540, %539 : vector<2x32xf32>
    %542 = math.exp %541 : vector<2x32xf32>
    %cst_269 = arith.constant 1.000000e+00 : f32
    %543 = vector.broadcast %cst_269 : f32 to vector<2x32xf32>
    %544 = arith.addf %543, %542 : vector<2x32xf32>
    %cst_270 = arith.constant 1.000000e+00 : f32
    %545 = vector.broadcast %cst_270 : f32 to vector<2x32xf32>
    %546 = arith.divf %545, %544 : vector<2x32xf32>
    %547 = vector.extract_strided_slice %530 {offsets = [0, 64], sizes = [2, 32], strides = [1, 1]} : vector<2x128xf32> to vector<2x32xf32>
    %548 = math.tanh %547 : vector<2x32xf32>
    %549 = vector.extract_strided_slice %530 {offsets = [0, 96], sizes = [2, 32], strides = [1, 1]} : vector<2x128xf32> to vector<2x32xf32>
    %cst_271 = arith.constant 0.000000e+00 : f32
    %550 = vector.broadcast %cst_271 : f32 to vector<2x32xf32>
    %551 = arith.subf %550, %549 : vector<2x32xf32>
    %552 = math.exp %551 : vector<2x32xf32>
    %cst_272 = arith.constant 1.000000e+00 : f32
    %553 = vector.broadcast %cst_272 : f32 to vector<2x32xf32>
    %554 = arith.addf %553, %552 : vector<2x32xf32>
    %cst_273 = arith.constant 1.000000e+00 : f32
    %555 = vector.broadcast %cst_273 : f32 to vector<2x32xf32>
    %556 = arith.divf %555, %554 : vector<2x32xf32>
    %557 = arith.mulf %546, %528 : vector<2x32xf32>
    %558 = arith.mulf %538, %548 : vector<2x32xf32>
    %559 = arith.addf %557, %558 : vector<2x32xf32>
    %560 = math.tanh %559 : vector<2x32xf32>
    %561 = arith.mulf %556, %560 : vector<2x32xf32>
    %cst_274 = arith.constant 0.000000e+00 : f32
    %562 = vector.shape_cast %524 : vector<2x1xi1> to vector<2x1xi1>
    %563 = vector.broadcast %562 : vector<2x1xi1> to vector<2x32xi1>
    %564 = vector.broadcast %cst_274 : f32 to vector<2x32xf32>
    %565 = arith.select %563, %561, %564 : vector<2x32xi1>, vector<2x32xf32>
    %c0_275 = arith.constant 0 : index
    %c0_276 = arith.constant 0 : index
    %566 = vector.load %arg17[%c0_275, %c0_276] : memref<2x32xf32, #tpu.memory_space<vmem>>, vector<2x32xf32>
    %567 = vector.shape_cast %524 : vector<2x1xi1> to vector<2x1xi1>
    %568 = vector.broadcast %567 : vector<2x1xi1> to vector<2x32xi1>
    %569 = arith.select %568, %561, %566 : vector<2x32xi1>, vector<2x32xf32>
    %c0_277 = arith.constant 0 : index
    %c0_278 = arith.constant 0 : index
    %570 = vector.load %arg17[%c0_277, %c0_278] : memref<2x32xf32, #tpu.memory_space<vmem>>, vector<2x32xf32>
    tpu.vector_store %arg17[%c0_277, %c0_278], %569 {strides = array<i32>} : memref<2x32xf32, #tpu.memory_space<vmem>>, vector<2x32xf32>,
    %c0_279 = arith.constant 0 : index
    %c0_280 = arith.constant 0 : index
    %571 = vector.load %arg18[%c0_279, %c0_280] : memref<2x32xf32, #tpu.memory_space<vmem>>, vector<2x32xf32>
    %572 = vector.shape_cast %524 : vector<2x1xi1> to vector<2x1xi1>
    %573 = vector.broadcast %572 : vector<2x1xi1> to vector<2x32xi1>
    %574 = arith.select %573, %559, %571 : vector<2x32xi1>, vector<2x32xf32>
    %c0_281 = arith.constant 0 : index
    %c0_282 = arith.constant 0 : index
    %575 = vector.load %arg18[%c0_281, %c0_282] : memref<2x32xf32, #tpu.memory_space<vmem>>, vector<2x32xf32>
    tpu.vector_store %arg18[%c0_281, %c0_282], %574 {strides = array<i32>} : memref<2x32xf32, #tpu.memory_space<vmem>>, vector<2x32xf32>,
    %576 = vector.broadcast %36 : vector<1x32xf32> to vector<2x32xf32>
    %577 = arith.mulf %565, %576 : vector<2x32xf32>
    %cst_283 = arith.constant dense<0.000000e+00> : vector<2xf32>
    %578 = vector.multi_reduction <add>, %577, %cst_283 [1] : vector<2x32xf32> to vector<2xf32>
    %579 = vector.shape_cast %578 : vector<2xf32> to vector<2x1xf32>
    %580 = arith.index_cast %522 : i32 to index
    %c0_284 = arith.constant 0 : index
    %581 = vector.load %arg21[%580, %c0_284] : memref<16x2xf32, #tpu.memory_space<vmem>>, vector<2x1xf32>
    tpu.vector_store %arg21[%580, %c0_284], %579 {strides = array<i32>} : memref<16x2xf32, #tpu.memory_space<vmem>>, vector<2x1xf32>,
    %c7_i32_285 = arith.constant 7 : i32
    %582 = arith.subi %c7_i32_285, %c4_i32 : i32
    %c2_i32_286 = arith.constant 2 : i32
    %583 = arith.muli %582, %c2_i32_286 : i32
    %584 = vector.broadcast %582 : i32 to vector<2x1xi32>
    %585 = arith.cmpi slt, %584, %34 : vector<2x1xi32>
    %586 = arith.index_cast %583 : i32 to index
    %c0_287 = arith.constant 0 : index
    %587 = vector.load %arg16[%586, %c0_287] : memref<16x128xf32, #tpu.memory_space<vmem>>, vector<2x128xf32>
    %c0_288 = arith.constant 0 : index
    %c0_289 = arith.constant 0 : index
    %588 = vector.load %arg19[%c0_288, %c0_289] : memref<2x32xf32, #tpu.memory_space<vmem>>, vector<2x32xf32>
    %c0_290 = arith.constant 0 : index
    %c0_291 = arith.constant 0 : index
    %589 = vector.load %arg20[%c0_290, %c0_291] : memref<2x32xf32, #tpu.memory_space<vmem>>, vector<2x32xf32>
    %cst_292 = arith.constant dense<0.000000e+00> : vector<2x128xf32>
    %590 = tpu.matmul %588, %33, %cst_292 {dimension_numbers = #tpu.dot_dimension_numbers<[1], [0], [0], [1], [0, 0, 1, 1], [], []>} : vector<2x32xf32>, vector<32x128xf32>, vector<2x128xf32> -> vector<2x128xf32>
    %591 = arith.addf %587, %590 : vector<2x128xf32>
    %592 = vector.extract_strided_slice %591 {offsets = [0, 0], sizes = [2, 32], strides = [1, 1]} : vector<2x128xf32> to vector<2x32xf32>
    %cst_293 = arith.constant 0.000000e+00 : f32
    %593 = vector.broadcast %cst_293 : f32 to vector<2x32xf32>
    %594 = arith.subf %593, %592 : vector<2x32xf32>
    %595 = math.exp %594 : vector<2x32xf32>
    %cst_294 = arith.constant 1.000000e+00 : f32
    %596 = vector.broadcast %cst_294 : f32 to vector<2x32xf32>
    %597 = arith.addf %596, %595 : vector<2x32xf32>
    %cst_295 = arith.constant 1.000000e+00 : f32
    %598 = vector.broadcast %cst_295 : f32 to vector<2x32xf32>
    %599 = arith.divf %598, %597 : vector<2x32xf32>
    %600 = vector.extract_strided_slice %591 {offsets = [0, 32], sizes = [2, 32], strides = [1, 1]} : vector<2x128xf32> to vector<2x32xf32>
    %cst_296 = arith.constant 0.000000e+00 : f32
    %601 = vector.broadcast %cst_296 : f32 to vector<2x32xf32>
    %602 = arith.subf %601, %600 : vector<2x32xf32>
    %603 = math.exp %602 : vector<2x32xf32>
    %cst_297 = arith.constant 1.000000e+00 : f32
    %604 = vector.broadcast %cst_297 : f32 to vector<2x32xf32>
    %605 = arith.addf %604, %603 : vector<2x32xf32>
    %cst_298 = arith.constant 1.000000e+00 : f32
    %606 = vector.broadcast %cst_298 : f32 to vector<2x32xf32>
    %607 = arith.divf %606, %605 : vector<2x32xf32>
    %608 = vector.extract_strided_slice %591 {offsets = [0, 64], sizes = [2, 32], strides = [1, 1]} : vector<2x128xf32> to vector<2x32xf32>
    %609 = math.tanh %608 : vector<2x32xf32>
    %610 = vector.extract_strided_slice %591 {offsets = [0, 96], sizes = [2, 32], strides = [1, 1]} : vector<2x128xf32> to vector<2x32xf32>
    %cst_299 = arith.constant 0.000000e+00 : f32
    %611 = vector.broadcast %cst_299 : f32 to vector<2x32xf32>
    %612 = arith.subf %611, %610 : vector<2x32xf32>
    %613 = math.exp %612 : vector<2x32xf32>
    %cst_300 = arith.constant 1.000000e+00 : f32
    %614 = vector.broadcast %cst_300 : f32 to vector<2x32xf32>
    %615 = arith.addf %614, %613 : vector<2x32xf32>
    %cst_301 = arith.constant 1.000000e+00 : f32
    %616 = vector.broadcast %cst_301 : f32 to vector<2x32xf32>
    %617 = arith.divf %616, %615 : vector<2x32xf32>
    %618 = arith.mulf %607, %589 : vector<2x32xf32>
    %619 = arith.mulf %599, %609 : vector<2x32xf32>
    %620 = arith.addf %618, %619 : vector<2x32xf32>
    %621 = math.tanh %620 : vector<2x32xf32>
    %622 = arith.mulf %617, %621 : vector<2x32xf32>
    %cst_302 = arith.constant 0.000000e+00 : f32
    %623 = vector.shape_cast %585 : vector<2x1xi1> to vector<2x1xi1>
    %624 = vector.broadcast %623 : vector<2x1xi1> to vector<2x32xi1>
    %625 = vector.broadcast %cst_302 : f32 to vector<2x32xf32>
    %626 = arith.select %624, %622, %625 : vector<2x32xi1>, vector<2x32xf32>
    %c0_303 = arith.constant 0 : index
    %c0_304 = arith.constant 0 : index
    %627 = vector.load %arg19[%c0_303, %c0_304] : memref<2x32xf32, #tpu.memory_space<vmem>>, vector<2x32xf32>
    %628 = vector.shape_cast %585 : vector<2x1xi1> to vector<2x1xi1>
    %629 = vector.broadcast %628 : vector<2x1xi1> to vector<2x32xi1>
    %630 = arith.select %629, %622, %627 : vector<2x32xi1>, vector<2x32xf32>
    %c0_305 = arith.constant 0 : index
    %c0_306 = arith.constant 0 : index
    %631 = vector.load %arg19[%c0_305, %c0_306] : memref<2x32xf32, #tpu.memory_space<vmem>>, vector<2x32xf32>
    tpu.vector_store %arg19[%c0_305, %c0_306], %630 {strides = array<i32>} : memref<2x32xf32, #tpu.memory_space<vmem>>, vector<2x32xf32>,
    %c0_307 = arith.constant 0 : index
    %c0_308 = arith.constant 0 : index
    %632 = vector.load %arg20[%c0_307, %c0_308] : memref<2x32xf32, #tpu.memory_space<vmem>>, vector<2x32xf32>
    %633 = vector.shape_cast %585 : vector<2x1xi1> to vector<2x1xi1>
    %634 = vector.broadcast %633 : vector<2x1xi1> to vector<2x32xi1>
    %635 = arith.select %634, %620, %632 : vector<2x32xi1>, vector<2x32xf32>
    %c0_309 = arith.constant 0 : index
    %c0_310 = arith.constant 0 : index
    %636 = vector.load %arg20[%c0_309, %c0_310] : memref<2x32xf32, #tpu.memory_space<vmem>>, vector<2x32xf32>
    tpu.vector_store %arg20[%c0_309, %c0_310], %635 {strides = array<i32>} : memref<2x32xf32, #tpu.memory_space<vmem>>, vector<2x32xf32>,
    %637 = vector.broadcast %37 : vector<1x32xf32> to vector<2x32xf32>
    %638 = arith.mulf %626, %637 : vector<2x32xf32>
    %cst_311 = arith.constant dense<0.000000e+00> : vector<2xf32>
    %639 = vector.multi_reduction <add>, %638, %cst_311 [1] : vector<2x32xf32> to vector<2xf32>
    %640 = vector.shape_cast %639 : vector<2xf32> to vector<2x1xf32>
    %641 = arith.index_cast %583 : i32 to index
    %c1_312 = arith.constant 1 : index
    %642 = vector.load %arg21[%641, %c1_312] : memref<16x2xf32, #tpu.memory_space<vmem>>, vector<2x1xf32>
    tpu.vector_store %arg21[%641, %c1_312], %640 {strides = array<i32>} : memref<16x2xf32, #tpu.memory_space<vmem>>, vector<2x1xf32>,
    %c5_i32 = arith.constant 5 : i32
    %c2_i32_313 = arith.constant 2 : i32
    %643 = arith.muli %c5_i32, %c2_i32_313 : i32
    %644 = vector.broadcast %c5_i32 : i32 to vector<2x1xi32>
    %645 = arith.cmpi slt, %644, %34 : vector<2x1xi32>
    %646 = arith.index_cast %643 : i32 to index
    %c0_314 = arith.constant 0 : index
    %647 = vector.load %arg15[%646, %c0_314] : memref<16x128xf32, #tpu.memory_space<vmem>>, vector<2x128xf32>
    %c0_315 = arith.constant 0 : index
    %c0_316 = arith.constant 0 : index
    %648 = vector.load %arg17[%c0_315, %c0_316] : memref<2x32xf32, #tpu.memory_space<vmem>>, vector<2x32xf32>
    %c0_317 = arith.constant 0 : index
    %c0_318 = arith.constant 0 : index
    %649 = vector.load %arg18[%c0_317, %c0_318] : memref<2x32xf32, #tpu.memory_space<vmem>>, vector<2x32xf32>
    %cst_319 = arith.constant dense<0.000000e+00> : vector<2x128xf32>
    %650 = tpu.matmul %648, %32, %cst_319 {dimension_numbers = #tpu.dot_dimension_numbers<[1], [0], [0], [1], [0, 0, 1, 1], [], []>} : vector<2x32xf32>, vector<32x128xf32>, vector<2x128xf32> -> vector<2x128xf32>
    %651 = arith.addf %647, %650 : vector<2x128xf32>
    %652 = vector.extract_strided_slice %651 {offsets = [0, 0], sizes = [2, 32], strides = [1, 1]} : vector<2x128xf32> to vector<2x32xf32>
    %cst_320 = arith.constant 0.000000e+00 : f32
    %653 = vector.broadcast %cst_320 : f32 to vector<2x32xf32>
    %654 = arith.subf %653, %652 : vector<2x32xf32>
    %655 = math.exp %654 : vector<2x32xf32>
    %cst_321 = arith.constant 1.000000e+00 : f32
    %656 = vector.broadcast %cst_321 : f32 to vector<2x32xf32>
    %657 = arith.addf %656, %655 : vector<2x32xf32>
    %cst_322 = arith.constant 1.000000e+00 : f32
    %658 = vector.broadcast %cst_322 : f32 to vector<2x32xf32>
    %659 = arith.divf %658, %657 : vector<2x32xf32>
    %660 = vector.extract_strided_slice %651 {offsets = [0, 32], sizes = [2, 32], strides = [1, 1]} : vector<2x128xf32> to vector<2x32xf32>
    %cst_323 = arith.constant 0.000000e+00 : f32
    %661 = vector.broadcast %cst_323 : f32 to vector<2x32xf32>
    %662 = arith.subf %661, %660 : vector<2x32xf32>
    %663 = math.exp %662 : vector<2x32xf32>
    %cst_324 = arith.constant 1.000000e+00 : f32
    %664 = vector.broadcast %cst_324 : f32 to vector<2x32xf32>
    %665 = arith.addf %664, %663 : vector<2x32xf32>
    %cst_325 = arith.constant 1.000000e+00 : f32
    %666 = vector.broadcast %cst_325 : f32 to vector<2x32xf32>
    %667 = arith.divf %666, %665 : vector<2x32xf32>
    %668 = vector.extract_strided_slice %651 {offsets = [0, 64], sizes = [2, 32], strides = [1, 1]} : vector<2x128xf32> to vector<2x32xf32>
    %669 = math.tanh %668 : vector<2x32xf32>
    %670 = vector.extract_strided_slice %651 {offsets = [0, 96], sizes = [2, 32], strides = [1, 1]} : vector<2x128xf32> to vector<2x32xf32>
    %cst_326 = arith.constant 0.000000e+00 : f32
    %671 = vector.broadcast %cst_326 : f32 to vector<2x32xf32>
    %672 = arith.subf %671, %670 : vector<2x32xf32>
    %673 = math.exp %672 : vector<2x32xf32>
    %cst_327 = arith.constant 1.000000e+00 : f32
    %674 = vector.broadcast %cst_327 : f32 to vector<2x32xf32>
    %675 = arith.addf %674, %673 : vector<2x32xf32>
    %cst_328 = arith.constant 1.000000e+00 : f32
    %676 = vector.broadcast %cst_328 : f32 to vector<2x32xf32>
    %677 = arith.divf %676, %675 : vector<2x32xf32>
    %678 = arith.mulf %667, %649 : vector<2x32xf32>
    %679 = arith.mulf %659, %669 : vector<2x32xf32>
    %680 = arith.addf %678, %679 : vector<2x32xf32>
    %681 = math.tanh %680 : vector<2x32xf32>
    %682 = arith.mulf %677, %681 : vector<2x32xf32>
    %cst_329 = arith.constant 0.000000e+00 : f32
    %683 = vector.shape_cast %645 : vector<2x1xi1> to vector<2x1xi1>
    %684 = vector.broadcast %683 : vector<2x1xi1> to vector<2x32xi1>
    %685 = vector.broadcast %cst_329 : f32 to vector<2x32xf32>
    %686 = arith.select %684, %682, %685 : vector<2x32xi1>, vector<2x32xf32>
    %c0_330 = arith.constant 0 : index
    %c0_331 = arith.constant 0 : index
    %687 = vector.load %arg17[%c0_330, %c0_331] : memref<2x32xf32, #tpu.memory_space<vmem>>, vector<2x32xf32>
    %688 = vector.shape_cast %645 : vector<2x1xi1> to vector<2x1xi1>
    %689 = vector.broadcast %688 : vector<2x1xi1> to vector<2x32xi1>
    %690 = arith.select %689, %682, %687 : vector<2x32xi1>, vector<2x32xf32>
    %c0_332 = arith.constant 0 : index
    %c0_333 = arith.constant 0 : index
    %691 = vector.load %arg17[%c0_332, %c0_333] : memref<2x32xf32, #tpu.memory_space<vmem>>, vector<2x32xf32>
    tpu.vector_store %arg17[%c0_332, %c0_333], %690 {strides = array<i32>} : memref<2x32xf32, #tpu.memory_space<vmem>>, vector<2x32xf32>,
    %c0_334 = arith.constant 0 : index
    %c0_335 = arith.constant 0 : index
    %692 = vector.load %arg18[%c0_334, %c0_335] : memref<2x32xf32, #tpu.memory_space<vmem>>, vector<2x32xf32>
    %693 = vector.shape_cast %645 : vector<2x1xi1> to vector<2x1xi1>
    %694 = vector.broadcast %693 : vector<2x1xi1> to vector<2x32xi1>
    %695 = arith.select %694, %680, %692 : vector<2x32xi1>, vector<2x32xf32>
    %c0_336 = arith.constant 0 : index
    %c0_337 = arith.constant 0 : index
    %696 = vector.load %arg18[%c0_336, %c0_337] : memref<2x32xf32, #tpu.memory_space<vmem>>, vector<2x32xf32>
    tpu.vector_store %arg18[%c0_336, %c0_337], %695 {strides = array<i32>} : memref<2x32xf32, #tpu.memory_space<vmem>>, vector<2x32xf32>,
    %697 = vector.broadcast %36 : vector<1x32xf32> to vector<2x32xf32>
    %698 = arith.mulf %686, %697 : vector<2x32xf32>
    %cst_338 = arith.constant dense<0.000000e+00> : vector<2xf32>
    %699 = vector.multi_reduction <add>, %698, %cst_338 [1] : vector<2x32xf32> to vector<2xf32>
    %700 = vector.shape_cast %699 : vector<2xf32> to vector<2x1xf32>
    %701 = arith.index_cast %643 : i32 to index
    %c0_339 = arith.constant 0 : index
    %702 = vector.load %arg21[%701, %c0_339] : memref<16x2xf32, #tpu.memory_space<vmem>>, vector<2x1xf32>
    tpu.vector_store %arg21[%701, %c0_339], %700 {strides = array<i32>} : memref<16x2xf32, #tpu.memory_space<vmem>>, vector<2x1xf32>,
    %c7_i32_340 = arith.constant 7 : i32
    %703 = arith.subi %c7_i32_340, %c5_i32 : i32
    %c2_i32_341 = arith.constant 2 : i32
    %704 = arith.muli %703, %c2_i32_341 : i32
    %705 = vector.broadcast %703 : i32 to vector<2x1xi32>
    %706 = arith.cmpi slt, %705, %34 : vector<2x1xi32>
    %707 = arith.index_cast %704 : i32 to index
    %c0_342 = arith.constant 0 : index
    %708 = vector.load %arg16[%707, %c0_342] : memref<16x128xf32, #tpu.memory_space<vmem>>, vector<2x128xf32>
    %c0_343 = arith.constant 0 : index
    %c0_344 = arith.constant 0 : index
    %709 = vector.load %arg19[%c0_343, %c0_344] : memref<2x32xf32, #tpu.memory_space<vmem>>, vector<2x32xf32>
    %c0_345 = arith.constant 0 : index
    %c0_346 = arith.constant 0 : index
    %710 = vector.load %arg20[%c0_345, %c0_346] : memref<2x32xf32, #tpu.memory_space<vmem>>, vector<2x32xf32>
    %cst_347 = arith.constant dense<0.000000e+00> : vector<2x128xf32>
    %711 = tpu.matmul %709, %33, %cst_347 {dimension_numbers = #tpu.dot_dimension_numbers<[1], [0], [0], [1], [0, 0, 1, 1], [], []>} : vector<2x32xf32>, vector<32x128xf32>, vector<2x128xf32> -> vector<2x128xf32>
    %712 = arith.addf %708, %711 : vector<2x128xf32>
    %713 = vector.extract_strided_slice %712 {offsets = [0, 0], sizes = [2, 32], strides = [1, 1]} : vector<2x128xf32> to vector<2x32xf32>
    %cst_348 = arith.constant 0.000000e+00 : f32
    %714 = vector.broadcast %cst_348 : f32 to vector<2x32xf32>
    %715 = arith.subf %714, %713 : vector<2x32xf32>
    %716 = math.exp %715 : vector<2x32xf32>
    %cst_349 = arith.constant 1.000000e+00 : f32
    %717 = vector.broadcast %cst_349 : f32 to vector<2x32xf32>
    %718 = arith.addf %717, %716 : vector<2x32xf32>
    %cst_350 = arith.constant 1.000000e+00 : f32
    %719 = vector.broadcast %cst_350 : f32 to vector<2x32xf32>
    %720 = arith.divf %719, %718 : vector<2x32xf32>
    %721 = vector.extract_strided_slice %712 {offsets = [0, 32], sizes = [2, 32], strides = [1, 1]} : vector<2x128xf32> to vector<2x32xf32>
    %cst_351 = arith.constant 0.000000e+00 : f32
    %722 = vector.broadcast %cst_351 : f32 to vector<2x32xf32>
    %723 = arith.subf %722, %721 : vector<2x32xf32>
    %724 = math.exp %723 : vector<2x32xf32>
    %cst_352 = arith.constant 1.000000e+00 : f32
    %725 = vector.broadcast %cst_352 : f32 to vector<2x32xf32>
    %726 = arith.addf %725, %724 : vector<2x32xf32>
    %cst_353 = arith.constant 1.000000e+00 : f32
    %727 = vector.broadcast %cst_353 : f32 to vector<2x32xf32>
    %728 = arith.divf %727, %726 : vector<2x32xf32>
    %729 = vector.extract_strided_slice %712 {offsets = [0, 64], sizes = [2, 32], strides = [1, 1]} : vector<2x128xf32> to vector<2x32xf32>
    %730 = math.tanh %729 : vector<2x32xf32>
    %731 = vector.extract_strided_slice %712 {offsets = [0, 96], sizes = [2, 32], strides = [1, 1]} : vector<2x128xf32> to vector<2x32xf32>
    %cst_354 = arith.constant 0.000000e+00 : f32
    %732 = vector.broadcast %cst_354 : f32 to vector<2x32xf32>
    %733 = arith.subf %732, %731 : vector<2x32xf32>
    %734 = math.exp %733 : vector<2x32xf32>
    %cst_355 = arith.constant 1.000000e+00 : f32
    %735 = vector.broadcast %cst_355 : f32 to vector<2x32xf32>
    %736 = arith.addf %735, %734 : vector<2x32xf32>
    %cst_356 = arith.constant 1.000000e+00 : f32
    %737 = vector.broadcast %cst_356 : f32 to vector<2x32xf32>
    %738 = arith.divf %737, %736 : vector<2x32xf32>
    %739 = arith.mulf %728, %710 : vector<2x32xf32>
    %740 = arith.mulf %720, %730 : vector<2x32xf32>
    %741 = arith.addf %739, %740 : vector<2x32xf32>
    %742 = math.tanh %741 : vector<2x32xf32>
    %743 = arith.mulf %738, %742 : vector<2x32xf32>
    %cst_357 = arith.constant 0.000000e+00 : f32
    %744 = vector.shape_cast %706 : vector<2x1xi1> to vector<2x1xi1>
    %745 = vector.broadcast %744 : vector<2x1xi1> to vector<2x32xi1>
    %746 = vector.broadcast %cst_357 : f32 to vector<2x32xf32>
    %747 = arith.select %745, %743, %746 : vector<2x32xi1>, vector<2x32xf32>
    %c0_358 = arith.constant 0 : index
    %c0_359 = arith.constant 0 : index
    %748 = vector.load %arg19[%c0_358, %c0_359] : memref<2x32xf32, #tpu.memory_space<vmem>>, vector<2x32xf32>
    %749 = vector.shape_cast %706 : vector<2x1xi1> to vector<2x1xi1>
    %750 = vector.broadcast %749 : vector<2x1xi1> to vector<2x32xi1>
    %751 = arith.select %750, %743, %748 : vector<2x32xi1>, vector<2x32xf32>
    %c0_360 = arith.constant 0 : index
    %c0_361 = arith.constant 0 : index
    %752 = vector.load %arg19[%c0_360, %c0_361] : memref<2x32xf32, #tpu.memory_space<vmem>>, vector<2x32xf32>
    tpu.vector_store %arg19[%c0_360, %c0_361], %751 {strides = array<i32>} : memref<2x32xf32, #tpu.memory_space<vmem>>, vector<2x32xf32>,
    %c0_362 = arith.constant 0 : index
    %c0_363 = arith.constant 0 : index
    %753 = vector.load %arg20[%c0_362, %c0_363] : memref<2x32xf32, #tpu.memory_space<vmem>>, vector<2x32xf32>
    %754 = vector.shape_cast %706 : vector<2x1xi1> to vector<2x1xi1>
    %755 = vector.broadcast %754 : vector<2x1xi1> to vector<2x32xi1>
    %756 = arith.select %755, %741, %753 : vector<2x32xi1>, vector<2x32xf32>
    %c0_364 = arith.constant 0 : index
    %c0_365 = arith.constant 0 : index
    %757 = vector.load %arg20[%c0_364, %c0_365] : memref<2x32xf32, #tpu.memory_space<vmem>>, vector<2x32xf32>
    tpu.vector_store %arg20[%c0_364, %c0_365], %756 {strides = array<i32>} : memref<2x32xf32, #tpu.memory_space<vmem>>, vector<2x32xf32>,
    %758 = vector.broadcast %37 : vector<1x32xf32> to vector<2x32xf32>
    %759 = arith.mulf %747, %758 : vector<2x32xf32>
    %cst_366 = arith.constant dense<0.000000e+00> : vector<2xf32>
    %760 = vector.multi_reduction <add>, %759, %cst_366 [1] : vector<2x32xf32> to vector<2xf32>
    %761 = vector.shape_cast %760 : vector<2xf32> to vector<2x1xf32>
    %762 = arith.index_cast %704 : i32 to index
    %c1_367 = arith.constant 1 : index
    %763 = vector.load %arg21[%762, %c1_367] : memref<16x2xf32, #tpu.memory_space<vmem>>, vector<2x1xf32>
    tpu.vector_store %arg21[%762, %c1_367], %761 {strides = array<i32>} : memref<16x2xf32, #tpu.memory_space<vmem>>, vector<2x1xf32>,
    %c6_i32 = arith.constant 6 : i32
    %c2_i32_368 = arith.constant 2 : i32
    %764 = arith.muli %c6_i32, %c2_i32_368 : i32
    %765 = vector.broadcast %c6_i32 : i32 to vector<2x1xi32>
    %766 = arith.cmpi slt, %765, %34 : vector<2x1xi32>
    %767 = arith.index_cast %764 : i32 to index
    %c0_369 = arith.constant 0 : index
    %768 = vector.load %arg15[%767, %c0_369] : memref<16x128xf32, #tpu.memory_space<vmem>>, vector<2x128xf32>
    %c0_370 = arith.constant 0 : index
    %c0_371 = arith.constant 0 : index
    %769 = vector.load %arg17[%c0_370, %c0_371] : memref<2x32xf32, #tpu.memory_space<vmem>>, vector<2x32xf32>
    %c0_372 = arith.constant 0 : index
    %c0_373 = arith.constant 0 : index
    %770 = vector.load %arg18[%c0_372, %c0_373] : memref<2x32xf32, #tpu.memory_space<vmem>>, vector<2x32xf32>
    %cst_374 = arith.constant dense<0.000000e+00> : vector<2x128xf32>
    %771 = tpu.matmul %769, %32, %cst_374 {dimension_numbers = #tpu.dot_dimension_numbers<[1], [0], [0], [1], [0, 0, 1, 1], [], []>} : vector<2x32xf32>, vector<32x128xf32>, vector<2x128xf32> -> vector<2x128xf32>
    %772 = arith.addf %768, %771 : vector<2x128xf32>
    %773 = vector.extract_strided_slice %772 {offsets = [0, 0], sizes = [2, 32], strides = [1, 1]} : vector<2x128xf32> to vector<2x32xf32>
    %cst_375 = arith.constant 0.000000e+00 : f32
    %774 = vector.broadcast %cst_375 : f32 to vector<2x32xf32>
    %775 = arith.subf %774, %773 : vector<2x32xf32>
    %776 = math.exp %775 : vector<2x32xf32>
    %cst_376 = arith.constant 1.000000e+00 : f32
    %777 = vector.broadcast %cst_376 : f32 to vector<2x32xf32>
    %778 = arith.addf %777, %776 : vector<2x32xf32>
    %cst_377 = arith.constant 1.000000e+00 : f32
    %779 = vector.broadcast %cst_377 : f32 to vector<2x32xf32>
    %780 = arith.divf %779, %778 : vector<2x32xf32>
    %781 = vector.extract_strided_slice %772 {offsets = [0, 32], sizes = [2, 32], strides = [1, 1]} : vector<2x128xf32> to vector<2x32xf32>
    %cst_378 = arith.constant 0.000000e+00 : f32
    %782 = vector.broadcast %cst_378 : f32 to vector<2x32xf32>
    %783 = arith.subf %782, %781 : vector<2x32xf32>
    %784 = math.exp %783 : vector<2x32xf32>
    %cst_379 = arith.constant 1.000000e+00 : f32
    %785 = vector.broadcast %cst_379 : f32 to vector<2x32xf32>
    %786 = arith.addf %785, %784 : vector<2x32xf32>
    %cst_380 = arith.constant 1.000000e+00 : f32
    %787 = vector.broadcast %cst_380 : f32 to vector<2x32xf32>
    %788 = arith.divf %787, %786 : vector<2x32xf32>
    %789 = vector.extract_strided_slice %772 {offsets = [0, 64], sizes = [2, 32], strides = [1, 1]} : vector<2x128xf32> to vector<2x32xf32>
    %790 = math.tanh %789 : vector<2x32xf32>
    %791 = vector.extract_strided_slice %772 {offsets = [0, 96], sizes = [2, 32], strides = [1, 1]} : vector<2x128xf32> to vector<2x32xf32>
    %cst_381 = arith.constant 0.000000e+00 : f32
    %792 = vector.broadcast %cst_381 : f32 to vector<2x32xf32>
    %793 = arith.subf %792, %791 : vector<2x32xf32>
    %794 = math.exp %793 : vector<2x32xf32>
    %cst_382 = arith.constant 1.000000e+00 : f32
    %795 = vector.broadcast %cst_382 : f32 to vector<2x32xf32>
    %796 = arith.addf %795, %794 : vector<2x32xf32>
    %cst_383 = arith.constant 1.000000e+00 : f32
    %797 = vector.broadcast %cst_383 : f32 to vector<2x32xf32>
    %798 = arith.divf %797, %796 : vector<2x32xf32>
    %799 = arith.mulf %788, %770 : vector<2x32xf32>
    %800 = arith.mulf %780, %790 : vector<2x32xf32>
    %801 = arith.addf %799, %800 : vector<2x32xf32>
    %802 = math.tanh %801 : vector<2x32xf32>
    %803 = arith.mulf %798, %802 : vector<2x32xf32>
    %cst_384 = arith.constant 0.000000e+00 : f32
    %804 = vector.shape_cast %766 : vector<2x1xi1> to vector<2x1xi1>
    %805 = vector.broadcast %804 : vector<2x1xi1> to vector<2x32xi1>
    %806 = vector.broadcast %cst_384 : f32 to vector<2x32xf32>
    %807 = arith.select %805, %803, %806 : vector<2x32xi1>, vector<2x32xf32>
    %c0_385 = arith.constant 0 : index
    %c0_386 = arith.constant 0 : index
    %808 = vector.load %arg17[%c0_385, %c0_386] : memref<2x32xf32, #tpu.memory_space<vmem>>, vector<2x32xf32>
    %809 = vector.shape_cast %766 : vector<2x1xi1> to vector<2x1xi1>
    %810 = vector.broadcast %809 : vector<2x1xi1> to vector<2x32xi1>
    %811 = arith.select %810, %803, %808 : vector<2x32xi1>, vector<2x32xf32>
    %c0_387 = arith.constant 0 : index
    %c0_388 = arith.constant 0 : index
    %812 = vector.load %arg17[%c0_387, %c0_388] : memref<2x32xf32, #tpu.memory_space<vmem>>, vector<2x32xf32>
    tpu.vector_store %arg17[%c0_387, %c0_388], %811 {strides = array<i32>} : memref<2x32xf32, #tpu.memory_space<vmem>>, vector<2x32xf32>,
    %c0_389 = arith.constant 0 : index
    %c0_390 = arith.constant 0 : index
    %813 = vector.load %arg18[%c0_389, %c0_390] : memref<2x32xf32, #tpu.memory_space<vmem>>, vector<2x32xf32>
    %814 = vector.shape_cast %766 : vector<2x1xi1> to vector<2x1xi1>
    %815 = vector.broadcast %814 : vector<2x1xi1> to vector<2x32xi1>
    %816 = arith.select %815, %801, %813 : vector<2x32xi1>, vector<2x32xf32>
    %c0_391 = arith.constant 0 : index
    %c0_392 = arith.constant 0 : index
    %817 = vector.load %arg18[%c0_391, %c0_392] : memref<2x32xf32, #tpu.memory_space<vmem>>, vector<2x32xf32>
    tpu.vector_store %arg18[%c0_391, %c0_392], %816 {strides = array<i32>} : memref<2x32xf32, #tpu.memory_space<vmem>>, vector<2x32xf32>,
    %818 = vector.broadcast %36 : vector<1x32xf32> to vector<2x32xf32>
    %819 = arith.mulf %807, %818 : vector<2x32xf32>
    %cst_393 = arith.constant dense<0.000000e+00> : vector<2xf32>
    %820 = vector.multi_reduction <add>, %819, %cst_393 [1] : vector<2x32xf32> to vector<2xf32>
    %821 = vector.shape_cast %820 : vector<2xf32> to vector<2x1xf32>
    %822 = arith.index_cast %764 : i32 to index
    %c0_394 = arith.constant 0 : index
    %823 = vector.load %arg21[%822, %c0_394] : memref<16x2xf32, #tpu.memory_space<vmem>>, vector<2x1xf32>
    tpu.vector_store %arg21[%822, %c0_394], %821 {strides = array<i32>} : memref<16x2xf32, #tpu.memory_space<vmem>>, vector<2x1xf32>,
    %c7_i32_395 = arith.constant 7 : i32
    %824 = arith.subi %c7_i32_395, %c6_i32 : i32
    %c2_i32_396 = arith.constant 2 : i32
    %825 = arith.muli %824, %c2_i32_396 : i32
    %826 = vector.broadcast %824 : i32 to vector<2x1xi32>
    %827 = arith.cmpi slt, %826, %34 : vector<2x1xi32>
    %828 = arith.index_cast %825 : i32 to index
    %c0_397 = arith.constant 0 : index
    %829 = vector.load %arg16[%828, %c0_397] : memref<16x128xf32, #tpu.memory_space<vmem>>, vector<2x128xf32>
    %c0_398 = arith.constant 0 : index
    %c0_399 = arith.constant 0 : index
    %830 = vector.load %arg19[%c0_398, %c0_399] : memref<2x32xf32, #tpu.memory_space<vmem>>, vector<2x32xf32>
    %c0_400 = arith.constant 0 : index
    %c0_401 = arith.constant 0 : index
    %831 = vector.load %arg20[%c0_400, %c0_401] : memref<2x32xf32, #tpu.memory_space<vmem>>, vector<2x32xf32>
    %cst_402 = arith.constant dense<0.000000e+00> : vector<2x128xf32>
    %832 = tpu.matmul %830, %33, %cst_402 {dimension_numbers = #tpu.dot_dimension_numbers<[1], [0], [0], [1], [0, 0, 1, 1], [], []>} : vector<2x32xf32>, vector<32x128xf32>, vector<2x128xf32> -> vector<2x128xf32>
    %833 = arith.addf %829, %832 : vector<2x128xf32>
    %834 = vector.extract_strided_slice %833 {offsets = [0, 0], sizes = [2, 32], strides = [1, 1]} : vector<2x128xf32> to vector<2x32xf32>
    %cst_403 = arith.constant 0.000000e+00 : f32
    %835 = vector.broadcast %cst_403 : f32 to vector<2x32xf32>
    %836 = arith.subf %835, %834 : vector<2x32xf32>
    %837 = math.exp %836 : vector<2x32xf32>
    %cst_404 = arith.constant 1.000000e+00 : f32
    %838 = vector.broadcast %cst_404 : f32 to vector<2x32xf32>
    %839 = arith.addf %838, %837 : vector<2x32xf32>
    %cst_405 = arith.constant 1.000000e+00 : f32
    %840 = vector.broadcast %cst_405 : f32 to vector<2x32xf32>
    %841 = arith.divf %840, %839 : vector<2x32xf32>
    %842 = vector.extract_strided_slice %833 {offsets = [0, 32], sizes = [2, 32], strides = [1, 1]} : vector<2x128xf32> to vector<2x32xf32>
    %cst_406 = arith.constant 0.000000e+00 : f32
    %843 = vector.broadcast %cst_406 : f32 to vector<2x32xf32>
    %844 = arith.subf %843, %842 : vector<2x32xf32>
    %845 = math.exp %844 : vector<2x32xf32>
    %cst_407 = arith.constant 1.000000e+00 : f32
    %846 = vector.broadcast %cst_407 : f32 to vector<2x32xf32>
    %847 = arith.addf %846, %845 : vector<2x32xf32>
    %cst_408 = arith.constant 1.000000e+00 : f32
    %848 = vector.broadcast %cst_408 : f32 to vector<2x32xf32>
    %849 = arith.divf %848, %847 : vector<2x32xf32>
    %850 = vector.extract_strided_slice %833 {offsets = [0, 64], sizes = [2, 32], strides = [1, 1]} : vector<2x128xf32> to vector<2x32xf32>
    %851 = math.tanh %850 : vector<2x32xf32>
    %852 = vector.extract_strided_slice %833 {offsets = [0, 96], sizes = [2, 32], strides = [1, 1]} : vector<2x128xf32> to vector<2x32xf32>
    %cst_409 = arith.constant 0.000000e+00 : f32
    %853 = vector.broadcast %cst_409 : f32 to vector<2x32xf32>
    %854 = arith.subf %853, %852 : vector<2x32xf32>
    %855 = math.exp %854 : vector<2x32xf32>
    %cst_410 = arith.constant 1.000000e+00 : f32
    %856 = vector.broadcast %cst_410 : f32 to vector<2x32xf32>
    %857 = arith.addf %856, %855 : vector<2x32xf32>
    %cst_411 = arith.constant 1.000000e+00 : f32
    %858 = vector.broadcast %cst_411 : f32 to vector<2x32xf32>
    %859 = arith.divf %858, %857 : vector<2x32xf32>
    %860 = arith.mulf %849, %831 : vector<2x32xf32>
    %861 = arith.mulf %841, %851 : vector<2x32xf32>
    %862 = arith.addf %860, %861 : vector<2x32xf32>
    %863 = math.tanh %862 : vector<2x32xf32>
    %864 = arith.mulf %859, %863 : vector<2x32xf32>
    %cst_412 = arith.constant 0.000000e+00 : f32
    %865 = vector.shape_cast %827 : vector<2x1xi1> to vector<2x1xi1>
    %866 = vector.broadcast %865 : vector<2x1xi1> to vector<2x32xi1>
    %867 = vector.broadcast %cst_412 : f32 to vector<2x32xf32>
    %868 = arith.select %866, %864, %867 : vector<2x32xi1>, vector<2x32xf32>
    %c0_413 = arith.constant 0 : index
    %c0_414 = arith.constant 0 : index
    %869 = vector.load %arg19[%c0_413, %c0_414] : memref<2x32xf32, #tpu.memory_space<vmem>>, vector<2x32xf32>
    %870 = vector.shape_cast %827 : vector<2x1xi1> to vector<2x1xi1>
    %871 = vector.broadcast %870 : vector<2x1xi1> to vector<2x32xi1>
    %872 = arith.select %871, %864, %869 : vector<2x32xi1>, vector<2x32xf32>
    %c0_415 = arith.constant 0 : index
    %c0_416 = arith.constant 0 : index
    %873 = vector.load %arg19[%c0_415, %c0_416] : memref<2x32xf32, #tpu.memory_space<vmem>>, vector<2x32xf32>
    tpu.vector_store %arg19[%c0_415, %c0_416], %872 {strides = array<i32>} : memref<2x32xf32, #tpu.memory_space<vmem>>, vector<2x32xf32>,
    %c0_417 = arith.constant 0 : index
    %c0_418 = arith.constant 0 : index
    %874 = vector.load %arg20[%c0_417, %c0_418] : memref<2x32xf32, #tpu.memory_space<vmem>>, vector<2x32xf32>
    %875 = vector.shape_cast %827 : vector<2x1xi1> to vector<2x1xi1>
    %876 = vector.broadcast %875 : vector<2x1xi1> to vector<2x32xi1>
    %877 = arith.select %876, %862, %874 : vector<2x32xi1>, vector<2x32xf32>
    %c0_419 = arith.constant 0 : index
    %c0_420 = arith.constant 0 : index
    %878 = vector.load %arg20[%c0_419, %c0_420] : memref<2x32xf32, #tpu.memory_space<vmem>>, vector<2x32xf32>
    tpu.vector_store %arg20[%c0_419, %c0_420], %877 {strides = array<i32>} : memref<2x32xf32, #tpu.memory_space<vmem>>, vector<2x32xf32>,
    %879 = vector.broadcast %37 : vector<1x32xf32> to vector<2x32xf32>
    %880 = arith.mulf %868, %879 : vector<2x32xf32>
    %cst_421 = arith.constant dense<0.000000e+00> : vector<2xf32>
    %881 = vector.multi_reduction <add>, %880, %cst_421 [1] : vector<2x32xf32> to vector<2xf32>
    %882 = vector.shape_cast %881 : vector<2xf32> to vector<2x1xf32>
    %883 = arith.index_cast %825 : i32 to index
    %c1_422 = arith.constant 1 : index
    %884 = vector.load %arg21[%883, %c1_422] : memref<16x2xf32, #tpu.memory_space<vmem>>, vector<2x1xf32>
    tpu.vector_store %arg21[%883, %c1_422], %882 {strides = array<i32>} : memref<16x2xf32, #tpu.memory_space<vmem>>, vector<2x1xf32>,
    %c7_i32_423 = arith.constant 7 : i32
    %c2_i32_424 = arith.constant 2 : i32
    %885 = arith.muli %c7_i32_423, %c2_i32_424 : i32
    %886 = vector.broadcast %c7_i32_423 : i32 to vector<2x1xi32>
    %887 = arith.cmpi slt, %886, %34 : vector<2x1xi32>
    %888 = arith.index_cast %885 : i32 to index
    %c0_425 = arith.constant 0 : index
    %889 = vector.load %arg15[%888, %c0_425] : memref<16x128xf32, #tpu.memory_space<vmem>>, vector<2x128xf32>
    %c0_426 = arith.constant 0 : index
    %c0_427 = arith.constant 0 : index
    %890 = vector.load %arg17[%c0_426, %c0_427] : memref<2x32xf32, #tpu.memory_space<vmem>>, vector<2x32xf32>
    %c0_428 = arith.constant 0 : index
    %c0_429 = arith.constant 0 : index
    %891 = vector.load %arg18[%c0_428, %c0_429] : memref<2x32xf32, #tpu.memory_space<vmem>>, vector<2x32xf32>
    %cst_430 = arith.constant dense<0.000000e+00> : vector<2x128xf32>
    %892 = tpu.matmul %890, %32, %cst_430 {dimension_numbers = #tpu.dot_dimension_numbers<[1], [0], [0], [1], [0, 0, 1, 1], [], []>} : vector<2x32xf32>, vector<32x128xf32>, vector<2x128xf32> -> vector<2x128xf32>
    %893 = arith.addf %889, %892 : vector<2x128xf32>
    %894 = vector.extract_strided_slice %893 {offsets = [0, 0], sizes = [2, 32], strides = [1, 1]} : vector<2x128xf32> to vector<2x32xf32>
    %cst_431 = arith.constant 0.000000e+00 : f32
    %895 = vector.broadcast %cst_431 : f32 to vector<2x32xf32>
    %896 = arith.subf %895, %894 : vector<2x32xf32>
    %897 = math.exp %896 : vector<2x32xf32>
    %cst_432 = arith.constant 1.000000e+00 : f32
    %898 = vector.broadcast %cst_432 : f32 to vector<2x32xf32>
    %899 = arith.addf %898, %897 : vector<2x32xf32>
    %cst_433 = arith.constant 1.000000e+00 : f32
    %900 = vector.broadcast %cst_433 : f32 to vector<2x32xf32>
    %901 = arith.divf %900, %899 : vector<2x32xf32>
    %902 = vector.extract_strided_slice %893 {offsets = [0, 32], sizes = [2, 32], strides = [1, 1]} : vector<2x128xf32> to vector<2x32xf32>
    %cst_434 = arith.constant 0.000000e+00 : f32
    %903 = vector.broadcast %cst_434 : f32 to vector<2x32xf32>
    %904 = arith.subf %903, %902 : vector<2x32xf32>
    %905 = math.exp %904 : vector<2x32xf32>
    %cst_435 = arith.constant 1.000000e+00 : f32
    %906 = vector.broadcast %cst_435 : f32 to vector<2x32xf32>
    %907 = arith.addf %906, %905 : vector<2x32xf32>
    %cst_436 = arith.constant 1.000000e+00 : f32
    %908 = vector.broadcast %cst_436 : f32 to vector<2x32xf32>
    %909 = arith.divf %908, %907 : vector<2x32xf32>
    %910 = vector.extract_strided_slice %893 {offsets = [0, 64], sizes = [2, 32], strides = [1, 1]} : vector<2x128xf32> to vector<2x32xf32>
    %911 = math.tanh %910 : vector<2x32xf32>
    %912 = vector.extract_strided_slice %893 {offsets = [0, 96], sizes = [2, 32], strides = [1, 1]} : vector<2x128xf32> to vector<2x32xf32>
    %cst_437 = arith.constant 0.000000e+00 : f32
    %913 = vector.broadcast %cst_437 : f32 to vector<2x32xf32>
    %914 = arith.subf %913, %912 : vector<2x32xf32>
    %915 = math.exp %914 : vector<2x32xf32>
    %cst_438 = arith.constant 1.000000e+00 : f32
    %916 = vector.broadcast %cst_438 : f32 to vector<2x32xf32>
    %917 = arith.addf %916, %915 : vector<2x32xf32>
    %cst_439 = arith.constant 1.000000e+00 : f32
    %918 = vector.broadcast %cst_439 : f32 to vector<2x32xf32>
    %919 = arith.divf %918, %917 : vector<2x32xf32>
    %920 = arith.mulf %909, %891 : vector<2x32xf32>
    %921 = arith.mulf %901, %911 : vector<2x32xf32>
    %922 = arith.addf %920, %921 : vector<2x32xf32>
    %923 = math.tanh %922 : vector<2x32xf32>
    %924 = arith.mulf %919, %923 : vector<2x32xf32>
    %cst_440 = arith.constant 0.000000e+00 : f32
    %925 = vector.shape_cast %887 : vector<2x1xi1> to vector<2x1xi1>
    %926 = vector.broadcast %925 : vector<2x1xi1> to vector<2x32xi1>
    %927 = vector.broadcast %cst_440 : f32 to vector<2x32xf32>
    %928 = arith.select %926, %924, %927 : vector<2x32xi1>, vector<2x32xf32>
    %c0_441 = arith.constant 0 : index
    %c0_442 = arith.constant 0 : index
    %929 = vector.load %arg17[%c0_441, %c0_442] : memref<2x32xf32, #tpu.memory_space<vmem>>, vector<2x32xf32>
    %930 = vector.shape_cast %887 : vector<2x1xi1> to vector<2x1xi1>
    %931 = vector.broadcast %930 : vector<2x1xi1> to vector<2x32xi1>
    %932 = arith.select %931, %924, %929 : vector<2x32xi1>, vector<2x32xf32>
    %c0_443 = arith.constant 0 : index
    %c0_444 = arith.constant 0 : index
    %933 = vector.load %arg17[%c0_443, %c0_444] : memref<2x32xf32, #tpu.memory_space<vmem>>, vector<2x32xf32>
    tpu.vector_store %arg17[%c0_443, %c0_444], %932 {strides = array<i32>} : memref<2x32xf32, #tpu.memory_space<vmem>>, vector<2x32xf32>,
    %c0_445 = arith.constant 0 : index
    %c0_446 = arith.constant 0 : index
    %934 = vector.load %arg18[%c0_445, %c0_446] : memref<2x32xf32, #tpu.memory_space<vmem>>, vector<2x32xf32>
    %935 = vector.shape_cast %887 : vector<2x1xi1> to vector<2x1xi1>
    %936 = vector.broadcast %935 : vector<2x1xi1> to vector<2x32xi1>
    %937 = arith.select %936, %922, %934 : vector<2x32xi1>, vector<2x32xf32>
    %c0_447 = arith.constant 0 : index
    %c0_448 = arith.constant 0 : index
    %938 = vector.load %arg18[%c0_447, %c0_448] : memref<2x32xf32, #tpu.memory_space<vmem>>, vector<2x32xf32>
    tpu.vector_store %arg18[%c0_447, %c0_448], %937 {strides = array<i32>} : memref<2x32xf32, #tpu.memory_space<vmem>>, vector<2x32xf32>,
    %939 = vector.broadcast %36 : vector<1x32xf32> to vector<2x32xf32>
    %940 = arith.mulf %928, %939 : vector<2x32xf32>
    %cst_449 = arith.constant dense<0.000000e+00> : vector<2xf32>
    %941 = vector.multi_reduction <add>, %940, %cst_449 [1] : vector<2x32xf32> to vector<2xf32>
    %942 = vector.shape_cast %941 : vector<2xf32> to vector<2x1xf32>
    %943 = arith.index_cast %885 : i32 to index
    %c0_450 = arith.constant 0 : index
    %944 = vector.load %arg21[%943, %c0_450] : memref<16x2xf32, #tpu.memory_space<vmem>>, vector<2x1xf32>
    tpu.vector_store %arg21[%943, %c0_450], %942 {strides = array<i32>} : memref<16x2xf32, #tpu.memory_space<vmem>>, vector<2x1xf32>,
    %c7_i32_451 = arith.constant 7 : i32
    %945 = arith.subi %c7_i32_451, %c7_i32_423 : i32
    %c2_i32_452 = arith.constant 2 : i32
    %946 = arith.muli %945, %c2_i32_452 : i32
    %947 = vector.broadcast %945 : i32 to vector<2x1xi32>
    %948 = arith.cmpi slt, %947, %34 : vector<2x1xi32>
    %949 = arith.index_cast %946 : i32 to index
    %c0_453 = arith.constant 0 : index
    %950 = vector.load %arg16[%949, %c0_453] : memref<16x128xf32, #tpu.memory_space<vmem>>, vector<2x128xf32>
    %c0_454 = arith.constant 0 : index
    %c0_455 = arith.constant 0 : index
    %951 = vector.load %arg19[%c0_454, %c0_455] : memref<2x32xf32, #tpu.memory_space<vmem>>, vector<2x32xf32>
    %c0_456 = arith.constant 0 : index
    %c0_457 = arith.constant 0 : index
    %952 = vector.load %arg20[%c0_456, %c0_457] : memref<2x32xf32, #tpu.memory_space<vmem>>, vector<2x32xf32>
    %cst_458 = arith.constant dense<0.000000e+00> : vector<2x128xf32>
    %953 = tpu.matmul %951, %33, %cst_458 {dimension_numbers = #tpu.dot_dimension_numbers<[1], [0], [0], [1], [0, 0, 1, 1], [], []>} : vector<2x32xf32>, vector<32x128xf32>, vector<2x128xf32> -> vector<2x128xf32>
    %954 = arith.addf %950, %953 : vector<2x128xf32>
    %955 = vector.extract_strided_slice %954 {offsets = [0, 0], sizes = [2, 32], strides = [1, 1]} : vector<2x128xf32> to vector<2x32xf32>
    %cst_459 = arith.constant 0.000000e+00 : f32
    %956 = vector.broadcast %cst_459 : f32 to vector<2x32xf32>
    %957 = arith.subf %956, %955 : vector<2x32xf32>
    %958 = math.exp %957 : vector<2x32xf32>
    %cst_460 = arith.constant 1.000000e+00 : f32
    %959 = vector.broadcast %cst_460 : f32 to vector<2x32xf32>
    %960 = arith.addf %959, %958 : vector<2x32xf32>
    %cst_461 = arith.constant 1.000000e+00 : f32
    %961 = vector.broadcast %cst_461 : f32 to vector<2x32xf32>
    %962 = arith.divf %961, %960 : vector<2x32xf32>
    %963 = vector.extract_strided_slice %954 {offsets = [0, 32], sizes = [2, 32], strides = [1, 1]} : vector<2x128xf32> to vector<2x32xf32>
    %cst_462 = arith.constant 0.000000e+00 : f32
    %964 = vector.broadcast %cst_462 : f32 to vector<2x32xf32>
    %965 = arith.subf %964, %963 : vector<2x32xf32>
    %966 = math.exp %965 : vector<2x32xf32>
    %cst_463 = arith.constant 1.000000e+00 : f32
    %967 = vector.broadcast %cst_463 : f32 to vector<2x32xf32>
    %968 = arith.addf %967, %966 : vector<2x32xf32>
    %cst_464 = arith.constant 1.000000e+00 : f32
    %969 = vector.broadcast %cst_464 : f32 to vector<2x32xf32>
    %970 = arith.divf %969, %968 : vector<2x32xf32>
    %971 = vector.extract_strided_slice %954 {offsets = [0, 64], sizes = [2, 32], strides = [1, 1]} : vector<2x128xf32> to vector<2x32xf32>
    %972 = math.tanh %971 : vector<2x32xf32>
    %973 = vector.extract_strided_slice %954 {offsets = [0, 96], sizes = [2, 32], strides = [1, 1]} : vector<2x128xf32> to vector<2x32xf32>
    %cst_465 = arith.constant 0.000000e+00 : f32
    %974 = vector.broadcast %cst_465 : f32 to vector<2x32xf32>
    %975 = arith.subf %974, %973 : vector<2x32xf32>
    %976 = math.exp %975 : vector<2x32xf32>
    %cst_466 = arith.constant 1.000000e+00 : f32
    %977 = vector.broadcast %cst_466 : f32 to vector<2x32xf32>
    %978 = arith.addf %977, %976 : vector<2x32xf32>
    %cst_467 = arith.constant 1.000000e+00 : f32
    %979 = vector.broadcast %cst_467 : f32 to vector<2x32xf32>
    %980 = arith.divf %979, %978 : vector<2x32xf32>
    %981 = arith.mulf %970, %952 : vector<2x32xf32>
    %982 = arith.mulf %962, %972 : vector<2x32xf32>
    %983 = arith.addf %981, %982 : vector<2x32xf32>
    %984 = math.tanh %983 : vector<2x32xf32>
    %985 = arith.mulf %980, %984 : vector<2x32xf32>
    %cst_468 = arith.constant 0.000000e+00 : f32
    %986 = vector.shape_cast %948 : vector<2x1xi1> to vector<2x1xi1>
    %987 = vector.broadcast %986 : vector<2x1xi1> to vector<2x32xi1>
    %988 = vector.broadcast %cst_468 : f32 to vector<2x32xf32>
    %989 = arith.select %987, %985, %988 : vector<2x32xi1>, vector<2x32xf32>
    %c0_469 = arith.constant 0 : index
    %c0_470 = arith.constant 0 : index
    %990 = vector.load %arg19[%c0_469, %c0_470] : memref<2x32xf32, #tpu.memory_space<vmem>>, vector<2x32xf32>
    %991 = vector.shape_cast %948 : vector<2x1xi1> to vector<2x1xi1>
    %992 = vector.broadcast %991 : vector<2x1xi1> to vector<2x32xi1>
    %993 = arith.select %992, %985, %990 : vector<2x32xi1>, vector<2x32xf32>
    %c0_471 = arith.constant 0 : index
    %c0_472 = arith.constant 0 : index
    %994 = vector.load %arg19[%c0_471, %c0_472] : memref<2x32xf32, #tpu.memory_space<vmem>>, vector<2x32xf32>
    tpu.vector_store %arg19[%c0_471, %c0_472], %993 {strides = array<i32>} : memref<2x32xf32, #tpu.memory_space<vmem>>, vector<2x32xf32>,
    %c0_473 = arith.constant 0 : index
    %c0_474 = arith.constant 0 : index
    %995 = vector.load %arg20[%c0_473, %c0_474] : memref<2x32xf32, #tpu.memory_space<vmem>>, vector<2x32xf32>
    %996 = vector.shape_cast %948 : vector<2x1xi1> to vector<2x1xi1>
    %997 = vector.broadcast %996 : vector<2x1xi1> to vector<2x32xi1>
    %998 = arith.select %997, %983, %995 : vector<2x32xi1>, vector<2x32xf32>
    %c0_475 = arith.constant 0 : index
    %c0_476 = arith.constant 0 : index
    %999 = vector.load %arg20[%c0_475, %c0_476] : memref<2x32xf32, #tpu.memory_space<vmem>>, vector<2x32xf32>
    tpu.vector_store %arg20[%c0_475, %c0_476], %998 {strides = array<i32>} : memref<2x32xf32, #tpu.memory_space<vmem>>, vector<2x32xf32>,
    %1000 = vector.broadcast %37 : vector<1x32xf32> to vector<2x32xf32>
    %1001 = arith.mulf %989, %1000 : vector<2x32xf32>
    %cst_477 = arith.constant dense<0.000000e+00> : vector<2xf32>
    %1002 = vector.multi_reduction <add>, %1001, %cst_477 [1] : vector<2x32xf32> to vector<2xf32>
    %1003 = vector.shape_cast %1002 : vector<2xf32> to vector<2x1xf32>
    %1004 = arith.index_cast %946 : i32 to index
    %c1_478 = arith.constant 1 : index
    %1005 = vector.load %arg21[%1004, %c1_478] : memref<16x2xf32, #tpu.memory_space<vmem>>, vector<2x1xf32>
    tpu.vector_store %arg21[%1004, %c1_478], %1003 {strides = array<i32>} : memref<16x2xf32, #tpu.memory_space<vmem>>, vector<2x1xf32>,
    %c8_i32 = arith.constant 8 : i32
    %c0_479 = arith.constant 0 : index
    %c0_480 = arith.constant 0 : index
    %1006 = vector.load %arg21[%c0_479, %c0_480] : memref<16x2xf32, #tpu.memory_space<vmem>>, vector<16x2xf32>
    %1007 = vector.extract_strided_slice %1006 {offsets = [0, 0], sizes = [16, 1], strides = [1, 1]} : vector<16x2xf32> to vector<16x1xf32>
    %1008 = vector.extract_strided_slice %1006 {offsets = [0, 1], sizes = [16, 1], strides = [1, 1]} : vector<16x2xf32> to vector<16x1xf32>
    %1009 = arith.addf %1007, %1008 : vector<16x1xf32>
    %c0_481 = arith.constant 0 : index
    %c0_482 = arith.constant 0 : index
    %1010 = vector.load %arg13[%c0_481, %c0_482] : memref<1x1xf32, #tpu.memory_space<vmem>>, vector<1x1xf32>
    %1011 = vector.broadcast %1010 : vector<1x1xf32> to vector<16x1xf32>
    %1012 = arith.addf %1009, %1011 : vector<16x1xf32>
    %c0_483 = arith.constant 0 : index
    %c0_484 = arith.constant 0 : index
    %1013 = vector.load %arg14[%c0_483, %c0_484] : memref<16x1xf32, #tpu.memory_space<vmem>>, vector<16x1xf32>
    tpu.vector_store %arg14[%c0_483, %c0_484], %1012 {strides = array<i32>} : memref<16x1xf32, #tpu.memory_space<vmem>>, vector<16x1xf32>,
    return
  }
  func.func @transform_0(%arg0: i32) -> (i32, i32) {
    %c0_i32 = arith.constant 0 : i32
    %c0_i32_0 = arith.constant 0 : i32
    %c0_i32_1 = arith.constant 0 : i32
    return %c0_i32, %c0_i32_0 : i32, i32
  }
  func.func @transform_1(%arg0: i32) -> (i32, i32) {
    %c0_i32 = arith.constant 0 : i32
    %c0_i32_0 = arith.constant 0 : i32
    %c0_i32_1 = arith.constant 0 : i32
    return %c0_i32, %c0_i32_0 : i32, i32
  }
  func.func @transform_2(%arg0: i32) -> (i32, i32) {
    %c0_i32 = arith.constant 0 : i32
    %c0_i32_0 = arith.constant 0 : i32
    %c0_i32_1 = arith.constant 0 : i32
    return %c0_i32, %c0_i32_0 : i32, i32
  }
  func.func @transform_3(%arg0: i32) -> (i32, i32) {
    %c0_i32 = arith.constant 0 : i32
    %c0_i32_0 = arith.constant 0 : i32
    %c0_i32_1 = arith.constant 0 : i32
    return %c0_i32, %c0_i32_0 : i32, i32
  }
  func.func @transform_4(%arg0: i32) -> (i32, i32) {
    %c0_i32 = arith.constant 0 : i32
    %c0_i32_0 = arith.constant 0 : i32
    %c0_i32_1 = arith.constant 0 : i32
    return %c0_i32, %c0_i32_0 : i32, i32
  }
  func.func @transform_5(%arg0: i32) -> (i32, i32) {
    %c0_i32 = arith.constant 0 : i32
    %c0_i32_0 = arith.constant 0 : i32
    %c0_i32_1 = arith.constant 0 : i32
    return %c0_i32, %c0_i32_0 : i32, i32
  }
  func.func @transform_6(%arg0: i32) -> (i32, i32) {
    %c0_i32 = arith.constant 0 : i32
    %c0_i32_0 = arith.constant 0 : i32
    %c0_i32_1 = arith.constant 0 : i32
    return %c0_i32, %c0_i32_0 : i32, i32
  }
  func.func @transform_7(%arg0: i32) -> (i32, i32) {
    %c0_i32 = arith.constant 0 : i32
    %c0_i32_0 = arith.constant 0 : i32
    %c0_i32_1 = arith.constant 0 : i32
    return %c0_i32, %c0_i32_0 : i32, i32
  }
  func.func @transform_8(%arg0: i32) -> (i32, i32) {
    %c0_i32 = arith.constant 0 : i32
    %c0_i32_0 = arith.constant 0 : i32
    %c0_i32_1 = arith.constant 0 : i32
    return %c0_i32, %c0_i32_0 : i32, i32
  }
  func.func @transform_9(%arg0: i32) -> (i32, i32) {
    %c0_i32 = arith.constant 0 : i32
    %c0_i32_0 = arith.constant 0 : i32
    %c0_i32_1 = arith.constant 0 : i32
    return %c0_i32, %c0_i32_0 : i32, i32
  }
  func.func @transform_10(%arg0: i32) -> (i32, i32) {
    %c0_i32 = arith.constant 0 : i32
    %c0_i32_0 = arith.constant 0 : i32
    %c0_i32_1 = arith.constant 0 : i32
    return %c0_i32, %c0_i32_0 : i32, i32
  }
  func.func @transform_11(%arg0: i32) -> (i32, i32) {
    %c0_i32 = arith.constant 0 : i32
    %c0_i32_0 = arith.constant 0 : i32
    %c0_i32_1 = arith.constant 0 : i32
    return %c0_i32, %c0_i32_0 : i32, i32
  }
  func.func @transform_12(%arg0: i32) -> (i32, i32) {
    %c0_i32 = arith.constant 0 : i32
    %c0_i32_0 = arith.constant 0 : i32
    %c0_i32_1 = arith.constant 0 : i32
    return %c0_i32, %c0_i32_0 : i32, i32
  }
  func.func @transform_13(%arg0: i32) -> (i32, i32) {
    %c0_i32 = arith.constant 0 : i32
    %c0_i32_0 = arith.constant 0 : i32
    %c0_i32_1 = arith.constant 0 : i32
    return %c0_i32, %c0_i32_0 : i32, i32
  }
}

</mosaic_0001>

<bundles_post_ra>
// kernel: tpu_custom_call.1
= control target key start
LH: loop header
LB: loop body
LE: loop exit
PB: predicated region body
PF: predicated region fallthrough
CT: control target
= control target key end

     0   :  { %s4028_s0 = inlined_call_operand.vmem [shape: s32[2,1], index: 0, kind: input, shape index: {}]   ;;  %s4029_s1 = inlined_call_operand.hbm [shape: f32[16,32], index: 1, kind: input, shape index: {}]   ;;  %s4030_s2 = inlined_call_operand.vmem [shape: f32[16,1], index: 2, kind: input, shape index: {}]   ;;  %s4031_s3 = inlined_call_operand.hbm [shape: f32[32,128], index: 3, kind: input, shape index: {}]   ;;  %s4032_s4 = inlined_call_operand.vmem [shape: f32[1,128], index: 4, kind: input, shape index: {}]   ;;  %s4033_s5 = inlined_call_operand.hbm [shape: f32[32,128], index: 5, kind: input, shape index: {}]   ;;  %s4034_s6 = inlined_call_operand.vmem [shape: f32[1,128], index: 6, kind: input, shape index: {}]   ;;  %s4035_s7 = inlined_call_operand.vmem [shape: f32[32,128], index: 7, kind: input, shape index: {}]   ;;  %s4036_s8 = inlined_call_operand.vmem [shape: f32[1,128], index: 8, kind: input, shape index: {}]   ;;  %s4037_s9 = inlined_call_operand.hbm [shape: f32[32,128], index: 9, kind: input, shape index: {}]   ;;  %s4038_s10 = inlined_call_operand.vmem [shape: f32[1,128], index: 10, kind: input, shape index: {}]   ;;  %s4039_s11 = inlined_call_operand.vmem [shape: f32[1,64], index: 11, kind: input, shape index: {}]   ;;  %s4040_s12 = inlined_call_operand.<no memory space> [shape: f32[1,1], index: 12, kind: input, shape index: {}]   ;;  %s4041_s13 = inlined_call_operand.vmem [shape: f32[16,1], index: 13, kind: output, shape index: {}]  }
   0x1   :  { %v18_v0 = vstv %s4040_s12 }
   0x2   :  { %19 = vst [vmem:[#allocation9] sm:$0x1] %v18_v0 }
   0x3   :  { %20 = vsyncpa [#allocation11], 0 }
   0x4   :  { %21 = vsyncpa [#allocation13], 0 }
   0x5   :  { %22 = vsyncpa [#allocation16], 0  ;;  %s3140_s27 = smov [#allocation12]   ;;  %s3141_s29 = smov [#allocation10]  }
   0x6   :  { %s44_s28 = sshll.u32 %s3140_s27, 4  ;;  %s30_s30 = sshll.u32 %s3141_s29, 4  ;;  %s45_s28 = int_to_ptr.vmem [resolvable:$true] %s44_s28  ;;  %s31_s30 = int_to_ptr.vmem [resolvable:$true] %s30_s30 }
   0x7   :  { %s3062_s14 = scalar_lea.vmem %s45_s28, 512  ;;  %p3067_p1 = scmp.lt.s32.totalorder %s45_s28, %s45_s28 }
   0x8   :  { %p3063_p0 = scmp.ne.s32.totalorder %s45_s28, %s3062_s14  ;;  %p3068_p2 = scmp.lt.s32.totalorder %s3062_s14, %s3062_s14 }
   0xa   :  { %p3069_p3 = por %p3068_p2, %p3067_p1 }
   0xc   :  { %p3070_p4 = pnand %p3069_p3, %p3063_p0 }
   0xe   :  { %3073 = shalt.err (!%p3070_p4)
}
   0xf   :  { %s3142_s15 = smov 128   ;;  %s3143_s16 = smov 8  }
  0x10   :  { %50 = dma.hbm_to_vmem [thread:$0]  %s4031_s3, 512, %s45_s28, [#allocation13], %s3142_s15, %s3142_s15, %s3143_s16  }
  0x11   :  { %s3082_s18 = scalar_lea.vmem %s31_s30, 256  ;;  %p3087_p6 = scmp.lt.s32.totalorder %s31_s30, %s31_s30 }
  0x12   :  { %p3083_p5 = scmp.ne.s32.totalorder %s31_s30, %s3082_s18  ;;  %p3088_p7 = scmp.lt.s32.totalorder %s3082_s18, %s3082_s18 }
  0x14   :  { %p3089_p8 = por %p3088_p7, %p3087_p6 }
  0x16   :  { %p3090_p9 = pnand %p3089_p8, %p3083_p5 }
  0x18   :  { %3093 = shalt.err (!%p3090_p9)
}
  0x19   :  { %36 = dma.hbm_to_vmem [thread:$0]  %s4029_s1, 256, %s31_s30, [#allocation11], %s3142_s15, %s3142_s15, %s3143_s16  }
  0x1a   :  { %s3144_s21 = smov [#allocation14]   ;;  %s3145_s23 = smov [#allocation15]  }
  0x1b   :  { %s58_s22 = sshll.u32 %s3144_s21, 4  ;;  %s76_s24 = sshll.u32 %s3145_s23, 4  ;;  %s59_s22 = int_to_ptr.vmem [resolvable:$true] %s58_s22  ;;  %s77_s24 = int_to_ptr.vmem [resolvable:$true] %s76_s24 }
  0x1c   :  { %s3102_s3 = scalar_lea.vmem %s59_s22, 512  ;;  %p3107_p11 = scmp.lt.s32.totalorder %s59_s22, %s59_s22 }
  0x1d   :  { %p3103_p10 = scmp.ne.s32.totalorder %s59_s22, %s3102_s3  ;;  %p3108_p12 = scmp.lt.s32.totalorder %s3102_s3, %s3102_s3 }
  0x1f   :  { %p3109_p13 = por %p3108_p12, %p3107_p11 }
  0x21   :  { %p3110_p0 = pnand %p3109_p13, %p3103_p10 }
  0x23   :  { %3113 = shalt.err (!%p3110_p0)
}
  0x24   :  { %64 = dma.hbm_to_vmem [thread:$0]  %s4033_s5, 512, %s59_s22, [#allocation13], %s3142_s15, %s3142_s15, %s3143_s16  }
  0x25   :  { %s3122_s1 = scalar_lea.vmem %s77_s24, 512  ;;  %p3127_p2 = scmp.lt.s32.totalorder %s77_s24, %s77_s24 }
  0x26   :  { %p3123_p1 = scmp.ne.s32.totalorder %s77_s24, %s3122_s1  ;;  %p3128_p3 = scmp.lt.s32.totalorder %s3122_s1, %s3122_s1 }
  0x28   :  { %p3129_p4 = por %p3128_p3, %p3127_p2 }
  0x2a   :  { %p3130_p5 = pnand %p3129_p4, %p3123_p1 }
  0x2c   :  { %3133 = shalt.err (!%p3130_p5)
}
  0x2d   :  { %82 = dma.hbm_to_vmem [thread:$0]  %s4037_s9, 512, %s77_s24, [#allocation16], %s3142_s15, %s3142_s15, %s3143_s16  }
  0x2e   :  { %3134 = dma.done.wait [#allocation11], 256  }
  0x2f   :  { %3135 = vsyncadd [#allocation11], 4294967040 }
  0x30   :  { %3136 = dma.done.wait [#allocation13], 1024  }
  0x31   :  { %3137 = vsyncadd [#allocation13], 4294966272 }
  0x32   :  { %3138 = dma.done.wait [#allocation16], 512  }
  0x33   :  { %3139 = vsyncadd [#allocation16], 4294966784  ;;  %vm320_vm0 = vcmask 254976   ;;  %v3146_v1 = vmov 0.0   ;;  %v3147_v2 = vmov 0   ;;  %v108_v3 = vld [vmem:[#allocation12 + $0x18] sm:$0xff] }
  0x34   :  { %321 = vst.msk [vmem:[#allocation4] sm:$0x3] %vm320_vm0, %v3146_v1  ;;  %322 = vst.msk [vmem:[#allocation5] sm:$0x3] %vm320_vm0, %v3146_v1  ;;  %2916 = vset.pattern.permute.xlu0 %v3147_v2  ;;  %2917 = vset.pattern.permute.xlu1 %v3147_v2  ;;  %v224_v4 = vld [vmem:[%s4035_s7 + $0x18] sm:$0xff]  ;;  %v223_v6 = vld [vmem:[%s4035_s7 + $0x10] sm:$0xff] }
  0x35   :  { %323 = vst.msk [vmem:[#allocation6] sm:$0x3] %vm320_vm0, %v3146_v1  ;;  %324 = vst.msk [vmem:[#allocation7] sm:$0x3] %vm320_vm0, %v3146_v1  ;;  %v107_v5 = vld [vmem:[#allocation12 + $0x10] sm:$0xff]  ;;  %2705 = vmatprep.subr.mxu0 %v108_v3  ;;  %2716 = vmatprep.subr.mxu1 %v224_v4  ;;  %v106_v7 = vld [vmem:[#allocation12 + $0x8] sm:$0xff] }
  0x36   :  { %2706 = vmatpush3.msra.mxu0 %v108_v3  ;;  %2717 = vmatpush3.msra.mxu1 %v224_v4  ;;  %v222_v8 = vld [vmem:[%s4035_s7 + $0x8] sm:$0xff]  ;;  %v221_v10 = vld [vmem:[%s4035_s7] sm:$0xff]  ;;  %vm128_vm1 = vcmask 261120   ;;  %v3290_v17 = vld [vmem:[#allocation14 + $0x8] sm:$0xff]  ;;  %vm3148_vm2 = vmmov 0  }
  0x37   :  { %2707 = vmatprep.subr.mxu0 %v107_v5  ;;  %2718 = vmatprep.subr.mxu1 %v223_v6  ;;  %v105_v9 = vld [vmem:[#allocation12] sm:$0xff]  ;;  %v101_v11 = vld [vmem:[#allocation10] sm:$0xff]  ;;  %v102_v12 = vld [vmem:[#allocation10 + $0x8] sm:$0xff] }
  0x38   :  { %2708 = vmatpush3.msra.mxu0 %v107_v5  ;;  %2719 = vmatpush3.msra.mxu1 %v223_v6  ;;  %v3274_v13 = vld [vmem:[#allocation14 + $0x18] sm:$0xff]  ;;  %v3282_v15 = vld [vmem:[#allocation14 + $0x10] sm:$0xff]  ;;  %v3294_v18 = vld [vmem:[#allocation15 + $0x8] sm:$0xff] }
  0x39   :  { %2709 = vmatprep.subr.mxu0 %v106_v7  ;;  %2720 = vmatprep.subr.mxu1 %v222_v8  ;;  %v3276_v14 = vld [vmem:[#allocation15 + $0x18] sm:$0xff]  ;;  %v3284_v16 = vld [vmem:[#allocation15 + $0x10] sm:$0xff]  ;;  %v3298_v19 = vld [vmem:[#allocation14] sm:$0xff] }
  0x3a   :  { %2710 = vmatpush3.msra.mxu0 %v106_v7  ;;  %2721 = vmatpush3.msra.mxu1 %v222_v8  ;;  %v3305_v21 = vld [vmem:[#allocation15] sm:$0xff]  ;;  %v103_v22 = vld [vmem:[%s4030_s2] sm:$0xff] }
  0x3b   :  { %2711 = vmatprep.subr.mxu0 %v105_v9  ;;  %2722 = vmatprep.subr.mxu1 %v221_v10  ;;  %v3303_v20 = vld [vmem:[#allocation4] sm:$0x3]  ;;  %v104_v24 = vld [vmem:[%s4030_s2 + $0x8] sm:$0xff]  ;;  %v338_v25 = vld [vmem:[#allocation5] sm:$0x3]  ;;  %s3149_s2 = smov 32  }
  0x3c   :  { %2712 = vmatpush3.msra.mxu0 %v105_v9  ;;  %2713 = vmatprep.mubr.msk.f32.mxu0 %vm128_vm1, %v101_v11  ;;  %v3314_v23 = vld [vmem:[#allocation6] sm:$0x3]  ;;  %v2587_v28 = vld [vmem:[%s4032_s4] ss:$0 sm:$0xff]  ;;  %s3150_s4 = smov 64  }
  0x3d   :  { %2723 = vmatpush3.msra.mxu1 %v221_v10  ;;  %2724 = vmatprep.mubr.msk.f32.mxu1 %vm128_vm1, %v101_v11  ;;  %v2591_v29 = vld [vmem:[%s4036_s8] ss:$0 sm:$0xff]  ;;  %v488_v58 = vld [vmem:[#allocation7] sm:$0x3] }
  0x3e   :  { %2714 = vmatmul.mubr.msk.f32.vlgmr.msra.gmra.mxu0 %vm128_vm1, %v102_v12  ;;  %2725 = vmatmul.mubr.msk.f32.vlgmr.msra.gmra.mxu1 %vm128_vm1, %v102_v12  ;;  %v2590_v35 = vld [vmem:[%s4034_s6] ss:$0 sm:$0xff] }
  0x3f   :  { %2727 = vmatprep.subr.mxu0 %v3146_v1  ;;  %2738 = vmatprep.subr.mxu1 %v3146_v1  ;;  %v2594_v37 = vld [vmem:[%s4038_s10] ss:$0 sm:$0xff] }
  0x40   :  { %2728 = vmatpush3.msra.mxu0 %v3274_v13  ;;  %2739 = vmatpush3.msra.mxu1 %v3276_v14  ;;  %v3367_v5 = vld [vmem:[%s4028_s0] sm:$0x3]  ;;  %s3151_s0 = smov 96  }
  0x41   :  { %2729 = vmatprep.subr.mxu0 %v3146_v1  ;;  %2740 = vmatprep.subr.mxu1 %v3146_v1  ;;  %vm335_vm3 = vcmp.gt.s32.totalorder %v3367_v5, 0  ;;  %vm485_vm4 = vcmp.gt.s32.totalorder %v3367_v5, 7  ;;  %vm630_vm7 = vcmp.gt.s32.totalorder %v3367_v5, 1  ;;  %vm771_vm8 = vcmp.gt.s32.totalorder %v3367_v5, 6 }
  0x42   :  { %2730 = vmatpush3.msra.mxu0 %v3282_v15  ;;  %2741 = vmatpush3.msra.mxu1 %v3284_v16  ;;  %v441_v11 = vsel %vm335_vm3, 1, %v3147_v2  ;;  %vm912_vm11 = vcmp.gt.s32.totalorder %v3367_v5, 2  ;;  %vm1053_vm12 = vcmp.gt.s32.totalorder %v3367_v5, 5  ;;  %vm1194_vm15 = vcmp.gt.s32.totalorder %v3367_v5, 3 }
  0x43   :  { %2731 = vmatprep.subr.mxu0 %v3146_v1  ;;  %2742 = vmatprep.subr.mxu1 %v3146_v1  ;;  %vm1335_vm3 = vcmp.gt.s32.totalorder %v3367_v5, 4 }
  0x44   :  { %2732 = vmatpush3.msra.mxu0 %v3290_v17  ;;  %2735 = vmatprep.mubr.msk.f32.mxu0 %vm3148_vm2, %v3146_v1 }
  0x45   :  { %2733 = vmatprep.subr.mxu0 %v3146_v1  ;;  %2743 = vmatpush3.msra.mxu1 %v3294_v18 }
  0x46   :  { %2734 = vmatpush3.msra.mxu0 %v3298_v19  ;;  %2744 = vmatprep.subr.mxu1 %v3146_v1 }
  0x47   :  { %2736 = vmatmul.mubr.msk.f32.vlgmr.msra.gmra.mxu0 %vm128_vm1, %v3303_v20  ;;  %2745 = vmatpush3.msra.mxu1 %v3305_v21 }
  0x48   :  { %2746 = vmatprep.mubr.msk.f32.mxu1 %vm3148_vm2, %v3146_v1  ;;  %112 = vperm.xlu0 %2916, %v103_v22   ;;  %v591_v22 = vsel %vm485_vm4, 1, %v3147_v2 }
  0x49   :  { %2747 = vmatmul.mubr.msk.f32.vlgmr.msra.gmra.mxu1 %vm128_vm1, %v3314_v23  ;;  %2749 = vmatprep.subr.mxu0 %v3146_v1 }
  0x4a   :  { %2750 = vmatpush3.msra.mxu0 %v3274_v13  ;;  %2760 = vmatprep.subr.mxu1 %v3146_v1 }
  0x4b   :  { %2751 = vmatprep.subr.mxu0 %v3146_v1  ;;  %2761 = vmatpush3.msra.mxu1 %v3276_v14 }
  0x4c   :  { %117 = vperm.xlu0 %2916, %v104_v24   ;;  %2752 = vmatpush3.msra.mxu0 %v3282_v15 }
  0x4d   :  { %2753 = vmatprep.subr.mxu0 %v3146_v1  ;;  %2762 = vmatprep.subr.mxu1 %v3146_v1 }
  0x4e   :  { %2754 = vmatpush3.msra.mxu0 %v3290_v17  ;;  %2757 = vmatprep.mubr.msk.f32.mxu0 %vm3148_vm2, %v3146_v1 }
  0x4f   :  { %2755 = vmatprep.subr.mxu0 %v3146_v1  ;;  %2763 = vmatpush3.msra.mxu1 %v3284_v16 }
  0x50   :  { %421 = vrot.lane.b32.xlu0 %v338_v25, %s3149_s2  ;;  %2756 = vmatpush3.msra.mxu0 %v3298_v19 }
  0x51   :  { %2764 = vmatprep.subr.mxu1 %v3146_v1  ;;  %2768 = vmatprep.mubr.msk.f32.mxu1 %vm3148_vm2, %v3146_v1 }
  0x52   :  { %2765 = vmatpush3.msra.mxu1 %v3294_v18  ;;  %2771 = vmatprep.subr.mxu0 %v3146_v1 }
  0x53   :  { %2766 = vmatprep.subr.mxu1 %v3146_v1 }
  0x54   :  { %2767 = vmatpush3.msra.mxu1 %v3305_v21 }
  0x55   :  { %2782 = vmatprep.subr.mxu1 %v3146_v1 }
  0xc3   :  { %v113_v26 = vpop.permute.xlu0 %112 }
  0xc4   :  { %v126_v32 = vmul.f32 %v2587_v28, %v113_v26  ;;  %v232_v33 = vmul.f32 %v2591_v29, %v113_v26 }
  0xc7   :  { %v118_v27 = vpop.permute.xlu0 %117 }
  0xc8   :  { %v127_v30 = vmul.f32 %v2587_v28, %v118_v27  ;;  %v233_v31 = vmul.f32 %v2591_v29, %v118_v27 }
  0xcb   :  { %v422_v24 = vpop.permute.xlu0 %421 }
  0xfe   :  { %v2715_v34 = vpop.f32.mrf.mxu0  ;;  %v2726_v36 = vpop.f32.mrf.mxu1 }
  0xff   :  { %v207_v38 = vadd.f32 %v2715_v34, %v127_v30  ;;  %v306_v39 = vadd.f32 %v2726_v36, %v233_v31 }
 0x100   :  { %v201_v40 = vpop.f32.mrf.mxu0  ;;  %v300_v41 = vpop.f32.mrf.mxu1 }
 0x101   :  { %v218_v42 = vadd.f32 %v2590_v35, %v207_v38  ;;  %v317_v43 = vadd.f32 %v2594_v37, %v306_v39  ;;  %v202_v44 = vadd.f32 %v201_v40, %v126_v32  ;;  %v301_v45 = vadd.f32 %v300_v41, %v232_v33 }
 0x103   :  { %220 = vst [vmem:[#allocation2 + $0x8] sm:$0xff] %v218_v42  ;;  %319 = vst [vmem:[#allocation3 + $0x8] sm:$0xff] %v317_v43  ;;  %v217_v46 = vadd.f32 %v2590_v35, %v202_v44  ;;  %v316_v47 = vadd.f32 %v2594_v37, %v301_v45  ;;  %v606_v43 = vld [vmem:[#allocation7] sm:$0x3] }
 0x105   :  { %219 = vst [vmem:[#allocation2] sm:$0xff] %v217_v46  ;;  %318 = vst [vmem:[#allocation3] sm:$0xff] %v316_v47 }
 0x107   :  { %v408_v48 = vpop.f32.mrf.mxu0 }
 0x109   :  { %v2737_v49 = vpop.f32.mrf.mxu0  ;;  %v558_v50 = vpop.f32.mrf.mxu1 }
 0x10a   :  { %v486_v53 = vld [vmem:[#allocation3 + $0xe] sm:$0x3] }
 0x10b   :  { %v2748_v51 = vpop.f32.mrf.mxu1  ;;  %v562_v55 = vadd.f32 %v558_v50, %v486_v53 }
 0x10c   :  { %v336_v52 = vld [vmem:[#allocation2] sm:$0x3] }
 0x10d   :  { %v412_v54 = vadd.f32 %v408_v48, %v336_v52  ;;  %v563_v61 = vsub.f32 0.0, %v562_v55 }
 0x10f   :  { %2918 = vtanh.f32 %v412_v54  ;;  %v413_v59 = vsub.f32 0.0, %v412_v54  ;;  %v564_v62 = vmul.f32 1.442695, %v563_v61  ;;  %v631_v54 = vld [vmem:[#allocation2 + $0x2] sm:$0x3] }
 0x110   :  { %2920 = vtanh.f32 %v562_v55 }
 0x111   :  { %v414_v60 = vmul.f32 1.442695, %v413_v59 }
 0x113   :  { %2922 = vpow2.f32 %v414_v60 }
 0x114   :  { %2924 = vpow2.f32 %v564_v62 }
 0x11c   :  { %v2919_v56 = vpop.eup %2918 }
 0x11d   :  { %426 = vrot.lane.b32.xlu1 %v2919_v56, %s3150_s4  ;;  %v2921_v57 = vpop.eup %2920 }
 0x120   :  { %v2923_v63 = vpop.eup %2922 }
 0x121   :  { %576 = vrot.lane.b32.xlu1 %v2921_v57, %s3150_s4  ;;  %v416_v0 = vadd.f32 1.0, %v2923_v63  ;;  %v2925_v3 = vpop.eup %2924 }
 0x122   :  { %v566_v4 = vadd.f32 1.0, %v2925_v3 }
 0x123   :  { %2926 = vrcp.f32 %v416_v0 }
 0x124   :  { %2928 = vrcp.f32 %v566_v4 }
 0x125   :  { %571 = vrot.lane.b32.xlu1 %v488_v58, %s3149_s2  ;;  %v772_v58 = vld [vmem:[#allocation3 + $0xc] sm:$0x3] }
 0x130   :  { %v2927_v6 = vpop.eup %2926 }
 0x131   :  { %v2929_v9 = vpop.eup %2928  ;;  %v424_v25 = vmul.f32 %v2927_v6, %v422_v24 }
 0x18f   :  { %v427_v7 = vpop.permute.xlu1 %426 }
 0x190   :  { %v429_v8 = vmul.f32 %v2927_v6, %v427_v7 }
 0x192   :  { %431 = vrot.lane.b32.xlu0 %v429_v8, %s3149_s2 }
 0x193   :  { %v577_v10 = vpop.permute.xlu1 %576 }
 0x194   :  { %v579_v12 = vmul.f32 %v2929_v9, %v577_v10 }
 0x196   :  { %581 = vrot.lane.b32.xlu1 %v579_v12, %s3149_s2  ;;  %443 = vperm.xlu0 %2916, %v441_v11  }
 0x197   :  { %v572_v26 = vpop.permute.xlu1 %571 }
 0x198   :  { %v574_v29 = vmul.f32 %v2929_v9, %v572_v26  ;;  %v736_v26 = vsel %vm630_vm7, 1, %v3147_v2 }
 0x19a   :  { %593 = vperm.xlu1 %2917, %v591_v22  }
 0x204   :  { %v432_v27 = vpop.permute.xlu0 %431 }
 0x205   :  { %v434_v28 = vadd.f32 %v432_v27, %v424_v25 }
 0x207   :  { %2930 = vtanh.f32 %v434_v28 }
 0x208   :  { %v582_v30 = vpop.permute.xlu1 %581 }
 0x209   :  { %v584_v31 = vadd.f32 %v582_v30, %v574_v29  ;;  %v877_v30 = vsel %vm771_vm8, 1, %v3147_v2 }
 0x20b   :  { %2932 = vtanh.f32 %v584_v31 }
 0x211   :  { %v3381_v34 = vpop.permute.xlu0 %443 }
 0x212   :  { %vm445_vm5 = vcmp.eq.s32.totalorder %v3381_v34, 1 }
 0x214   :  { %v2931_v32 = vpop.eup %2930 }
 0x215   :  { %437 = vrot.lane.b32.xlu0 %v2931_v32, %s3150_s4  ;;  %v3383_v35 = vpop.permute.xlu1 %593 }
 0x216   :  { %vm595_vm6 = vcmp.eq.s32.totalorder %v3383_v35, 1 }
 0x218   :  { %v2933_v33 = vpop.eup %2932 }
 0x219   :  { %587 = vrot.lane.b32.xlu1 %v2933_v33, %s3150_s4  ;;  %447 = vrot.lane.b32.xlu0 %v3303_v20, %s3151_s0 }
 0x21d   :  { %597 = vrot.lane.b32.xlu1 %v3314_v23, %s3151_s0  ;;  %v456_v23 = vld [vmem:[#allocation5] sm:$0x3] }
 0x287   :  { %v438_v36 = vpop.permute.xlu0 %437 }
 0x288   :  { %v3385_v37 = vmul.f32 %v2927_v6, %v438_v36 }
 0x28b   :  { %v588_v38 = vpop.permute.xlu1 %587  ;;  %v448_v39 = vpop.permute.xlu0 %447 }
 0x28c   :  { %v450_v40 = vsel %vm445_vm5, %v3385_v37, %v448_v39  ;;  %v3392_v20 = vmul.f32 %v2929_v9, %v588_v38 }
 0x28d   :  { %452 = vrot.lane.b32.xlu0 %v450_v40, %s3149_s2 }
 0x28f   :  { %v598_v41 = vpop.permute.xlu1 %597 }
 0x290   :  { %v600_v42 = vsel %vm595_vm6, %v3392_v20, %v598_v41 }
 0x291   :  { %602 = vrot.lane.b32.xlu1 %v600_v42, %s3149_s2  ;;  %458 = vrot.lane.b32.xlu0 %v456_v23, %s3149_s2 }
 0x295   :  { %608 = vrot.lane.b32.xlu1 %v606_v43, %s3149_s2 }
 0x2ff   :  { %v453_v44 = vpop.permute.xlu0 %452 }
 0x300   :  { %455 = vst.msk [vmem:[#allocation4] sm:$0x3] %vm320_vm0, %v453_v44 }
 0x303   :  { %v603_v45 = vpop.permute.xlu1 %602  ;;  %v459_v46 = vpop.permute.xlu0 %458 }
 0x304   :  { %605 = vst.msk [vmem:[#allocation6] sm:$0x3] %vm320_vm0, %v603_v45  ;;  %v461_v47 = vsel %vm445_vm5, %v434_v28, %v459_v46 }
 0x305   :  { %463 = vrot.lane.b32.xlu0 %v461_v47, %s3151_s0 }
 0x307   :  { %v609_v48 = vpop.permute.xlu1 %608  ;;  %v3406_v49 = vld [vmem:[#allocation4] sm:$0x3] }
 0x308   :  { %2758 = vmatmul.mubr.msk.f32.vlgmr.msra.gmra.mxu0 %vm128_vm1, %v3406_v49  ;;  %v611_v50 = vsel %vm595_vm6, %v584_v31, %v609_v48 }
 0x309   :  { %613 = vrot.lane.b32.xlu1 %v611_v50, %s3151_s0  ;;  %2772 = vmatpush3.msra.mxu0 %v3274_v13 }
 0x30a   :  { %2773 = vmatprep.subr.mxu0 %v3146_v1  ;;  %2779 = vmatprep.mubr.msk.f32.mxu0 %vm3148_vm2, %v3146_v1 }
 0x30b   :  { %v3417_v51 = vld [vmem:[#allocation6] sm:$0x3]  ;;  %2774 = vmatpush3.msra.mxu0 %v3282_v15 }
 0x30c   :  { %2769 = vmatmul.mubr.msk.f32.vlgmr.msra.gmra.mxu1 %vm128_vm1, %v3417_v51  ;;  %2775 = vmatprep.subr.mxu0 %v3146_v1 }
 0x30d   :  { %2776 = vmatpush3.msra.mxu0 %v3290_v17  ;;  %2783 = vmatpush3.msra.mxu1 %v3276_v14 }
 0x30e   :  { %2777 = vmatprep.subr.mxu0 %v3146_v1  ;;  %2784 = vmatprep.subr.mxu1 %v3146_v1 }
 0x30f   :  { %2785 = vmatpush3.msra.mxu1 %v3284_v16  ;;  %2778 = vmatpush3.msra.mxu0 %v3298_v19 }
 0x310   :  { %2786 = vmatprep.subr.mxu1 %v3146_v1  ;;  %2790 = vmatprep.mubr.msk.f32.mxu1 %vm3148_vm2, %v3146_v1 }
 0x311   :  { %2787 = vmatpush3.msra.mxu1 %v3294_v18  ;;  %2793 = vmatprep.subr.mxu0 %v3146_v1 }
 0x312   :  { %2788 = vmatprep.subr.mxu1 %v3146_v1 }
 0x313   :  { %2789 = vmatpush3.msra.mxu1 %v3305_v21 }
 0x314   :  { %2804 = vmatprep.subr.mxu1 %v3146_v1 }
 0x377   :  { %v464_v52 = vpop.permute.xlu0 %463 }
 0x378   :  { %466 = vst.msk [vmem:[#allocation5] sm:$0x3] %vm320_vm0, %v464_v52 }
 0x37b   :  { %v614_v53 = vpop.permute.xlu1 %613 }
 0x37c   :  { %616 = vst.msk [vmem:[#allocation7] sm:$0x3] %vm320_vm0, %v614_v53 }
 0x37f   :  { %v633_v63 = vld [vmem:[#allocation5] sm:$0x3] }
 0x380   :  { %v751_v52 = vld [vmem:[#allocation5] sm:$0x3] }
 0x383   :  { %v774_v3 = vld [vmem:[#allocation7] sm:$0x3] }
 0x3c8   :  { %v703_v55 = vpop.f32.mrf.mxu0 }
 0x3c9   :  { %v707_v56 = vadd.f32 %v703_v55, %v631_v54  ;;  %v892_v54 = vld [vmem:[#allocation7] sm:$0x3] }
 0x3ca   :  { %v2759_v57 = vpop.f32.mrf.mxu0 }
 0x3cb   :  { %2934 = vtanh.f32 %v707_v56  ;;  %v708_v4 = vsub.f32 0.0, %v707_v56 }
 0x3cc   :  { %v844_v59 = vpop.f32.mrf.mxu1 }
 0x3cd   :  { %v848_v60 = vadd.f32 %v844_v59, %v772_v58  ;;  %v709_v6 = vmul.f32 1.442695, %v708_v4 }
 0x3ce   :  { %v2770_v61 = vpop.f32.mrf.mxu1 }
 0x3cf   :  { %2936 = vtanh.f32 %v848_v60  ;;  %v849_v7 = vsub.f32 0.0, %v848_v60 }
 0x3d0   :  { %2938 = vpow2.f32 %v709_v6 }
 0x3d1   :  { %v850_v8 = vmul.f32 1.442695, %v849_v7 }
 0x3d3   :  { %2940 = vpow2.f32 %v850_v8  ;;  %v1054_v8 = vld [vmem:[#allocation3 + $0xa] sm:$0x3] }
 0x3d8   :  { %v2935_v62 = vpop.eup %2934 }
 0x3d9   :  { %721 = vrot.lane.b32.xlu0 %v2935_v62, %s3150_s4 }
 0x3dc   :  { %v2937_v0 = vpop.eup %2936 }
 0x3dd   :  { %716 = vrot.lane.b32.xlu0 %v633_v63, %s3149_s2  ;;  %862 = vrot.lane.b32.xlu1 %v2937_v0, %s3150_s4  ;;  %v2939_v9 = vpop.eup %2938 }
 0x3de   :  { %v711_v10 = vadd.f32 1.0, %v2939_v9 }
 0x3e0   :  { %v2941_v11 = vpop.eup %2940  ;;  %2942 = vrcp.f32 %v711_v10 }
 0x3e1   :  { %857 = vrot.lane.b32.xlu1 %v774_v3, %s3149_s2  ;;  %v852_v12 = vadd.f32 1.0, %v2941_v11  ;;  %v913_v3 = vld [vmem:[#allocation2 + $0x4] sm:$0x3] }
 0x3e3   :  { %2944 = vrcp.f32 %v852_v12 }
 0x3ed   :  { %v2943_v22 = vpop.eup %2942 }
 0x3f0   :  { %v2945_v27 = vpop.eup %2944 }
 0x44b   :  { %v722_v24 = vpop.permute.xlu0 %721 }
 0x44c   :  { %v724_v25 = vmul.f32 %v2943_v22, %v722_v24 }
 0x44e   :  { %726 = vrot.lane.b32.xlu0 %v724_v25, %s3149_s2 }
 0x44f   :  { %v863_v28 = vpop.permute.xlu1 %862  ;;  %v717_v31 = vpop.permute.xlu0 %716 }
 0x450   :  { %v865_v29 = vmul.f32 %v2945_v27, %v863_v28  ;;  %v719_v32 = vmul.f32 %v2943_v22, %v717_v31 }
 0x452   :  { %738 = vperm.xlu0 %2916, %v736_v26   ;;  %867 = vrot.lane.b32.xlu1 %v865_v29, %s3149_s2 }
 0x453   :  { %v858_v36 = vpop.permute.xlu1 %857 }
 0x454   :  { %v860_v39 = vmul.f32 %v2945_v27, %v858_v36 }
 0x456   :  { %879 = vperm.xlu1 %2917, %v877_v30  }
 0x4c0   :  { %v727_v33 = vpop.permute.xlu0 %726 }
 0x4c1   :  { %v729_v38 = vadd.f32 %v727_v33, %v719_v32 }
 0x4c3   :  { %2946 = vtanh.f32 %v729_v38 }
 0x4c4   :  { %v868_v40 = vpop.permute.xlu1 %867 }
 0x4c5   :  { %v870_v23 = vadd.f32 %v868_v40, %v860_v39  ;;  %v1018_v40 = vsel %vm912_vm11, 1, %v3147_v2 }
 0x4c7   :  { %2948 = vtanh.f32 %v870_v23 }
 0x4cd   :  { %v3455_v43 = vpop.permute.xlu0 %738 }
 0x4ce   :  { %vm740_vm9 = vcmp.eq.s32.totalorder %v3455_v43, 1 }
 0x4d0   :  { %v2947_v41 = vpop.eup %2946 }
 0x4d1   :  { %732 = vrot.lane.b32.xlu0 %v2947_v41, %s3150_s4  ;;  %v3457_v45 = vpop.permute.xlu1 %879 }
 0x4d2   :  { %vm881_vm10 = vcmp.eq.s32.totalorder %v3457_v45, 1 }
 0x4d4   :  { %v2949_v42 = vpop.eup %2948 }
 0x4d5   :  { %742 = vrot.lane.b32.xlu0 %v3406_v49, %s3151_s0  ;;  %873 = vrot.lane.b32.xlu1 %v2949_v42, %s3150_s4 }
 0x4d9   :  { %883 = vrot.lane.b32.xlu1 %v3417_v51, %s3151_s0 }
 0x543   :  { %v733_v44 = vpop.permute.xlu0 %732 }
 0x544   :  { %v3459_v46 = vmul.f32 %v2943_v22, %v733_v44  ;;  %v1159_v44 = vsel %vm1053_vm12, 1, %v3147_v2 }
 0x547   :  { %v743_v47 = vpop.permute.xlu0 %742  ;;  %v874_v48 = vpop.permute.xlu1 %873 }
 0x548   :  { %v745_v49 = vsel %vm740_vm9, %v3459_v46, %v743_v47  ;;  %v3466_v50 = vmul.f32 %v2945_v27, %v874_v48 }
 0x549   :  { %747 = vrot.lane.b32.xlu0 %v745_v49, %s3149_s2 }
 0x54b   :  { %v884_v51 = vpop.permute.xlu1 %883 }
 0x54c   :  { %v886_v53 = vsel %vm881_vm10, %v3466_v50, %v884_v51 }
 0x54d   :  { %753 = vrot.lane.b32.xlu0 %v751_v52, %s3149_s2  ;;  %888 = vrot.lane.b32.xlu1 %v886_v53, %s3149_s2 }
 0x551   :  { %894 = vrot.lane.b32.xlu1 %v892_v54, %s3149_s2 }
 0x5bb   :  { %v748_v55 = vpop.permute.xlu0 %747 }
 0x5bc   :  { %750 = vst.msk [vmem:[#allocation4] sm:$0x3] %vm320_vm0, %v748_v55 }
 0x5bf   :  { %v754_v56 = vpop.permute.xlu0 %753  ;;  %v889_v57 = vpop.permute.xlu1 %888 }
 0x5c0   :  { %v756_v58 = vsel %vm740_vm9, %v729_v38, %v754_v56  ;;  %891 = vst.msk [vmem:[#allocation6] sm:$0x3] %vm320_vm0, %v889_v57 }
 0x5c1   :  { %758 = vrot.lane.b32.xlu0 %v756_v58, %s3151_s0 }
 0x5c3   :  { %v3480_v59 = vld [vmem:[#allocation4] sm:$0x3]  ;;  %v895_v60 = vpop.permute.xlu1 %894 }
 0x5c4   :  { %2780 = vmatmul.mubr.msk.f32.vlgmr.msra.gmra.mxu0 %vm128_vm1, %v3480_v59  ;;  %v897_v61 = vsel %vm881_vm10, %v870_v23, %v895_v60 }
 0x5c5   :  { %2794 = vmatpush3.msra.mxu0 %v3274_v13  ;;  %2801 = vmatprep.mubr.msk.f32.mxu0 %vm3148_vm2, %v3146_v1 }
 0x5c6   :  { %899 = vrot.lane.b32.xlu1 %v897_v61, %s3151_s0  ;;  %2795 = vmatprep.subr.mxu0 %v3146_v1 }
 0x5c7   :  { %2796 = vmatpush3.msra.mxu0 %v3282_v15  ;;  %v3492_v62 = vld [vmem:[#allocation6] sm:$0x3] }
 0x5c8   :  { %2797 = vmatprep.subr.mxu0 %v3146_v1  ;;  %2791 = vmatmul.mubr.msk.f32.vlgmr.msra.gmra.mxu1 %vm128_vm1, %v3492_v62 }
 0x5c9   :  { %2798 = vmatpush3.msra.mxu0 %v3290_v17  ;;  %2805 = vmatpush3.msra.mxu1 %v3276_v14 }
 0x5ca   :  { %2799 = vmatprep.subr.mxu0 %v3146_v1  ;;  %2806 = vmatprep.subr.mxu1 %v3146_v1 }
 0x5cb   :  { %2800 = vmatpush3.msra.mxu0 %v3298_v19  ;;  %2807 = vmatpush3.msra.mxu1 %v3284_v16 }
 0x5cc   :  { %2812 = vmatprep.mubr.msk.f32.mxu1 %vm3148_vm2, %v3146_v1  ;;  %2808 = vmatprep.subr.mxu1 %v3146_v1 }
 0x5cd   :  { %2815 = vmatprep.subr.mxu0 %v3146_v1  ;;  %2809 = vmatpush3.msra.mxu1 %v3294_v18 }
 0x5ce   :  { %2810 = vmatprep.subr.mxu1 %v3146_v1 }
 0x5cf   :  { %2811 = vmatpush3.msra.mxu1 %v3305_v21 }
 0x5d0   :  { %2826 = vmatprep.subr.mxu1 %v3146_v1 }
 0x633   :  { %v759_v63 = vpop.permute.xlu0 %758 }
 0x634   :  { %761 = vst.msk [vmem:[#allocation5] sm:$0x3] %vm320_vm0, %v759_v63 }
 0x638   :  { %v900_v0 = vpop.permute.xlu1 %899 }
 0x639   :  { %902 = vst.msk [vmem:[#allocation7] sm:$0x3] %vm320_vm0, %v900_v0 }
 0x63b   :  { %v915_v22 = vld [vmem:[#allocation5] sm:$0x3] }
 0x640   :  { %v1056_v25 = vld [vmem:[#allocation7] sm:$0x3] }
 0x684   :  { %v985_v4 = vpop.f32.mrf.mxu0 }
 0x685   :  { %v989_v6 = vadd.f32 %v985_v4, %v913_v3 }
 0x686   :  { %v2781_v7 = vpop.f32.mrf.mxu0 }
 0x687   :  { %2950 = vtanh.f32 %v989_v6  ;;  %v990_v26 = vsub.f32 0.0, %v989_v6  ;;  %v1033_v6 = vld [vmem:[#allocation5] sm:$0x3] }
 0x688   :  { %v1126_v9 = vpop.f32.mrf.mxu1 }
 0x689   :  { %v1130_v10 = vadd.f32 %v1126_v9, %v1054_v8  ;;  %v991_v27 = vmul.f32 1.442695, %v990_v26  ;;  %v1174_v8 = vld [vmem:[#allocation7] sm:$0x3] }
 0x68a   :  { %v2792_v11 = vpop.f32.mrf.mxu1 }
 0x68b   :  { %2952 = vtanh.f32 %v1130_v10  ;;  %v1131_v28 = vsub.f32 0.0, %v1130_v10 }
 0x68c   :  { %2954 = vpow2.f32 %v991_v27 }
 0x68d   :  { %v1132_v29 = vmul.f32 1.442695, %v1131_v28  ;;  %v1336_v28 = vld [vmem:[#allocation3 + $0x8] sm:$0x3] }
 0x68f   :  { %2956 = vpow2.f32 %v1132_v29 }
 0x694   :  { %v2951_v12 = vpop.eup %2950 }
 0x695   :  { %1003 = vrot.lane.b32.xlu0 %v2951_v12, %s3150_s4 }
 0x698   :  { %v2953_v24 = vpop.eup %2952 }
 0x699   :  { %998 = vrot.lane.b32.xlu0 %v915_v22, %s3149_s2  ;;  %1144 = vrot.lane.b32.xlu1 %v2953_v24, %s3150_s4  ;;  %v2955_v30 = vpop.eup %2954 }
 0x69a   :  { %v993_v31 = vadd.f32 1.0, %v2955_v30 }
 0x69c   :  { %v2957_v32 = vpop.eup %2956  ;;  %2958 = vrcp.f32 %v993_v31 }
 0x69d   :  { %1139 = vrot.lane.b32.xlu1 %v1056_v25, %s3149_s2  ;;  %v1134_v33 = vadd.f32 1.0, %v2957_v32 }
 0x69f   :  { %2960 = vrcp.f32 %v1134_v33 }
 0x6a9   :  { %v2959_v36 = vpop.eup %2958 }
 0x6ac   :  { %v2961_v23 = vpop.eup %2960 }
 0x707   :  { %v1004_v38 = vpop.permute.xlu0 %1003 }
 0x708   :  { %v1006_v39 = vmul.f32 %v2959_v36, %v1004_v38 }
 0x70a   :  { %1008 = vrot.lane.b32.xlu0 %v1006_v39, %s3149_s2 }
 0x70b   :  { %v1145_v41 = vpop.permute.xlu1 %1144  ;;  %v999_v47 = vpop.permute.xlu0 %998 }
 0x70c   :  { %v1147_v42 = vmul.f32 %v2961_v23, %v1145_v41  ;;  %v1001_v48 = vmul.f32 %v2959_v36, %v999_v47 }
 0x70e   :  { %1020 = vperm.xlu0 %2916, %v1018_v40   ;;  %1149 = vrot.lane.b32.xlu1 %v1147_v42, %s3149_s2 }
 0x70f   :  { %v1140_v51 = vpop.permute.xlu1 %1139 }
 0x710   :  { %v1142_v53 = vmul.f32 %v2961_v23, %v1140_v51  ;;  %v1300_v51 = vsel %vm1194_vm15, 1, %v3147_v2 }
 0x712   :  { %1161 = vperm.xlu1 %2917, %v1159_v44  }
 0x77c   :  { %v1009_v49 = vpop.permute.xlu0 %1008 }
 0x77d   :  { %v1011_v52 = vadd.f32 %v1009_v49, %v1001_v48 }
 0x77f   :  { %2962 = vtanh.f32 %v1011_v52 }
 0x780   :  { %v1150_v54 = vpop.permute.xlu1 %1149 }
 0x781   :  { %v1152_v55 = vadd.f32 %v1150_v54, %v1142_v53 }
 0x783   :  { %2964 = vtanh.f32 %v1152_v55 }
 0x789   :  { %v3529_v58 = vpop.permute.xlu0 %1020 }
 0x78a   :  { %vm1022_vm13 = vcmp.eq.s32.totalorder %v3529_v58, 1 }
 0x78c   :  { %v2963_v56 = vpop.eup %2962 }
 0x78d   :  { %1014 = vrot.lane.b32.xlu0 %v2963_v56, %s3150_s4  ;;  %v3531_v61 = vpop.permute.xlu1 %1161 }
 0x78e   :  { %vm1163_vm14 = vcmp.eq.s32.totalorder %v3531_v61, 1 }
 0x790   :  { %v2965_v57 = vpop.eup %2964 }
 0x791   :  { %1024 = vrot.lane.b32.xlu0 %v3480_v59, %s3151_s0  ;;  %1155 = vrot.lane.b32.xlu1 %v2965_v57, %s3150_s4 }
 0x795   :  { %1165 = vrot.lane.b32.xlu1 %v3492_v62, %s3151_s0 }
 0x7ff   :  { %v1015_v60 = vpop.permute.xlu0 %1014 }
 0x800   :  { %v3533_v63 = vmul.f32 %v2959_v36, %v1015_v60 }
 0x803   :  { %v1025_v0 = vpop.permute.xlu0 %1024  ;;  %v1156_v3 = vpop.permute.xlu1 %1155 }
 0x804   :  { %v1027_v59 = vsel %vm1022_vm13, %v3533_v63, %v1025_v0  ;;  %v3540_v4 = vmul.f32 %v2961_v23, %v1156_v3 }
 0x805   :  { %1029 = vrot.lane.b32.xlu0 %v1027_v59, %s3149_s2 }
 0x807   :  { %v1166_v62 = vpop.permute.xlu1 %1165 }
 0x808   :  { %v1168_v7 = vsel %vm1163_vm14, %v3540_v4, %v1166_v62 }
 0x809   :  { %1035 = vrot.lane.b32.xlu0 %v1033_v6, %s3149_s2  ;;  %1170 = vrot.lane.b32.xlu1 %v1168_v7, %s3149_s2 }
 0x80d   :  { %1176 = vrot.lane.b32.xlu1 %v1174_v8, %s3149_s2 }
 0x877   :  { %v1030_v9 = vpop.permute.xlu0 %1029 }
 0x878   :  { %1032 = vst.msk [vmem:[#allocation4] sm:$0x3] %vm320_vm0, %v1030_v9 }
 0x87b   :  { %v1036_v10 = vpop.permute.xlu0 %1035  ;;  %v1171_v11 = vpop.permute.xlu1 %1170 }
 0x87c   :  { %v1038_v12 = vsel %vm1022_vm13, %v1011_v52, %v1036_v10  ;;  %1173 = vst.msk [vmem:[#allocation6] sm:$0x3] %vm320_vm0, %v1171_v11 }
 0x87d   :  { %1040 = vrot.lane.b32.xlu0 %v1038_v12, %s3151_s0 }
 0x87f   :  { %v3554_v22 = vld [vmem:[#allocation4] sm:$0x3]  ;;  %v1177_v24 = vpop.permute.xlu1 %1176 }
 0x880   :  { %2802 = vmatmul.mubr.msk.f32.vlgmr.msra.gmra.mxu0 %vm128_vm1, %v3554_v22  ;;  %v1179_v25 = vsel %vm1163_vm14, %v1152_v55, %v1177_v24  ;;  %v1441_v55 = vsel %vm1335_vm3, 1, %v3147_v2 }
 0x881   :  { %2816 = vmatpush3.msra.mxu0 %v3274_v13  ;;  %2823 = vmatprep.mubr.msk.f32.mxu0 %vm3148_vm2, %v3146_v1 }
 0x882   :  { %1181 = vrot.lane.b32.xlu1 %v1179_v25, %s3151_s0  ;;  %2817 = vmatprep.subr.mxu0 %v3146_v1 }
 0x883   :  { %2818 = vmatpush3.msra.mxu0 %v3282_v15  ;;  %v3566_v26 = vld [vmem:[#allocation6] sm:$0x3]  ;;  %v1195_v15 = vld [vmem:[#allocation2 + $0x6] sm:$0x3] }
 0x884   :  { %2819 = vmatprep.subr.mxu0 %v3146_v1  ;;  %2813 = vmatmul.mubr.msk.f32.vlgmr.msra.gmra.mxu1 %vm128_vm1, %v3566_v26 }
 0x885   :  { %2820 = vmatpush3.msra.mxu0 %v3290_v17  ;;  %2827 = vmatpush3.msra.mxu1 %v3276_v14 }
 0x886   :  { %2821 = vmatprep.subr.mxu0 %v3146_v1  ;;  %2828 = vmatprep.subr.mxu1 %v3146_v1 }
 0x887   :  { %2822 = vmatpush3.msra.mxu0 %v3298_v19  ;;  %2829 = vmatpush3.msra.mxu1 %v3284_v16 }
 0x888   :  { %2834 = vmatprep.mubr.msk.f32.mxu1 %vm3148_vm2, %v3146_v1  ;;  %2830 = vmatprep.subr.mxu1 %v3146_v1 }
 0x889   :  { %2837 = vmatprep.subr.mxu0 %v3146_v1  ;;  %2831 = vmatpush3.msra.mxu1 %v3294_v18 }
 0x88a   :  { %2832 = vmatprep.subr.mxu1 %v3146_v1 }
 0x88b   :  { %2833 = vmatpush3.msra.mxu1 %v3305_v21 }
 0x88c   :  { %2848 = vmatprep.subr.mxu1 %v3146_v1 }
 0x8ef   :  { %v1041_v13 = vpop.permute.xlu0 %1040 }
 0x8f0   :  { %1043 = vst.msk [vmem:[#allocation5] sm:$0x3] %vm320_vm0, %v1041_v13 }
 0x8f4   :  { %v1182_v14 = vpop.permute.xlu1 %1181 }
 0x8f5   :  { %1184 = vst.msk [vmem:[#allocation7] sm:$0x3] %vm320_vm0, %v1182_v14 }
 0x8f7   :  { %v1197_v21 = vld [vmem:[#allocation5] sm:$0x3] }
 0x8fc   :  { %v1338_v33 = vld [vmem:[#allocation7] sm:$0x3] }
 0x8fd   :  { %v1456_v14 = vld [vmem:[#allocation7] sm:$0x3] }
 0x940   :  { %v1267_v16 = vpop.f32.mrf.mxu0 }
 0x941   :  { %v1271_v17 = vadd.f32 %v1267_v16, %v1195_v15 }
 0x942   :  { %v2803_v27 = vpop.f32.mrf.mxu0 }
 0x943   :  { %2966 = vtanh.f32 %v1271_v17  ;;  %v1272_v36 = vsub.f32 0.0, %v1271_v17 }
 0x944   :  { %v1408_v29 = vpop.f32.mrf.mxu1 }
 0x945   :  { %v1412_v18 = vadd.f32 %v1408_v29, %v1336_v28  ;;  %v1273_v38 = vmul.f32 1.442695, %v1272_v36  ;;  %v3658_v36 = vld [vmem:[#allocation15 + $0x10] sm:$0xff] }
 0x946   :  { %v2814_v30 = vpop.f32.mrf.mxu1 }
 0x947   :  { %2968 = vtanh.f32 %v1412_v18  ;;  %v1413_v39 = vsub.f32 0.0, %v1412_v18  ;;  %v3634_v30 = vld [vmem:[#allocation14 + $0x18] sm:$0xff] }
 0x948   :  { %2970 = vpow2.f32 %v1273_v38  ;;  %v3665_v38 = vld [vmem:[#allocation15 + $0x8] sm:$0xff] }
 0x949   :  { %v1414_v40 = vmul.f32 1.442695, %v1413_v39  ;;  %v3669_v39 = vld [vmem:[#allocation15] sm:$0xff] }
 0x94b   :  { %2972 = vpow2.f32 %v1414_v40 }
 0x950   :  { %v2967_v31 = vpop.eup %2966 }
 0x951   :  { %1285 = vrot.lane.b32.xlu0 %v2967_v31, %s3150_s4  ;;  %v3641_v31 = vld [vmem:[#allocation14 + $0x10] sm:$0xff] }
 0x954   :  { %v2969_v32 = vpop.eup %2968 }
 0x955   :  { %1280 = vrot.lane.b32.xlu0 %v1197_v21, %s3149_s2  ;;  %1426 = vrot.lane.b32.xlu1 %v2969_v32, %s3150_s4  ;;  %v2971_v23 = vpop.eup %2970  ;;  %v3649_v32 = vld [vmem:[#allocation14 + $0x8] sm:$0xff] }
 0x956   :  { %v1275_v41 = vadd.f32 1.0, %v2971_v23  ;;  %v1476_v23 = vld [vmem:[#allocation2 + $0x8] sm:$0x3] }
 0x958   :  { %v2973_v42 = vpop.eup %2972  ;;  %2974 = vrcp.f32 %v1275_v41 }
 0x959   :  { %1421 = vrot.lane.b32.xlu1 %v1338_v33, %s3149_s2  ;;  %v1416_v44 = vadd.f32 1.0, %v2973_v42  ;;  %v3652_v33 = vld [vmem:[#allocation15 + $0x18] sm:$0xff] }
 0x95b   :  { %2976 = vrcp.f32 %v1416_v44 }
 0x965   :  { %v2975_v47 = vpop.eup %2974 }
 0x968   :  { %v2977_v52 = vpop.eup %2976 }
 0x9c3   :  { %v1286_v48 = vpop.permute.xlu0 %1285 }
 0x9c4   :  { %v1288_v49 = vmul.f32 %v2975_v47, %v1286_v48 }
 0x9c6   :  { %1290 = vrot.lane.b32.xlu0 %v1288_v49, %s3149_s2 }
 0x9c7   :  { %v1427_v53 = vpop.permute.xlu1 %1426  ;;  %v1281_v56 = vpop.permute.xlu0 %1280 }
 0x9c8   :  { %v1429_v54 = vmul.f32 %v2977_v52, %v1427_v53  ;;  %v1283_v57 = vmul.f32 %v2975_v47, %v1281_v56 }
 0x9ca   :  { %1302 = vperm.xlu0 %2916, %v1300_v51   ;;  %1431 = vrot.lane.b32.xlu1 %v1429_v54, %s3149_s2 }
 0x9cb   :  { %v1422_v0 = vpop.permute.xlu1 %1421 }
 0x9cc   :  { %v1424_v59 = vmul.f32 %v2977_v52, %v1422_v0 }
 0x9ce   :  { %1443 = vperm.xlu1 %2917, %v1441_v55  }
 0xa38   :  { %v1291_v60 = vpop.permute.xlu0 %1290 }
 0xa39   :  { %v1293_v3 = vadd.f32 %v1291_v60, %v1283_v57 }
 0xa3b   :  { %2978 = vtanh.f32 %v1293_v3 }
 0xa3c   :  { %v1432_v62 = vpop.permute.xlu1 %1431 }
 0xa3d   :  { %v1434_v6 = vadd.f32 %v1432_v62, %v1424_v59 }
 0xa3f   :  { %2980 = vtanh.f32 %v1434_v6 }
 0xa45   :  { %v3603_v2 = vpop.permute.xlu0 %1302 }
 0xa46   :  { %vm1304_vm4 = vcmp.eq.s32.totalorder %v3603_v2, 1 }
 0xa48   :  { %v2979_v7 = vpop.eup %2978 }
 0xa49   :  { %1296 = vrot.lane.b32.xlu0 %v2979_v7, %s3150_s4  ;;  %v3605_v9 = vpop.permute.xlu1 %1443 }
 0xa4a   :  { %vm1445_vm7 = vcmp.eq.s32.totalorder %v3605_v9, 1 }
 0xa4c   :  { %v2981_v5 = vpop.eup %2980 }
 0xa4d   :  { %1306 = vrot.lane.b32.xlu0 %v3554_v22, %s3151_s0  ;;  %1437 = vrot.lane.b32.xlu1 %v2981_v5, %s3150_s4 }
 0xa51   :  { %1447 = vrot.lane.b32.xlu1 %v3566_v26, %s3151_s0  ;;  %v1315_v26 = vld [vmem:[#allocation5] sm:$0x3] }
 0xabb   :  { %v1297_v8 = vpop.permute.xlu0 %1296 }
 0xabc   :  { %v3607_v10 = vmul.f32 %v2975_v47, %v1297_v8  ;;  %v1611_v47 = vld [vmem:[#allocation3 + $0x6] sm:$0x3] }
 0xabf   :  { %v1307_v11 = vpop.permute.xlu0 %1306  ;;  %v1438_v12 = vpop.permute.xlu1 %1437 }
 0xac0   :  { %v1309_v22 = vsel %vm1304_vm4, %v3607_v10, %v1307_v11  ;;  %v3614_v24 = vmul.f32 %v2977_v52, %v1438_v12 }
 0xac1   :  { %1311 = vrot.lane.b32.xlu0 %v1309_v22, %s3149_s2 }
 0xac3   :  { %v1448_v25 = vpop.permute.xlu1 %1447 }
 0xac4   :  { %v1450_v13 = vsel %vm1445_vm7, %v3614_v24, %v1448_v25 }
 0xac5   :  { %1317 = vrot.lane.b32.xlu0 %v1315_v26, %s3149_s2  ;;  %1452 = vrot.lane.b32.xlu1 %v1450_v13, %s3149_s2 }
 0xac9   :  { %1458 = vrot.lane.b32.xlu1 %v1456_v14, %s3149_s2 }
 0xb33   :  { %v1312_v15 = vpop.permute.xlu0 %1311 }
 0xb34   :  { %1314 = vst.msk [vmem:[#allocation4] sm:$0x3] %vm320_vm0, %v1312_v15 }
 0xb37   :  { %v1318_v16 = vpop.permute.xlu0 %1317  ;;  %v1453_v17 = vpop.permute.xlu1 %1452 }
 0xb38   :  { %v1320_v27 = vsel %vm1304_vm4, %v1293_v3, %v1318_v16  ;;  %1455 = vst.msk [vmem:[#allocation6] sm:$0x3] %vm320_vm0, %v1453_v17 }
 0xb39   :  { %1322 = vrot.lane.b32.xlu0 %v1320_v27, %s3151_s0 }
 0xb3b   :  { %v3628_v28 = vld [vmem:[#allocation4] sm:$0x3]  ;;  %v1459_v29 = vpop.permute.xlu1 %1458 }
 0xb3c   :  { %2824 = vmatmul.mubr.msk.f32.vlgmr.msra.gmra.mxu0 %vm128_vm1, %v3628_v28  ;;  %v1461_v18 = vsel %vm1445_vm7, %v1434_v6, %v1459_v29 }
 0xb3d   :  { %2838 = vmatpush3.msra.mxu0 %v3634_v30  ;;  %2845 = vmatprep.mubr.msk.f32.mxu0 %vm3148_vm2, %v3146_v1 }
 0xb3e   :  { %1463 = vrot.lane.b32.xlu1 %v1461_v18, %s3151_s0  ;;  %2839 = vmatprep.subr.mxu0 %v3146_v1 }
 0xb3f   :  { %2840 = vmatpush3.msra.mxu0 %v3641_v31  ;;  %v3644_v21 = vld [vmem:[#allocation6] sm:$0x3] }
 0xb40   :  { %2841 = vmatprep.subr.mxu0 %v3146_v1  ;;  %2835 = vmatmul.mubr.msk.f32.vlgmr.msra.gmra.mxu1 %vm128_vm1, %v3644_v21 }
 0xb41   :  { %2842 = vmatpush3.msra.mxu0 %v3649_v32  ;;  %2849 = vmatpush3.msra.mxu1 %v3652_v33 }
 0xb42   :  { %2843 = vmatprep.subr.mxu0 %v3146_v1  ;;  %2850 = vmatprep.subr.mxu1 %v3146_v1 }
 0xb43   :  { %2844 = vmatpush3.msra.mxu0 %v3298_v19  ;;  %2851 = vmatpush3.msra.mxu1 %v3658_v36 }
 0xb44   :  { %2856 = vmatprep.mubr.msk.f32.mxu1 %vm3148_vm2, %v3146_v1  ;;  %2852 = vmatprep.subr.mxu1 %v3146_v1 }
 0xb45   :  { %2859 = vmatprep.subr.mxu0 %v3146_v1  ;;  %2853 = vmatpush3.msra.mxu1 %v3665_v38 }
 0xb46   :  { %2854 = vmatprep.subr.mxu1 %v3146_v1 }
 0xb47   :  { %2855 = vmatpush3.msra.mxu1 %v3669_v39 }
 0xb48   :  { %2870 = vmatprep.subr.mxu1 %v3146_v1 }
 0xbab   :  { %v1323_v19 = vpop.permute.xlu0 %1322 }
 0xbac   :  { %1325 = vst.msk [vmem:[#allocation5] sm:$0x3] %vm320_vm0, %v1323_v19 }
 0xbb0   :  { %v1464_v40 = vpop.permute.xlu1 %1463 }
 0xbb1   :  { %1466 = vst.msk [vmem:[#allocation7] sm:$0x3] %vm320_vm0, %v1464_v40 }
 0xbb3   :  { %v1478_v53 = vld [vmem:[#allocation5] sm:$0x3] }
 0xbb8   :  { %v1613_v55 = vld [vmem:[#allocation7] sm:$0x3] }
 0xbfc   :  { %v1548_v41 = vpop.f32.mrf.mxu0 }
 0xbfd   :  { %v1552_v42 = vadd.f32 %v1548_v41, %v1476_v23 }
 0xbfe   :  { %v2825_v44 = vpop.f32.mrf.mxu0 }
 0xbff   :  { %2982 = vtanh.f32 %v1552_v42  ;;  %v1553_v56 = vsub.f32 0.0, %v1552_v42 }
 0xc00   :  { %v1683_v48 = vpop.f32.mrf.mxu1 }
 0xc01   :  { %v1687_v49 = vadd.f32 %v1683_v48, %v1611_v47  ;;  %v1554_v57 = vmul.f32 1.442695, %v1553_v56 }
 0xc02   :  { %v2836_v51 = vpop.f32.mrf.mxu1 }
 0xc03   :  { %2984 = vtanh.f32 %v1687_v49  ;;  %v1688_v60 = vsub.f32 0.0, %v1687_v49 }
 0xc04   :  { %2986 = vpow2.f32 %v1554_v57 }
 0xc05   :  { %v1689_v0 = vmul.f32 1.442695, %v1688_v60  ;;  %v3727_v60 = vld [vmem:[#allocation14] sm:$0xff] }
 0xc07   :  { %2988 = vpow2.f32 %v1689_v0 }
 0xc0c   :  { %v2983_v52 = vpop.eup %2982 }
 0xc0d   :  { %1566 = vrot.lane.b32.xlu0 %v2983_v52, %s3150_s4 }
 0xc10   :  { %v2985_v54 = vpop.eup %2984 }
 0xc11   :  { %1561 = vrot.lane.b32.xlu0 %v1478_v53, %s3149_s2  ;;  %1701 = vrot.lane.b32.xlu1 %v2985_v54, %s3150_s4  ;;  %v2987_v3 = vpop.eup %2986 }
 0xc12   :  { %v1556_v59 = vadd.f32 1.0, %v2987_v3 }
 0xc14   :  { %v2989_v62 = vpop.eup %2988  ;;  %2990 = vrcp.f32 %v1556_v59  ;;  %v1746_v59 = vld [vmem:[#allocation2 + $0xa] sm:$0x3] }
 0xc15   :  { %1696 = vrot.lane.b32.xlu1 %v1613_v55, %s3149_s2  ;;  %v1691_v6 = vadd.f32 1.0, %v2989_v62 }
 0xc17   :  { %2992 = vrcp.f32 %v1691_v6 }
 0xc21   :  { %v2991_v7 = vpop.eup %2990 }
 0xc24   :  { %v2993_v11 = vpop.eup %2992 }
 0xc7f   :  { %v1567_v5 = vpop.permute.xlu0 %1566 }
 0xc80   :  { %v1569_v8 = vmul.f32 %v2991_v7, %v1567_v5  ;;  %v1881_v5 = vld [vmem:[#allocation3 + $0x4] sm:$0x3] }
 0xc82   :  { %1571 = vrot.lane.b32.xlu0 %v1569_v8, %s3149_s2 }
 0xc83   :  { %v1702_v12 = vpop.permute.xlu1 %1701  ;;  %v1562_v25 = vpop.permute.xlu0 %1561 }
 0xc84   :  { %v1704_v22 = vmul.f32 %v2993_v11, %v1702_v12  ;;  %v1564_v26 = vmul.f32 %v2991_v7, %v1562_v25 }
 0xc86   :  { %1706 = vrot.lane.b32.xlu1 %v1704_v22, %s3149_s2 }
 0xc87   :  { %v1697_v14 = vpop.permute.xlu1 %1696 }
 0xc88   :  { %v1699_v16 = vmul.f32 %v2993_v11, %v1697_v14 }
 0xcf4   :  { %v1572_v13 = vpop.permute.xlu0 %1571 }
 0xcf5   :  { %v1574_v15 = vadd.f32 %v1572_v13, %v1564_v26 }
 0xcf7   :  { %2994 = vtanh.f32 %v1574_v15 }
 0xcf8   :  { %v1707_v17 = vpop.permute.xlu1 %1706 }
 0xcf9   :  { %v1709_v27 = vadd.f32 %v1707_v17, %v1699_v16 }
 0xcfb   :  { %2996 = vtanh.f32 %v1709_v27 }
 0xd04   :  { %v2995_v29 = vpop.eup %2994 }
 0xd05   :  { %1577 = vrot.lane.b32.xlu0 %v2995_v29, %s3150_s4 }
 0xd08   :  { %v2997_v18 = vpop.eup %2996 }
 0xd09   :  { %1582 = vrot.lane.b32.xlu0 %v3628_v28, %s3151_s0  ;;  %1712 = vrot.lane.b32.xlu1 %v2997_v18, %s3150_s4  ;;  %v1591_v28 = vld [vmem:[#allocation5] sm:$0x3] }
 0xd0d   :  { %1717 = vrot.lane.b32.xlu1 %v3644_v21, %s3151_s0  ;;  %v1726_v21 = vld [vmem:[#allocation7] sm:$0x3] }
 0xd77   :  { %v1578_v19 = vpop.permute.xlu0 %1577 }
 0xd78   :  { %v3687_v40 = vmul.f32 %v2991_v7, %v1578_v19 }
 0xd7b   :  { %v1583_v23 = vpop.permute.xlu0 %1582  ;;  %v1713_v41 = vpop.permute.xlu1 %1712 }
 0xd7c   :  { %v1585_v42 = vsel %vm1445_vm7, %v3687_v40, %v1583_v23  ;;  %v3693_v44 = vmul.f32 %v2993_v11, %v1713_v41 }
 0xd7d   :  { %1587 = vrot.lane.b32.xlu0 %v1585_v42, %s3149_s2 }
 0xd7e   :  { %v1716_v9 = vsel %vm1304_vm4, %v3693_v44, 0.0 }
 0xd7f   :  { %v1718_v47 = vpop.permute.xlu1 %1717 }
 0xd80   :  { %v1720_v48 = vsel %vm1304_vm4, %v3693_v44, %v1718_v47 }
 0xd81   :  { %1593 = vrot.lane.b32.xlu0 %v1591_v28, %s3149_s2  ;;  %1722 = vrot.lane.b32.xlu1 %v1720_v48, %s3149_s2 }
 0xd85   :  { %1728 = vrot.lane.b32.xlu1 %v1726_v21, %s3149_s2 }
 0xdef   :  { %v1588_v49 = vpop.permute.xlu0 %1587 }
 0xdf0   :  { %1590 = vst.msk [vmem:[#allocation4] sm:$0x3] %vm320_vm0, %v1588_v49 }
 0xdf3   :  { %v1594_v51 = vpop.permute.xlu0 %1593  ;;  %v1723_v52 = vpop.permute.xlu1 %1722 }
 0xdf4   :  { %v1596_v53 = vsel %vm1445_vm7, %v1574_v15, %v1594_v51  ;;  %1725 = vst.msk [vmem:[#allocation6] sm:$0x3] %vm320_vm0, %v1723_v52 }
 0xdf5   :  { %1598 = vrot.lane.b32.xlu0 %v1596_v53, %s3151_s0 }
 0xdf7   :  { %v3706_v54 = vld [vmem:[#allocation4] sm:$0x3]  ;;  %v1729_v55 = vpop.permute.xlu1 %1728 }
 0xdf8   :  { %2846 = vmatmul.mubr.msk.f32.vlgmr.msra.gmra.mxu0 %vm128_vm1, %v3706_v54  ;;  %v1731_v56 = vsel %vm1304_vm4, %v1709_v27, %v1729_v55 }
 0xdf9   :  { %2860 = vmatpush3.msra.mxu0 %v3634_v30  ;;  %2867 = vmatprep.mubr.msk.f32.mxu0 %vm3148_vm2, %v3146_v1 }
 0xdfa   :  { %1733 = vrot.lane.b32.xlu1 %v1731_v56, %s3151_s0  ;;  %2861 = vmatprep.subr.mxu0 %v3146_v1 }
 0xdfb   :  { %2862 = vmatpush3.msra.mxu0 %v3641_v31  ;;  %v3718_v57 = vld [vmem:[#allocation6] sm:$0x3] }
 0xdfc   :  { %2863 = vmatprep.subr.mxu0 %v3146_v1  ;;  %2857 = vmatmul.mubr.msk.f32.vlgmr.msra.gmra.mxu1 %vm128_vm1, %v3718_v57 }
 0xdfd   :  { %2864 = vmatpush3.msra.mxu0 %v3649_v32  ;;  %2871 = vmatpush3.msra.mxu1 %v3652_v33 }
 0xdfe   :  { %2865 = vmatprep.subr.mxu0 %v3146_v1  ;;  %2872 = vmatprep.subr.mxu1 %v3146_v1 }
 0xdff   :  { %2866 = vmatpush3.msra.mxu0 %v3727_v60  ;;  %2873 = vmatpush3.msra.mxu1 %v3658_v36 }
 0xe00   :  { %2878 = vmatprep.mubr.msk.f32.mxu1 %vm3148_vm2, %v3146_v1  ;;  %2874 = vmatprep.subr.mxu1 %v3146_v1 }
 0xe01   :  { %2881 = vmatprep.subr.mxu0 %v3146_v1  ;;  %2875 = vmatpush3.msra.mxu1 %v3665_v38 }
 0xe02   :  { %2876 = vmatprep.subr.mxu1 %v3146_v1 }
 0xe03   :  { %2877 = vmatpush3.msra.mxu1 %v3669_v39 }
 0xe04   :  { %2892 = vmatprep.subr.mxu1 %v3146_v1 }
 0xe67   :  { %v1599_v0 = vpop.permute.xlu0 %1598 }
 0xe68   :  { %1601 = vst.msk [vmem:[#allocation5] sm:$0x3] %vm320_vm0, %v1599_v0 }
 0xe6c   :  { %v1734_v3 = vpop.permute.xlu1 %1733 }
 0xe6d   :  { %1736 = vst.msk [vmem:[#allocation7] sm:$0x3] %vm320_vm0, %v1734_v3 }
 0xe6f   :  { %v1748_v25 = vld [vmem:[#allocation5] sm:$0x3] }
 0xe74   :  { %v1883_v13 = vld [vmem:[#allocation7] sm:$0x3] }
 0xeb8   :  { %v1818_v62 = vpop.f32.mrf.mxu0 }
 0xeb9   :  { %v1822_v6 = vadd.f32 %v1818_v62, %v1746_v59 }
 0xeba   :  { %v2847_v7 = vpop.f32.mrf.mxu0 }
 0xebb   :  { %2998 = vtanh.f32 %v1822_v6  ;;  %v1823_v14 = vsub.f32 0.0, %v1822_v6 }
 0xebc   :  { %v1953_v8 = vpop.f32.mrf.mxu1 }
 0xebd   :  { %v1957_v11 = vadd.f32 %v1953_v8, %v1881_v5  ;;  %v1824_v15 = vmul.f32 1.442695, %v1823_v14 }
 0xebe   :  { %v2858_v12 = vpop.f32.mrf.mxu1 }
 0xebf   :  { %3000 = vtanh.f32 %v1957_v11  ;;  %v1958_v16 = vsub.f32 0.0, %v1957_v11 }
 0xec0   :  { %3002 = vpow2.f32 %v1824_v15 }
 0xec1   :  { %v1959_v17 = vmul.f32 1.442695, %v1958_v16 }
 0xec3   :  { %3004 = vpow2.f32 %v1959_v17 }
 0xec8   :  { %v2999_v22 = vpop.eup %2998 }
 0xec9   :  { %1836 = vrot.lane.b32.xlu0 %v2999_v22, %s3150_s4 }
 0xecc   :  { %v3001_v26 = vpop.eup %3000 }
 0xecd   :  { %1831 = vrot.lane.b32.xlu0 %v1748_v25, %s3149_s2  ;;  %1971 = vrot.lane.b32.xlu1 %v3001_v26, %s3150_s4  ;;  %v3003_v27 = vpop.eup %3002 }
 0xece   :  { %v1826_v29 = vadd.f32 1.0, %v3003_v27 }
 0xed0   :  { %v3005_v18 = vpop.eup %3004  ;;  %3006 = vrcp.f32 %v1826_v29  ;;  %v2151_v29 = vld [vmem:[#allocation3 + $0x2] sm:$0x3] }
 0xed1   :  { %1966 = vrot.lane.b32.xlu1 %v1883_v13, %s3149_s2  ;;  %v1961_v19 = vadd.f32 1.0, %v3005_v18 }
 0xed3   :  { %3008 = vrcp.f32 %v1961_v19 }
 0xedd   :  { %v3007_v23 = vpop.eup %3006 }
 0xee0   :  { %v3009_v47 = vpop.eup %3008 }
 0xf3b   :  { %v1837_v41 = vpop.permute.xlu0 %1836 }
 0xf3c   :  { %v1839_v42 = vmul.f32 %v3007_v23, %v1837_v41 }
 0xf3e   :  { %1841 = vrot.lane.b32.xlu0 %v1839_v42, %s3149_s2 }
 0xf3f   :  { %v1972_v28 = vpop.permute.xlu1 %1971  ;;  %v1832_v21 = vpop.permute.xlu0 %1831 }
 0xf40   :  { %v1974_v48 = vmul.f32 %v3009_v47, %v1972_v28  ;;  %v1834_v49 = vmul.f32 %v3007_v23, %v1832_v21 }
 0xf42   :  { %1976 = vrot.lane.b32.xlu1 %v1974_v48, %s3149_s2 }
 0xf43   :  { %v1967_v52 = vpop.permute.xlu1 %1966 }
 0xf44   :  { %v1969_v55 = vmul.f32 %v3009_v47, %v1967_v52 }
 0xfb0   :  { %v1842_v51 = vpop.permute.xlu0 %1841 }
 0xfb1   :  { %v1844_v53 = vadd.f32 %v1842_v51, %v1834_v49 }
 0xfb3   :  { %3010 = vtanh.f32 %v1844_v53 }
 0xfb4   :  { %v1977_v56 = vpop.permute.xlu1 %1976 }
 0xfb5   :  { %v1979_v0 = vadd.f32 %v1977_v56, %v1969_v55 }
 0xfb7   :  { %3012 = vtanh.f32 %v1979_v0 }
 0xfc0   :  { %v3011_v3 = vpop.eup %3010 }
 0xfc1   :  { %1847 = vrot.lane.b32.xlu0 %v3011_v3, %s3150_s4 }
 0xfc4   :  { %v3013_v59 = vpop.eup %3012 }
 0xfc5   :  { %1852 = vrot.lane.b32.xlu0 %v3706_v54, %s3151_s0  ;;  %1982 = vrot.lane.b32.xlu1 %v3013_v59, %s3150_s4  ;;  %v1861_v54 = vld [vmem:[#allocation5] sm:$0x3] }
 0xfc9   :  { %1987 = vrot.lane.b32.xlu1 %v3718_v57, %s3151_s0  ;;  %v1996_v57 = vld [vmem:[#allocation7] sm:$0x3] }
0x1033   :  { %v1848_v62 = vpop.permute.xlu0 %1847 }
0x1034   :  { %v3753_v6 = vmul.f32 %v3007_v23, %v1848_v62 }
0x1037   :  { %v1853_v7 = vpop.permute.xlu0 %1852  ;;  %v1983_v5 = vpop.permute.xlu1 %1982 }
0x1038   :  { %v1855_v8 = vsel %vm1163_vm14, %v3753_v6, %v1853_v7  ;;  %v3759_v11 = vmul.f32 %v3009_v47, %v1983_v5 }
0x1039   :  { %1857 = vrot.lane.b32.xlu0 %v1855_v8, %s3149_s2 }
0x103b   :  { %v1988_v12 = vpop.permute.xlu1 %1987 }
0x103c   :  { %v1990_v22 = vsel %vm1022_vm13, %v3759_v11, %v1988_v12 }
0x103d   :  { %1863 = vrot.lane.b32.xlu0 %v1861_v54, %s3149_s2  ;;  %1992 = vrot.lane.b32.xlu1 %v1990_v22, %s3149_s2 }
0x1041   :  { %1998 = vrot.lane.b32.xlu1 %v1996_v57, %s3149_s2 }
0x10ab   :  { %v1858_v25 = vpop.permute.xlu0 %1857 }
0x10ac   :  { %1860 = vst.msk [vmem:[#allocation4] sm:$0x3] %vm320_vm0, %v1858_v25 }
0x10af   :  { %v1864_v26 = vpop.permute.xlu0 %1863  ;;  %v1993_v13 = vpop.permute.xlu1 %1992 }
0x10b0   :  { %v1866_v14 = vsel %vm1163_vm14, %v1844_v53, %v1864_v26  ;;  %1995 = vst.msk [vmem:[#allocation6] sm:$0x3] %vm320_vm0, %v1993_v13 }
0x10b1   :  { %1868 = vrot.lane.b32.xlu0 %v1866_v14, %s3151_s0 }
0x10b3   :  { %v3772_v15 = vld [vmem:[#allocation4] sm:$0x3]  ;;  %v1999_v16 = vpop.permute.xlu1 %1998 }
0x10b4   :  { %2868 = vmatmul.mubr.msk.f32.vlgmr.msra.gmra.mxu0 %vm128_vm1, %v3772_v15  ;;  %v2001_v17 = vsel %vm1022_vm13, %v1979_v0, %v1999_v16 }
0x10b5   :  { %2882 = vmatpush3.msra.mxu0 %v3634_v30  ;;  %2889 = vmatprep.mubr.msk.f32.mxu0 %vm3148_vm2, %v3146_v1 }
0x10b6   :  { %2003 = vrot.lane.b32.xlu1 %v2001_v17, %s3151_s0  ;;  %2883 = vmatprep.subr.mxu0 %v3146_v1 }
0x10b7   :  { %2884 = vmatpush3.msra.mxu0 %v3641_v31  ;;  %v3784_v27 = vld [vmem:[#allocation6] sm:$0x3] }
0x10b8   :  { %2885 = vmatprep.subr.mxu0 %v3146_v1  ;;  %2879 = vmatmul.mubr.msk.f32.vlgmr.msra.gmra.mxu1 %vm128_vm1, %v3784_v27 }
0x10b9   :  { %2886 = vmatpush3.msra.mxu0 %v3649_v32  ;;  %2893 = vmatpush3.msra.mxu1 %v3652_v33  ;;  %v2016_v32 = vld [vmem:[#allocation2 + $0xc] sm:$0x3] }
0x10ba   :  { %2887 = vmatprep.subr.mxu0 %v3146_v1  ;;  %2894 = vmatprep.subr.mxu1 %v3146_v1 }
0x10bb   :  { %2888 = vmatpush3.msra.mxu0 %v3727_v60  ;;  %2895 = vmatpush3.msra.mxu1 %v3658_v36 }
0x10bc   :  { %2900 = vmatprep.mubr.msk.f32.mxu1 %vm3148_vm2, %v3146_v1  ;;  %2896 = vmatprep.subr.mxu1 %v3146_v1  ;;  %vm628_vm2 = vcmask 9224  }
0x10bd   :  { %2897 = vmatpush3.msra.mxu1 %v3665_v38 }
0x10be   :  { %2898 = vmatprep.subr.mxu1 %v3146_v1 }
0x10bf   :  { %2899 = vmatpush3.msra.mxu1 %v3669_v39 }
0x1123   :  { %v1869_v30 = vpop.permute.xlu0 %1868 }
0x1124   :  { %1871 = vst.msk [vmem:[#allocation5] sm:$0x3] %vm320_vm0, %v1869_v30 }
0x1128   :  { %v2004_v31 = vpop.permute.xlu1 %2003 }
0x1129   :  { %2006 = vst.msk [vmem:[#allocation7] sm:$0x3] %vm320_vm0, %v2004_v31 }
0x112b   :  { %v2018_v1 = vld [vmem:[#allocation5] sm:$0x3] }
0x1130   :  { %v2153_v41 = vld [vmem:[#allocation7] sm:$0x3] }
0x1174   :  { %v2088_v33 = vpop.f32.mrf.mxu0 }
0x1175   :  { %v2092_v36 = vadd.f32 %v2088_v33, %v2016_v32 }
0x1176   :  { %v2869_v60 = vpop.f32.mrf.mxu0 }
0x1177   :  { %3014 = vtanh.f32 %v2092_v36  ;;  %v2093_v42 = vsub.f32 0.0, %v2092_v36  ;;  %v446_v36 = vsel %vm445_vm5, %v3385_v37, 0.0  ;;  %v2266_v37 = vld [vmem:[#allocation7] sm:$0x3] }
0x1178   :  { %v2223_v18 = vpop.f32.mrf.mxu1 }
0x1179   :  { %v2227_v19 = vadd.f32 %v2223_v18, %v2151_v29  ;;  %v2094_v47 = vmul.f32 1.442695, %v2093_v42 }
0x117a   :  { %v2880_v23 = vpop.f32.mrf.mxu1 }
0x117b   :  { %3016 = vtanh.f32 %v2227_v19  ;;  %v2228_v28 = vsub.f32 0.0, %v2227_v19  ;;  %v2131_v23 = vld [vmem:[#allocation5] sm:$0x3] }
0x117c   :  { %3018 = vpow2.f32 %v2094_v47  ;;  %v596_v47 = vsel %vm595_vm6, %v3392_v20, 0.0  ;;  %v882_v20 = vsel %vm881_vm10, %v3466_v50, 0.0 }
0x117d   :  { %v2229_v48 = vmul.f32 1.442695, %v2228_v28 }
0x117f   :  { %3020 = vpow2.f32 %v2229_v48 }
0x1184   :  { %v3015_v38 = vpop.eup %3014 }
0x1185   :  { %2106 = vrot.lane.b32.xlu0 %v3015_v38, %s3150_s4 }
0x1188   :  { %v3017_v39 = vpop.eup %3016 }
0x1189   :  { %2101 = vrot.lane.b32.xlu0 %v2018_v1, %s3149_s2  ;;  %2241 = vrot.lane.b32.xlu1 %v3017_v39, %s3150_s4  ;;  %v3019_v21 = vpop.eup %3018 }
0x118a   :  { %v2096_v49 = vadd.f32 1.0, %v3019_v21  ;;  %v741_v21 = vsel %vm740_vm9, %v3459_v46, 0.0  ;;  %v2421_v46 = vld [vmem:[#allocation3] sm:$0x3] }
0x118c   :  { %v3021_v51 = vpop.eup %3020  ;;  %3022 = vrcp.f32 %v2096_v49 }
0x118d   :  { %2236 = vrot.lane.b32.xlu1 %v2153_v41, %s3149_s2  ;;  %v2231_v52 = vadd.f32 1.0, %v3021_v51 }
0x118f   :  { %3024 = vrcp.f32 %v2231_v52 }
0x1199   :  { %v3023_v53 = vpop.eup %3022 }
0x119c   :  { %v3025_v0 = vpop.eup %3024 }
0x11f7   :  { %v2107_v55 = vpop.permute.xlu0 %2106 }
0x11f8   :  { %v2109_v56 = vmul.f32 %v3023_v53, %v2107_v55 }
0x11fa   :  { %2111 = vrot.lane.b32.xlu0 %v2109_v56, %s3149_s2 }
0x11fb   :  { %v2242_v3 = vpop.permute.xlu1 %2241  ;;  %v2102_v62 = vpop.permute.xlu0 %2101 }
0x11fc   :  { %v2244_v59 = vmul.f32 %v3025_v0, %v2242_v3  ;;  %v2104_v7 = vmul.f32 %v3023_v53, %v2102_v62  ;;  %v2286_v3 = vld [vmem:[#allocation2 + $0xe] sm:$0x3] }
0x11fe   :  { %2246 = vrot.lane.b32.xlu1 %v2244_v59, %s3149_s2 }
0x11ff   :  { %v2237_v8 = vpop.permute.xlu1 %2236 }
0x1200   :  { %v2239_v54 = vmul.f32 %v3025_v0, %v2237_v8 }
0x126c   :  { %v2112_v5 = vpop.permute.xlu0 %2111 }
0x126d   :  { %v2114_v12 = vadd.f32 %v2112_v5, %v2104_v7 }
0x126f   :  { %3026 = vtanh.f32 %v2114_v12 }
0x1270   :  { %v2247_v22 = vpop.permute.xlu1 %2246 }
0x1271   :  { %v3809_v57 = vadd.f32 %v2247_v22, %v2239_v54 }
0x1273   :  { %3028 = vtanh.f32 %v3809_v57 }
0x127c   :  { %v3027_v25 = vpop.eup %3026 }
0x127d   :  { %2117 = vrot.lane.b32.xlu0 %v3027_v25, %s3150_s4 }
0x1280   :  { %v3029_v26 = vpop.eup %3028 }
0x1281   :  { %2122 = vrot.lane.b32.xlu0 %v3772_v15, %s3151_s0  ;;  %2252 = vrot.lane.b32.xlu1 %v3029_v26, %s3150_s4  ;;  %v2596_v15 = vld [vmem:[%s4039_s11] ss:$0 sm:$0xff]  ;;  %s3152_s11 = smov 127  }
0x1285   :  { %2257 = vrot.lane.b32.xlu1 %v3784_v27, %s3151_s0 }
0x12ef   :  { %v2118_v13 = vpop.permute.xlu0 %2117 }
0x12f0   :  { %v3818_v14 = vmul.f32 %v3023_v53, %v2118_v13 }
0x12f2   :  { %v2121_v2 = vsel %vm881_vm10, %v3818_v14, 0.0 }
0x12f3   :  { %v2123_v16 = vpop.permute.xlu0 %2122  ;;  %v2253_v17 = vpop.permute.xlu1 %2252 }
0x12f4   :  { %v2125_v30 = vsel %vm881_vm10, %v3818_v14, %v2123_v16  ;;  %v3827_v31 = vmul.f32 %v3025_v0, %v2253_v17  ;;  %v1023_v17 = vsel %vm1022_vm13, %v3533_v63, 0.0 }
0x12f5   :  { %2127 = vrot.lane.b32.xlu0 %v2125_v30, %s3149_s2 }
0x12f6   :  { %v2256_v61 = vsel %vm740_vm9, %v3827_v31, 0.0 }
0x12f7   :  { %v2258_v32 = vpop.permute.xlu1 %2257 }
0x12f8   :  { %v2260_v27 = vsel %vm740_vm9, %v3827_v31, %v2258_v32 }
0x12f9   :  { %472 = vrot.lane.b32.xlu0 %v2596_v15, %s3151_s0  ;;  %2262 = vrot.lane.b32.xlu1 %v2260_v27, %s3149_s2 }
0x1367   :  { %v2128_v33 = vpop.permute.xlu0 %2127 }
0x1368   :  { %2130 = vst.msk [vmem:[#allocation4] sm:$0x3] %vm320_vm0, %v2128_v33 }
0x136b   :  { %v3838_v60 = vpop.permute.xlu0 %472  ;;  %v2263_v29 = vpop.permute.xlu1 %2262 }
0x136c   :  { %v475_v18 = vmul.f32 %v3838_v60, %v446_v36  ;;  %2265 = vst.msk [vmem:[#allocation6] sm:$0x3] %vm320_vm0, %v2263_v29  ;;  %v762_v49 = vmul.f32 %v741_v21, %v3838_v60  ;;  %v1044_v30 = vmul.f32 %v1023_v17, %v3838_v60  ;;  %v1305_v21 = vsel %vm1304_vm4, %v3607_v10, 0.0 }
0x136d   :  { %v2142_v44 = vmul.f32 %v2121_v2, %v3838_v60 }
0x136e   :  { %477 = vrot.lane.b32.xlu1 %v475_v18, %s3149_s2 }
0x136f   :  { %v3843_v19 = vld [vmem:[#allocation4] sm:$0x3] }
0x1370   :  { %2890 = vmatmul.mubr.msk.f32.vlgmr.msra.gmra.mxu0 %vm128_vm1, %v3843_v19 }
0x1372   :  { %2133 = vrot.lane.b32.xlu1 %v2131_v23, %s3149_s2 }
0x1373   :  { %v3848_v38 = vld [vmem:[#allocation6] sm:$0x3] }
0x1374   :  { %2901 = vmatmul.mubr.msk.f32.vlgmr.msra.gmra.mxu1 %vm128_vm1, %v3848_v38  ;;  %vm483_vm1 = vcmask 1024  }
0x1376   :  { %2268 = vrot.lane.b32.xlu1 %v2266_v37, %s3149_s2 }
0x137a   :  { %617 = vrot.lane.b32.xlu1 %v2596_v15, %s3150_s4 }
0x13e0   :  { %v478_v1 = vpop.permute.xlu1 %477 }
0x13e1   :  { %v480_v39 = vsel %vm320_vm0, %v478_v1, 0.0 }
0x13e2   :  { %481 = vadd.xlane.f32.xlu0 %v480_v39 }
0x13e4   :  { %v2134_v41 = vpop.permute.xlu1 %2133 }
0x13e5   :  { %v2136_v51 = vsel %vm881_vm10, %v2114_v12, %v2134_v41 }
0x13e8   :  { %v2269_v42 = vpop.permute.xlu1 %2268 }
0x13e9   :  { %v2271_v16 = vsel %vm740_vm9, %v3809_v57, %v2269_v42 }
0x13ec   :  { %v3858_v28 = vpop.permute.xlu1 %617 }
0x13ed   :  { %v620_v48 = vmul.f32 %v3858_v28, %v596_v47  ;;  %v903_v52 = vmul.f32 %v882_v20, %v3858_v28  ;;  %v1164_v47 = vsel %vm1163_vm14, %v3540_v4, 0.0 }
0x13ef   :  { %622 = vrot.lane.b32.xlu1 %v620_v48, %s3149_s2  ;;  %v1185_v48 = vmul.f32 %v1164_v47, %v3858_v28 }
0x13f8   :  { %764 = vrot.lane.b32.xlu0 %v762_v49, %s3149_s2  ;;  %v1326_v49 = vmul.f32 %v1305_v21, %v3838_v60 }
0x13fc   :  { %2138 = vrot.lane.b32.xlu0 %v2136_v51, %s3151_s0 }
0x1400   :  { %905 = vrot.lane.b32.xlu0 %v903_v52, %s3149_s2 }
0x1430   :  { %v2358_v53 = vpop.f32.mrf.mxu0 }
0x1431   :  { %v2362_v62 = vadd.f32 %v2358_v53, %v2286_v3 }
0x1432   :  { %v2891_v55 = vpop.f32.mrf.mxu0 }
0x1433   :  { %v2363_v32 = vsub.f32 0.0, %v2362_v62 }
0x1434   :  { %v2493_v56 = vpop.f32.mrf.mxu1 }
0x1435   :  { %v2497_v0 = vadd.f32 %v2493_v56, %v2421_v46  ;;  %v2364_v27 = vmul.f32 1.442695, %v2363_v32 }
0x1436   :  { %v2902_v59 = vpop.f32.mrf.mxu1 }
0x1437   :  { %3030 = vtanh.f32 %v2497_v0  ;;  %v2498_v33 = vsub.f32 0.0, %v2497_v0 }
0x1438   :  { %3032 = vtanh.f32 %v2362_v62 }
0x1439   :  { %3034 = vpow2.f32 %v2364_v27  ;;  %v2499_v36 = vmul.f32 1.442695, %v2498_v33 }
0x143b   :  { %3036 = vpow2.f32 %v2499_v36 }
0x1444   :  { %v3031_v7 = vpop.eup %3030 }
0x1445   :  { %2511 = vrot.lane.b32.xlu0 %v3031_v7, %s3150_s4  ;;  %v3033_v5 = vpop.eup %3032 }
0x1446   :  { %v3035_v57 = vpop.eup %3034 }
0x1447   :  { %v2366_v29 = vadd.f32 1.0, %v3035_v57 }
0x1448   :  { %v3037_v18 = vpop.eup %3036 }
0x1449   :  { %2376 = vrot.lane.b32.xlu0 %v3033_v5, %s3150_s4  ;;  %3038 = vrcp.f32 %v2366_v29  ;;  %v2501_v23 = vadd.f32 1.0, %v3037_v18  ;;  %v1851_v29 = vsel %vm1163_vm14, %v3753_v6, 0.0  ;;  %v2277_v6 = vmul.f32 %v2256_v61, %v3858_v28 }
0x144a   :  { %v1872_v18 = vmul.f32 %v1851_v29, %v3838_v60 }
0x144b   :  { %3040 = vrcp.f32 %v2501_v23 }
0x1456   :  { %v3892_v37 = vpop.eup %3038 }
0x1458   :  { %v3896_v41 = vpop.eup %3040 }
0x1461   :  { %v623_v50 = vpop.permute.xlu1 %622 }
0x1462   :  { %v625_v8 = vsel %vm320_vm0, %v623_v50, 0.0 }
0x1463   :  { %626 = vadd.xlane.f32.xlu1 %v625_v8  ;;  %v1446_v8 = vsel %vm1445_vm7, %v3614_v24, 0.0  ;;  %v1581_v24 = vsel %vm1445_vm7, %v3687_v40, 0.0  ;;  %v1737_v40 = vmul.f32 %v1716_v9, %v3858_v28 }
0x146b   :  { %v482_v12 = vpop.xlane.xlu0 %481 }
0x146c   :  { %484 = vst.msk [vmem:[#allocation8] sm:$0x3] %vm483_vm1, %v482_v12  ;;  %v1467_v12 = vmul.f32 %v1446_v8, %v3858_v28 }
0x146f   :  { %v765_v54 = vpop.permute.xlu0 %764 }
0x1470   :  { %v767_v22 = vsel %vm320_vm0, %v765_v54, 0.0 }
0x1471   :  { %768 = vadd.xlane.f32.xlu1 %v767_v22 }
0x1473   :  { %v2139_v25 = vpop.permute.xlu0 %2138 }
0x1474   :  { %2141 = vst.msk [vmem:[#allocation5] sm:$0x3] %vm320_vm0, %v2139_v25 }
0x1477   :  { %v906_v26 = vpop.permute.xlu0 %905 }
0x1478   :  { %v908_v13 = vsel %vm320_vm0, %v906_v26, 0.0 }
0x1479   :  { %909 = vadd.xlane.f32.xlu0 %v908_v13 }
0x147b   :  { %v2288_v15 = vld [vmem:[#allocation5] sm:$0x3] }
0x1482   :  { %2273 = vrot.lane.b32.xlu1 %v2271_v16, %s3151_s0  ;;  %v1602_v16 = vmul.f32 %v1581_v24, %v3838_v60 }
0x1486   :  { %1046 = vrot.lane.b32.xlu1 %v1044_v30, %s3149_s2 }
0x148f   :  { %2371 = vrot.lane.b32.xlu0 %v2288_v15, %s3149_s2 }
0x14b7   :  { %v2512_v63 = vpop.permute.xlu0 %2511 }
0x14b8   :  { %v2514_v42 = vmul.f32 %v3896_v41, %v2512_v63 }
0x14bb   :  { %v2377_v1 = vpop.permute.xlu0 %2376 }
0x14bc   :  { %v2379_v39 = vmul.f32 %v3892_v37, %v2377_v1 }
0x14be   :  { %2381 = vrot.lane.b32.xlu0 %v2379_v39, %s3149_s2 }
0x14c2   :  { %2516 = vrot.lane.b32.xlu0 %v2514_v42, %s3149_s2 }
0x14c6   :  { %1187 = vrot.lane.b32.xlu0 %v1185_v48, %s3149_s2 }
0x14ca   :  { %1328 = vrot.lane.b32.xlu0 %v1326_v49, %s3149_s2 }
0x14ec   :  { %v627_v51 = vpop.xlane.xlu1 %626 }
0x14ed   :  { %629 = vst.msk [vmem:[#allocation8 + $0xe] sm:$0x3] %vm628_vm2, %v627_v51 }
0x14fa   :  { %v769_v20 = vpop.xlane.xlu1 %768 }
0x14fb   :  { %770 = vst.msk [vmem:[#allocation8 + $0x2] sm:$0x3] %vm483_vm1, %v769_v20 }
0x14fe   :  { %v2274_v4 = vpop.permute.xlu1 %2273 }
0x14ff   :  { %2276 = vst.msk [vmem:[#allocation7] sm:$0x3] %vm320_vm0, %v2274_v4 }
0x1502   :  { %v1047_v52 = vpop.permute.xlu1 %1046  ;;  %v910_v53 = vpop.xlane.xlu0 %909 }
0x1503   :  { %v1049_v55 = vsel %vm320_vm0, %v1047_v52, 0.0  ;;  %911 = vst.msk [vmem:[#allocation8 + $0xc] sm:$0x3] %vm628_vm2, %v910_v53 }
0x1504   :  { %1050 = vadd.xlane.f32.xlu1 %v1049_v55 }
0x1506   :  { %v2423_v10 = vld [vmem:[#allocation7] sm:$0x3]  ;;  %v2372_v46 = vpop.permute.xlu0 %2371 }
0x1507   :  { %v2374_v56 = vmul.f32 %v3892_v37, %v2372_v46  ;;  %v2401_v46 = vld [vmem:[#allocation5] sm:$0x3] }
0x1515   :  { %2506 = vrot.lane.b32.xlu1 %v2423_v10, %s3149_s2 }
0x1530   :  { %v2382_v0 = vpop.permute.xlu0 %2381 }
0x1531   :  { %v3917_v3 = vadd.f32 %v2382_v0, %v2374_v56  ;;  %v2536_v56 = vld [vmem:[#allocation7] sm:$0x3] }
0x1534   :  { %v2517_v59 = vpop.permute.xlu0 %2516 }
0x1538   :  { %v1188_v62 = vpop.permute.xlu0 %1187 }
0x1539   :  { %v1190_v7 = vsel %vm320_vm0, %v1188_v62, 0.0 }
0x153a   :  { %1191 = vadd.xlane.f32.xlu1 %v1190_v7 }
0x153c   :  { %v1329_v5 = vpop.permute.xlu0 %1328 }
0x153d   :  { %v1331_v50 = vsel %vm320_vm0, %v1329_v5, 0.0 }
0x153e   :  { %1332 = vadd.xlane.f32.xlu0 %v1331_v50 }
0x154b   :  { %1469 = vrot.lane.b32.xlu1 %v1467_v12, %s3149_s2 }
0x158d   :  { %v1051_v54 = vpop.xlane.xlu1 %1050 }
0x158e   :  { %1052 = vst.msk [vmem:[#allocation8 + $0x4] sm:$0x3] %vm483_vm1, %v1051_v54 }
0x1591   :  { %v2507_v22 = vpop.permute.xlu1 %2506 }
0x1592   :  { %v2509_v25 = vmul.f32 %v3896_v41, %v2507_v22 }
0x1594   :  { %v3928_v26 = vadd.f32 %v2517_v59, %v2509_v25 }
0x1596   :  { %3042 = vtanh.f32 %v3928_v26 }
0x1597   :  { %3044 = vtanh.f32 %v3917_v3 }
0x15a3   :  { %v3043_v13 = vpop.eup %3042 }
0x15a4   :  { %2522 = vrot.lane.b32.xlu1 %v3043_v13, %s3150_s4  ;;  %v3045_v27 = vpop.eup %3044 }
0x15a8   :  { %1604 = vrot.lane.b32.xlu1 %v1602_v16, %s3149_s2 }
0x15c3   :  { %v1192_v17 = vpop.xlane.xlu1 %1191 }
0x15c4   :  { %1193 = vst.msk [vmem:[#allocation8 + $0xa] sm:$0x3] %vm628_vm2, %v1192_v17 }
0x15c7   :  { %v1470_v30 = vpop.permute.xlu1 %1469  ;;  %v1333_v15 = vpop.xlane.xlu0 %1332 }
0x15c8   :  { %v1472_v32 = vsel %vm320_vm0, %v1470_v30, 0.0  ;;  %1334 = vst.msk [vmem:[#allocation8 + $0x6] sm:$0x3] %vm483_vm1, %v1333_v15  ;;  %v2612_v15 = vld [vmem:[#allocation9] ss:$0 sm:$0xff] }
0x15c9   :  { %1473 = vadd.xlane.f32.xlu0 %v1472_v32 }
0x15df   :  { %2387 = vrot.lane.b32.xlu0 %v3045_v27, %s3150_s4 }
0x15e3   :  { %1739 = vrot.lane.b32.xlu0 %v1737_v40, %s3149_s2 }
0x1616   :  { %v2523_v33 = vpop.permute.xlu1 %2522 }
0x1617   :  { %v3958_v23 = vmul.f32 %v3896_v41, %v2523_v33  ;;  %v1986_v41 = vsel %vm1022_vm13, %v3759_v11, 0.0 }
0x1618   :  { %v2007_v42 = vmul.f32 %v1986_v41, %v3858_v28 }
0x1619   :  { %v2526_v63 = vsel %vm445_vm5, %v3958_v23, 0.0 }
0x161a   :  { %v1605_v36 = vpop.permute.xlu1 %1604  ;;  %v2547_v45 = vmul.f32 %v2526_v63, %v3858_v28 }
0x161b   :  { %v1607_v57 = vsel %vm320_vm0, %v1605_v36, 0.0 }
0x161c   :  { %1608 = vadd.xlane.f32.xlu1 %v1607_v57 }
0x162d   :  { %1874 = vrot.lane.b32.xlu1 %v1872_v18, %s3149_s2 }
0x1631   :  { %2144 = vrot.lane.b32.xlu1 %v2142_v44, %s3149_s2 }
0x1635   :  { %2279 = vrot.lane.b32.xlu1 %v2277_v6, %s3149_s2 }
0x1639   :  { %2549 = vrot.lane.b32.xlu1 %v2547_v45, %s3149_s2 }
0x1652   :  { %v1474_v14 = vpop.xlane.xlu0 %1473 }
0x1653   :  { %1475 = vst.msk [vmem:[#allocation8 + $0x8] sm:$0x3] %vm628_vm2, %v1474_v14 }
0x1656   :  { %v2388_v1 = vpop.permute.xlu0 %2387 }
0x1657   :  { %v2390_v31 = vmul.f32 %v3892_v37, %v2388_v1 }
0x1659   :  { %v2391_v47 = vsel %vm595_vm6, %v2390_v31, 0.0 }
0x165a   :  { %v1740_v39 = vpop.permute.xlu0 %1739  ;;  %v2412_v48 = vmul.f32 %v2391_v47, %v3838_v60 }
0x165b   :  { %v1742_v43 = vsel %vm320_vm0, %v1740_v39, 0.0 }
0x165c   :  { %1743 = vadd.xlane.f32.xlu0 %v1742_v43 }
0x1672   :  { %2009 = vrot.lane.b32.xlu0 %v2007_v42, %s3149_s2 }
0x1676   :  { %2414 = vrot.lane.b32.xlu0 %v2412_v48, %s3149_s2 }
0x16a5   :  { %v1609_v21 = vpop.xlane.xlu1 %1608 }
0x16a6   :  { %1610 = vst.msk [vmem:[#allocation8 + $0x8] sm:$0x3] %vm483_vm1, %v1609_v21 }
0x16a9   :  { %v1875_v49 = vpop.permute.xlu1 %1874 }
0x16aa   :  { %v1877_v37 = vsel %vm320_vm0, %v1875_v49, 0.0 }
0x16ab   :  { %1878 = vadd.xlane.f32.xlu0 %v1877_v37 }
0x16ad   :  { %v2145_v58 = vpop.permute.xlu1 %2144 }
0x16ae   :  { %v2147_v11 = vsel %vm320_vm0, %v2145_v58, 0.0 }
0x16af   :  { %2148 = vadd.xlane.f32.xlu0 %v2147_v11 }
0x16b1   :  { %v2280_v28 = vpop.permute.xlu1 %2279 }
0x16b2   :  { %v2282_v51 = vsel %vm320_vm0, %v2280_v28, 0.0 }
0x16b3   :  { %2283 = vadd.xlane.f32.xlu0 %v2282_v51 }
0x16b5   :  { %v2550_v55 = vpop.permute.xlu1 %2549 }
0x16b6   :  { %v2552_v10 = vsel %vm320_vm0, %v2550_v55, 0.0 }
0x16e5   :  { %v1744_v20 = vpop.xlane.xlu0 %1743 }
0x16e6   :  { %1745 = vst.msk [vmem:[#allocation8 + $0x6] sm:$0x3] %vm628_vm2, %v1744_v20 }
0x16e9   :  { %v2010_v60 = vpop.permute.xlu0 %2009 }
0x16ea   :  { %v2012_v4 = vsel %vm320_vm0, %v2010_v60, 0.0 }
0x16eb   :  { %2013 = vadd.xlane.f32.xlu1 %v2012_v4 }
0x16ed   :  { %v2415_v52 = vpop.permute.xlu0 %2414 }
0x16ee   :  { %v2417_v53 = vsel %vm320_vm0, %v2415_v52, 0.0 }
0x16ef   :  { %2418 = vadd.xlane.f32.xlu0 %v2417_v53 }
0x16f3   :  { %2553 = vadd.xlane.f32.xlu0 %v2552_v10 }
0x16fc   :  { %2392 = vrot.lane.b32.xlu1 %v3843_v19, %s3151_s0 }
0x1700   :  { %2403 = vrot.lane.b32.xlu1 %v2401_v46, %s3149_s2 }
0x1704   :  { %2527 = vrot.lane.b32.xlu1 %v3848_v38, %s3151_s0 }
0x1708   :  { %2538 = vrot.lane.b32.xlu1 %v2536_v56, %s3149_s2 }
0x1734   :  { %v1879_v0 = vpop.xlane.xlu0 %1878 }
0x1735   :  { %1880 = vst.msk [vmem:[#allocation8 + $0xa] sm:$0x3] %vm483_vm1, %v1879_v0 }
0x1738   :  { %v2149_v59 = vpop.xlane.xlu0 %2148 }
0x1739   :  { %2150 = vst.msk [vmem:[#allocation8 + $0xc] sm:$0x3] %vm483_vm1, %v2149_v59 }
0x173c   :  { %v2284_v62 = vpop.xlane.xlu0 %2283 }
0x173d   :  { %2285 = vst.msk [vmem:[#allocation8 + $0x2] sm:$0x3] %vm628_vm2, %v2284_v62 }
0x1774   :  { %v2014_v7 = vpop.xlane.xlu1 %2013 }
0x1775   :  { %2015 = vst.msk [vmem:[#allocation8 + $0x4] sm:$0x3] %vm628_vm2, %v2014_v7 }
0x1778   :  { %v2393_v19 = vpop.permute.xlu1 %2392  ;;  %v2419_v5 = vpop.xlane.xlu0 %2418 }
0x1779   :  { %v2395_v38 = vsel %vm595_vm6, %v2390_v31, %v2393_v19  ;;  %2420 = vst.msk [vmem:[#allocation8 + $0xe] sm:$0x3] %vm483_vm1, %v2419_v5 }
0x177a   :  { %2397 = vrot.lane.b32.xlu0 %v2395_v38, %s3149_s2 }
0x177c   :  { %v2404_v50 = vpop.permute.xlu1 %2403  ;;  %v2554_v8 = vpop.xlane.xlu0 %2553 }
0x177d   :  { %v2406_v12 = vsel %vm595_vm6, %v3917_v3, %v2404_v50  ;;  %2555 = vst.msk [vmem:[#allocation8] sm:$0x3] %vm628_vm2, %v2554_v8 }
0x177e   :  { %2408 = vrot.lane.b32.xlu1 %v2406_v12, %s3151_s0 }
0x1780   :  { %v2528_v54 = vpop.permute.xlu1 %2527  ;;  %v2557_v35 = vld [vmem:[#allocation8 + $0x8] sm:$0xff] }
0x1781   :  { %v2530_v22 = vsel %vm445_vm5, %v3958_v23, %v2528_v54 }
0x1782   :  { %2532 = vrot.lane.b32.xlu0 %v2530_v22, %s3149_s2 }
0x1784   :  { %v2539_v25 = vpop.permute.xlu1 %2538  ;;  %v2556_v13 = vld [vmem:[#allocation8] sm:$0xff] }
0x1785   :  { %v2541_v24 = vsel %vm445_vm5, %v3928_v26, %v2539_v25  ;;  %vm2577_vm5 = vcmask 7168  }
0x1786   :  { %2543 = vrot.lane.b32.xlu1 %v2541_v24, %s3151_s0  ;;  %2560 = vrot.lane.b32.xlu0 %v2556_v13, %s3152_s11 }
0x178a   :  { %2562 = vrot.lane.b32.xlu1 %v2557_v35, %s3152_s11 }
0x17ec   :  { %v2398_v3 = vpop.permute.xlu0 %2397 }
0x17ed   :  { %2400 = vst.msk [vmem:[#allocation4] sm:$0x3] %vm320_vm0, %v2398_v3 }
0x17f0   :  { %v2409_v16 = vpop.permute.xlu1 %2408 }
0x17f1   :  { %2411 = vst.msk [vmem:[#allocation5] sm:$0x3] %vm320_vm0, %v2409_v16 }
0x17f4   :  { %v2533_v17 = vpop.permute.xlu0 %2532 }
0x17f5   :  { %2535 = vst.msk [vmem:[#allocation6] sm:$0x3] %vm320_vm0, %v2533_v17 }
0x17f8   :  { %v2544_v30 = vpop.permute.xlu1 %2543  ;;  %v2561_v32 = vpop.permute.xlu0 %2560 }
0x17f9   :  { %2546 = vst.msk [vmem:[#allocation7] sm:$0x3] %vm320_vm0, %v2544_v30  ;;  %v2566_v34 = vadd.f32 %v2561_v32, %v2556_v13 }
0x17fb   :  { %v2575_v26 = vadd.f32 %v2612_v15, %v2566_v34 }
0x17fc   :  { %v2563_v27 = vpop.permute.xlu1 %2562 }
0x17fd   :  { %2578 = vst.msk [vmem:[%s4041_s13] sm:$0xff] %vm2577_vm5, %v2575_v26  ;;  %v2567_v9 = vadd.f32 %v2563_v27, %v2557_v35 }
0x17ff   :  { %v2576_v40 = vadd.f32 %v2612_v15, %v2567_v9 }
0x1801   :  { %2579 = vst.msk [vmem:[%s4041_s13 + $0x8] sm:$0xff] %vm2577_vm5, %v2576_v40 }
0x1802   :  { %2584 = vsyncpa [#allocation11], 1 }
0x1803   :  { %2585 = vsyncpa [#allocation13], 1 }
0x1804   :  { %2586 = vsyncpa [#allocation16], 1 }

</bundles_post_ra>
